<compile_context>
chip_gen: v7x
topology: tpu7x:2x2x1
jax: 0.10.0
libtpu: 0.0.40
codegen_flags: <defaults>
</compile_context>

<pallas_src>
import functools
import math

import jax
import jax.numpy as jnp
from jax.experimental import pallas as pl
from jax.experimental.pallas import tpu as pltpu


_TILE_M = 512  # row-tile for the im2col / linear matmuls (fits all VMEM budgets)


def _round_up(x, m):
    return ((x + m - 1) // m) * m


# ---------------------------------------------------------------------------
# Kernel 1: tiled fused matmul + bias (+ ReLU, + optional input scale)
#   x:(TM,K) f32   w:(K,N) bf16 (resident)   b:(1,N) f32 (resident)  -> (TM,N) f32
# ---------------------------------------------------------------------------
def _matmul_bias_act_kernel(x_ref, w_ref, b_ref, o_ref, *, apply_relu, scale):
    x = x_ref[...]
    if scale != 1.0:
        x = x * jnp.float32(scale)
    acc = jnp.dot(x.astype(jnp.bfloat16), w_ref[...],
                  preferred_element_type=jnp.float32)
    acc = acc + b_ref[...]
    if apply_relu:
        acc = jnp.maximum(acc, 0.0)
    o_ref[...] = acc


def matmul_bias_act(x, w_bf16, b, *, apply_relu, scale=1.0, tile_m=_TILE_M):
    """y = act((scale * x) @ w + b), tiled over rows of x."""
    M, K = x.shape
    K2, N = w_bf16.shape
    assert K == K2, (K, K2)
    tm = M if M <= tile_m else tile_m
    if tm != M and tm % 8 != 0:        # (8,128) rule: block M multiple of 8 or full
        tm = _round_up(tm, 8)
    grid_m = pl.cdiv(M, tm)
    kernel = functools.partial(_matmul_bias_act_kernel,
                               apply_relu=apply_relu, scale=scale)
    return pl.pallas_call(
        kernel,
        out_shape=jax.ShapeDtypeStruct((M, N), jnp.float32),
        grid=(grid_m,),
        in_specs=[
            pl.BlockSpec((tm, K), lambda i: (i, 0)),   # x: tiled over M
            pl.BlockSpec((K, N), lambda i: (0, 0)),    # weight: resident
            pl.BlockSpec((1, N), lambda i: (0, 0)),    # bias: resident
        ],
        out_specs=pl.BlockSpec((tm, N), lambda i: (i, 0)),
        compiler_params=pltpu.CompilerParams(
            dimension_semantics=("parallel",)),
    )(x.astype(jnp.float32), w_bf16, b.reshape(1, N).astype(jnp.float32))


# ---------------------------------------------------------------------------
# Kernel 2: fused fc(1568->H, ReLU) + critic(H->1) in one pass
# ---------------------------------------------------------------------------
def _fc_critic_kernel(x_ref, fcw_ref, fcb_ref, cw_ref, cb_ref, h_ref, v_ref):
    h = jnp.dot(x_ref[...].astype(jnp.bfloat16), fcw_ref[...],
                preferred_element_type=jnp.float32)
    h = jnp.maximum(h + fcb_ref[...], 0.0)
    h_ref[...] = h
    # critic epilogue: tiny (H x 1) matmul, kept f32 for accuracy
    v_ref[...] = jnp.dot(h, cw_ref[...],
                         preferred_element_type=jnp.float32) + cb_ref[...]


def fc_critic(feat, fc_w_bf16, fc_b, critic_w, critic_b, *, tile_m=_TILE_M):
    M, K = feat.shape
    K2, H = fc_w_bf16.shape
    assert K == K2, (K, K2)
    tm = M if M <= tile_m else tile_m
    if tm != M and tm % 8 != 0:
        tm = _round_up(tm, 8)
    grid_m = pl.cdiv(M, tm)
    h, v = pl.pallas_call(
        _fc_critic_kernel,
        out_shape=(jax.ShapeDtypeStruct((M, H), jnp.float32),
                   jax.ShapeDtypeStruct((M, 1), jnp.float32)),
        grid=(grid_m,),
        in_specs=[
            pl.BlockSpec((tm, K), lambda i: (i, 0)),   # features: tiled over M
            pl.BlockSpec((K, H), lambda i: (0, 0)),    # fc weight: resident
            pl.BlockSpec((1, H), lambda i: (0, 0)),
            pl.BlockSpec((H, 1), lambda i: (0, 0)),    # critic weight: resident
            pl.BlockSpec((1, 1), lambda i: (0, 0)),
        ],
        out_specs=(pl.BlockSpec((tm, H), lambda i: (i, 0)),
                   pl.BlockSpec((tm, 1), lambda i: (i, 0))),
        compiler_params=pltpu.CompilerParams(
            dimension_semantics=("parallel",)),
    )(feat.astype(jnp.float32), fc_w_bf16,
      fc_b.reshape(1, H).astype(jnp.float32),
      critic_w.astype(jnp.float32),
      critic_b.reshape(1, 1).astype(jnp.float32))
    return v, h


# ---------------------------------------------------------------------------
# im2col glue (plain JAX): NHWC -> (N*OH*OW, KH*KW*C), (kh, kw, c) columns.
# No transposes — just strided slices + one concatenate along the lane axis.
# TODO(synk): move patch extraction into the kernel (VMEM) to avoid the
#             expanded HBM copy at large batch sizes.
# ---------------------------------------------------------------------------
def im2col_nhwc(x, kh, kw, stride):
    N, H, W, C = x.shape
    oh = (H - kh) // stride + 1
    ow = (W - kw) // stride + 1
    cols = []
    for i in range(kh):
        for j in range(kw):
            cols.append(x[:, i:i + stride * oh:stride,
                          j:j + stride * ow:stride, :])
    p = jnp.concatenate(cols, axis=-1)          # (N, oh, ow, kh*kw*C)
    return p.reshape(N * oh * ow, kh * kw * C), oh, ow


# ---------------------------------------------------------------------------
# Deterministic parameter init (mirrors nn.init.orthogonal_ + zero bias),
# with weights pre-permuted ONCE into the (K, N) kernel layouts.
# ---------------------------------------------------------------------------
def init_params(key, num_inputs, hidden_size):
    ks = jax.random.split(key, 5)
    relu_gain = math.sqrt(2.0)  # nn.init.calculate_gain('relu')

    def ortho(k, rows, cols, gain):
        return jax.nn.initializers.orthogonal(scale=gain)(k, (rows, cols),
                                                          jnp.float32)

    def conv_kernel_layout(w_pt, oc, c, kh, kw):
        # PyTorch (OC, C*KH*KW) -> (KH*KW*C, OC) matching (kh, kw, c) columns
        return (w_pt.reshape(oc, c, kh, kw)
                .transpose(2, 3, 1, 0)
                .reshape(kh * kw * c, oc))

    c1 = ortho(ks[0], 32, num_inputs * 8 * 8, relu_gain)
    c2 = ortho(ks[1], 64, 32 * 4 * 4, relu_gain)
    c3 = ortho(ks[2], 32, 64 * 3 * 3, relu_gain)
    fc = ortho(ks[3], hidden_size, 32 * 7 * 7, relu_gain)
    cr = ortho(ks[4], 1, hidden_size, 1.0)

    # fc weight: PyTorch flattens NCHW (c, h, w); we flatten NHWC (h, w, c),
    # so permute the fc input columns once here to match.
    fc_k = (fc.reshape(hidden_size, 32, 7, 7)
            .transpose(0, 2, 3, 1)
            .reshape(hidden_size, 7 * 7 * 32)
            .T)

    return {
        "conv1_w": conv_kernel_layout(c1, 32, num_inputs, 8, 8).astype(jnp.bfloat16),
        "conv1_b": jnp.zeros((32,), jnp.float32),
        "conv2_w": conv_kernel_layout(c2, 64, 32, 4, 4).astype(jnp.bfloat16),
        "conv2_b": jnp.zeros((64,), jnp.float32),
        "conv3_w": conv_kernel_layout(c3, 32, 64, 3, 3).astype(jnp.bfloat16),
        "conv3_b": jnp.zeros((32,), jnp.float32),
        "fc_w": fc_k.astype(jnp.bfloat16),                 # (1568, hidden)
        "fc_b": jnp.zeros((hidden_size,), jnp.float32),
        "critic_w": cr.T.astype(jnp.float32),              # (hidden, 1)
        "critic_b": jnp.zeros((1,), jnp.float32),
    }


# ---------------------------------------------------------------------------
# CNNBase.forward (non-recurrent)
# ---------------------------------------------------------------------------
def cnn_base_forward(params, inputs, rnn_hxs, masks, last_actions):
    del masks, last_actions  # only used by the recurrent (GRU) path
    N = inputs.shape[0]

    # NCHW (PyTorch) -> NHWC once; everything downstream stays NHWC.
    x = inputs.transpose(0, 2, 3, 1)

    # conv1: 8x8 stride 4, ReLU  (/255.0 fused into the kernel)
    p, oh, ow = im2col_nhwc(x, 8, 8, 4)
    y = matmul_bias_act(p, params["conv1_w"], params["conv1_b"],
                        apply_relu=True, scale=1.0 / 255.0)
    x = y.reshape(N, oh, ow, 32)

    # conv2: 4x4 stride 2, ReLU
    p, oh, ow = im2col_nhwc(x, 4, 4, 2)
    y = matmul_bias_act(p, params["conv2_w"], params["conv2_b"], apply_relu=True)
    x = y.reshape(N, oh, ow, 64)

    # conv3: 3x3 stride 1, ReLU; output reshapes directly into the lane-dense
    # (N, 7*7*32) NHWC feature slab (fc weight was permuted to match).
    p, oh, ow = im2col_nhwc(x, 3, 3, 1)
    y = matmul_bias_act(p, params["conv3_w"], params["conv3_b"], apply_relu=True)
    feat = y.reshape(N, oh * ow * 32)

    # fused fc (1568 -> hidden, ReLU) + critic (hidden -> 1)
    value, h = fc_critic(feat, params["fc_w"], params["fc_b"],
                         params["critic_w"], params["critic_b"])
    return value, h, rnn_hxs


# Plain-JAX f32 reference (same math, same weight layouts) for a sanity check.
def _reference_forward(params, inputs):
    x = inputs.transpose(0, 2, 3, 1) / 255.0

    def conv(x, w, b, kh, kw, s, oc):
        p, oh, ow = im2col_nhwc(x, kh, kw, s)
        y = jnp.maximum(p @ w.astype(jnp.float32) + b, 0.0)
        return y.reshape(x.shape[0], oh, ow, oc)

    x = conv(x, params["conv1_w"], params["conv1_b"], 8, 8, 4, 32)
    x = conv(x, params["conv2_w"], params["conv2_b"], 4, 4, 2, 64)
    x = conv(x, params["conv3_w"], params["conv3_b"], 3, 3, 1, 32)
    feat = x.reshape(x.shape[0], -1)
    h = jnp.maximum(feat @ params["fc_w"].astype(jnp.float32) + params["fc_b"], 0.0)
    v = h @ params["critic_w"] + params["critic_b"]
    return v, h


if __name__ == "__main__":
    key = jax.random.PRNGKey(0)
    k_in, k_par = jax.random.split(key)

    # Atari-style input: spatial 84x84 is implied by Linear(32*7*7, hidden).
    B, C, H, W = 2, 4, 84, 84
    hidden_size = 512

    inputs = jax.random.uniform(k_in, (B, C, H, W), jnp.float32, 0.0, 255.0)
    # Non-recurrent: recurrent_hidden_state_size == 1, hxs passed through.
    rnn_hxs = jnp.zeros((B, 1), jnp.float32)
    masks = jnp.ones((B, 1), jnp.float32)
    last_actions = jnp.zeros((B, 6), jnp.float32)

    params = init_params(k_par, C, hidden_size)

    fwd = jax.jit(cnn_base_forward)
    value, feats, hxs_out = fwd(params, inputs, rnn_hxs, masks, last_actions)
    jax.block_until_ready((value, feats, hxs_out))

    assert value.shape == (B, 1)
    assert feats.shape == (B, hidden_size)
    assert hxs_out.shape == rnn_hxs.shape
    assert bool(jnp.all(feats >= 0.0))          # ReLU output
    assert bool(jnp.all(jnp.isfinite(value)))

    # Numerics vs plain-JAX f32 reference (bf16 MXU => loose tolerance).
    v_ref, h_ref = _reference_forward(params, inputs)
    h_err = jnp.max(jnp.abs(feats - h_ref)) / (jnp.max(jnp.abs(h_ref)) + 1e-6)
    v_err = jnp.max(jnp.abs(value - v_ref)) / (jnp.max(jnp.abs(v_ref)) + 1e-6)
    assert float(h_err) < 5e-2, float(h_err)
    assert float(v_err) < 5e-2, float(v_err)

    print("KERNEL_OK")
</pallas_src>

<mosaic_0001>
module attributes {stable_mosaic.version = 11 : i64} {
  func.func @_matmul_bias_act_kernel(%arg0: i32, %arg1: memref<512x256xf32, #tpu.memory_space<vmem>>, %arg2: memref<256x32xbf16, #tpu.memory_space<vmem>>, %arg3: memref<1x32xf32, #tpu.memory_space<vmem>>, %arg4: memref<512x32xf32, #tpu.memory_space<vmem>>) attributes {dimension_semantics = [#tpu.dimension_semantics<parallel>], iteration_bounds = array<i64: 2>, scalar_prefetch = 0 : i64, scratch_operands = 0 : i64, tpu.core_type = #tpu.core_type<tc>, window_params = [{transform_indices = @transform_0, window_bounds = array<i64: 512, 256>}, {pipeline_mode = #tpu.pipeline_mode<synchronous>, transform_indices = @transform_1, window_bounds = array<i64: 256, 32>}, {pipeline_mode = #tpu.pipeline_mode<synchronous>, transform_indices = @transform_2, window_bounds = array<i64: 1, 32>}, {transform_indices = @transform_3, window_bounds = array<i64: 512, 32>}]} {
    %c0 = arith.constant 0 : index
    %c0_0 = arith.constant 0 : index
    %0 = vector.load %arg1[%c0, %c0_0] : memref<512x256xf32, #tpu.memory_space<vmem>>, vector<512x256xf32>
    %cst = arith.constant 0.00392156886 : f32
    %1 = vector.broadcast %cst : f32 to vector<512x256xf32>
    %2 = arith.mulf %0, %1 : vector<512x256xf32>
    %3 = arith.truncf %2 : vector<512x256xf32> to vector<512x256xbf16>
    %c0_1 = arith.constant 0 : index
    %c0_2 = arith.constant 0 : index
    %4 = vector.load %arg2[%c0_1, %c0_2] : memref<256x32xbf16, #tpu.memory_space<vmem>>, vector<256x32xbf16>
    %cst_3 = arith.constant dense<0.000000e+00> : vector<512x32xf32>
    %5 = tpu.matmul %3, %4, %cst_3 {dimension_numbers = #tpu.dot_dimension_numbers<[1], [0], [0], [1], [0, 0, 1, 1], [], []>} : vector<512x256xbf16>, vector<256x32xbf16>, vector<512x32xf32> -> vector<512x32xf32>
    %c0_4 = arith.constant 0 : index
    %c0_5 = arith.constant 0 : index
    %6 = vector.load %arg3[%c0_4, %c0_5] : memref<1x32xf32, #tpu.memory_space<vmem>>, vector<1x32xf32>
    %7 = vector.broadcast %6 : vector<1x32xf32> to vector<512x32xf32>
    %8 = arith.addf %5, %7 : vector<512x32xf32>
    %cst_6 = arith.constant 0.000000e+00 : f32
    %9 = vector.broadcast %cst_6 : f32 to vector<512x32xf32>
    %10 = arith.maximumf %8, %9 : vector<512x32xf32>
    %c0_7 = arith.constant 0 : index
    %c0_8 = arith.constant 0 : index
    %11 = vector.load %arg4[%c0_7, %c0_8] : memref<512x32xf32, #tpu.memory_space<vmem>>, vector<512x32xf32>
    tpu.vector_store %arg4[%c0_7, %c0_8], %10 {strides = array<i32>} : memref<512x32xf32, #tpu.memory_space<vmem>>, vector<512x32xf32>,
    return
  }
  func.func @transform_0(%arg0: i32) -> (i32, i32) {
    %c0_i32 = arith.constant 0 : i32
    %c0_i32_0 = arith.constant 0 : i32
    return %arg0, %c0_i32 : i32, i32
  }
  func.func @transform_1(%arg0: i32) -> (i32, i32) {
    %c0_i32 = arith.constant 0 : i32
    %c0_i32_0 = arith.constant 0 : i32
    %c0_i32_1 = arith.constant 0 : i32
    return %c0_i32, %c0_i32_0 : i32, i32
  }
  func.func @transform_2(%arg0: i32) -> (i32, i32) {
    %c0_i32 = arith.constant 0 : i32
    %c0_i32_0 = arith.constant 0 : i32
    %c0_i32_1 = arith.constant 0 : i32
    return %c0_i32, %c0_i32_0 : i32, i32
  }
  func.func @transform_3(%arg0: i32) -> (i32, i32) {
    %c0_i32 = arith.constant 0 : i32
    %c0_i32_0 = arith.constant 0 : i32
    return %arg0, %c0_i32 : i32, i32
  }
}

module attributes {stable_mosaic.version = 11 : i64} {
  func.func @_matmul_bias_act_kernel(%arg0: i32, %arg1: memref<162x512xf32, #tpu.memory_space<vmem>>, %arg2: memref<512x64xbf16, #tpu.memory_space<vmem>>, %arg3: memref<1x64xf32, #tpu.memory_space<vmem>>, %arg4: memref<162x64xf32, #tpu.memory_space<vmem>>) attributes {dimension_semantics = [#tpu.dimension_semantics<parallel>], iteration_bounds = array<i64: 1>, scalar_prefetch = 0 : i64, scratch_operands = 0 : i64, tpu.core_type = #tpu.core_type<tc>, window_params = [{transform_indices = @transform_0, window_bounds = array<i64: 162, 512>}, {pipeline_mode = #tpu.pipeline_mode<synchronous>, transform_indices = @transform_1, window_bounds = array<i64: 512, 64>}, {pipeline_mode = #tpu.pipeline_mode<synchronous>, transform_indices = @transform_2, window_bounds = array<i64: 1, 64>}, {transform_indices = @transform_3, window_bounds = array<i64: 162, 64>}]} {
    %c0 = arith.constant 0 : index
    %c0_0 = arith.constant 0 : index
    %0 = vector.load %arg1[%c0, %c0_0] : memref<162x512xf32, #tpu.memory_space<vmem>>, vector<162x512xf32>
    %1 = arith.truncf %0 : vector<162x512xf32> to vector<162x512xbf16>
    %c0_1 = arith.constant 0 : index
    %c0_2 = arith.constant 0 : index
    %2 = vector.load %arg2[%c0_1, %c0_2] : memref<512x64xbf16, #tpu.memory_space<vmem>>, vector<512x64xbf16>
    %cst = arith.constant dense<0.000000e+00> : vector<162x64xf32>
    %3 = tpu.matmul %1, %2, %cst {dimension_numbers = #tpu.dot_dimension_numbers<[1], [0], [0], [1], [0, 0, 1, 1], [], []>} : vector<162x512xbf16>, vector<512x64xbf16>, vector<162x64xf32> -> vector<162x64xf32>
    %c0_3 = arith.constant 0 : index
    %c0_4 = arith.constant 0 : index
    %4 = vector.load %arg3[%c0_3, %c0_4] : memref<1x64xf32, #tpu.memory_space<vmem>>, vector<1x64xf32>
    %5 = vector.broadcast %4 : vector<1x64xf32> to vector<162x64xf32>
    %6 = arith.addf %3, %5 : vector<162x64xf32>
    %cst_5 = arith.constant 0.000000e+00 : f32
    %7 = vector.broadcast %cst_5 : f32 to vector<162x64xf32>
    %8 = arith.maximumf %6, %7 : vector<162x64xf32>
    %c0_6 = arith.constant 0 : index
    %c0_7 = arith.constant 0 : index
    %9 = vector.load %arg4[%c0_6, %c0_7] : memref<162x64xf32, #tpu.memory_space<vmem>>, vector<162x64xf32>
    tpu.vector_store %arg4[%c0_6, %c0_7], %8 {strides = array<i32>} : memref<162x64xf32, #tpu.memory_space<vmem>>, vector<162x64xf32>,
    return
  }
  func.func @transform_0(%arg0: i32) -> (i32, i32) {
    %c0_i32 = arith.constant 0 : i32
    %c0_i32_0 = arith.constant 0 : i32
    return %arg0, %c0_i32 : i32, i32
  }
  func.func @transform_1(%arg0: i32) -> (i32, i32) {
    %c0_i32 = arith.constant 0 : i32
    %c0_i32_0 = arith.constant 0 : i32
    %c0_i32_1 = arith.constant 0 : i32
    return %c0_i32, %c0_i32_0 : i32, i32
  }
  func.func @transform_2(%arg0: i32) -> (i32, i32) {
    %c0_i32 = arith.constant 0 : i32
    %c0_i32_0 = arith.constant 0 : i32
    %c0_i32_1 = arith.constant 0 : i32
    return %c0_i32, %c0_i32_0 : i32, i32
  }
  func.func @transform_3(%arg0: i32) -> (i32, i32) {
    %c0_i32 = arith.constant 0 : i32
    %c0_i32_0 = arith.constant 0 : i32
    return %arg0, %c0_i32 : i32, i32
  }
}

module attributes {stable_mosaic.version = 11 : i64} {
  func.func @_matmul_bias_act_kernel(%arg0: i32, %arg1: memref<98x576xf32, #tpu.memory_space<vmem>>, %arg2: memref<576x32xbf16, #tpu.memory_space<vmem>>, %arg3: memref<1x32xf32, #tpu.memory_space<vmem>>, %arg4: memref<98x32xf32, #tpu.memory_space<vmem>>) attributes {dimension_semantics = [#tpu.dimension_semantics<parallel>], iteration_bounds = array<i64: 1>, scalar_prefetch = 0 : i64, scratch_operands = 0 : i64, tpu.core_type = #tpu.core_type<tc>, window_params = [{transform_indices = @transform_0, window_bounds = array<i64: 98, 576>}, {pipeline_mode = #tpu.pipeline_mode<synchronous>, transform_indices = @transform_1, window_bounds = array<i64: 576, 32>}, {pipeline_mode = #tpu.pipeline_mode<synchronous>, transform_indices = @transform_2, window_bounds = array<i64: 1, 32>}, {transform_indices = @transform_3, window_bounds = array<i64: 98, 32>}]} {
    %c0 = arith.constant 0 : index
    %c0_0 = arith.constant 0 : index
    %0 = vector.load %arg1[%c0, %c0_0] : memref<98x576xf32, #tpu.memory_space<vmem>>, vector<98x576xf32>
    %1 = arith.truncf %0 : vector<98x576xf32> to vector<98x576xbf16>
    %c0_1 = arith.constant 0 : index
    %c0_2 = arith.constant 0 : index
    %2 = vector.load %arg2[%c0_1, %c0_2] : memref<576x32xbf16, #tpu.memory_space<vmem>>, vector<576x32xbf16>
    %cst = arith.constant dense<0.000000e+00> : vector<98x32xf32>
    %3 = tpu.matmul %1, %2, %cst {dimension_numbers = #tpu.dot_dimension_numbers<[1], [0], [0], [1], [0, 0, 1, 1], [], []>} : vector<98x576xbf16>, vector<576x32xbf16>, vector<98x32xf32> -> vector<98x32xf32>
    %c0_3 = arith.constant 0 : index
    %c0_4 = arith.constant 0 : index
    %4 = vector.load %arg3[%c0_3, %c0_4] : memref<1x32xf32, #tpu.memory_space<vmem>>, vector<1x32xf32>
    %5 = vector.broadcast %4 : vector<1x32xf32> to vector<98x32xf32>
    %6 = arith.addf %3, %5 : vector<98x32xf32>
    %cst_5 = arith.constant 0.000000e+00 : f32
    %7 = vector.broadcast %cst_5 : f32 to vector<98x32xf32>
    %8 = arith.maximumf %6, %7 : vector<98x32xf32>
    %c0_6 = arith.constant 0 : index
    %c0_7 = arith.constant 0 : index
    %9 = vector.load %arg4[%c0_6, %c0_7] : memref<98x32xf32, #tpu.memory_space<vmem>>, vector<98x32xf32>
    tpu.vector_store %arg4[%c0_6, %c0_7], %8 {strides = array<i32>} : memref<98x32xf32, #tpu.memory_space<vmem>>, vector<98x32xf32>,
    return
  }
  func.func @transform_0(%arg0: i32) -> (i32, i32) {
    %c0_i32 = arith.constant 0 : i32
    %c0_i32_0 = arith.constant 0 : i32
    return %arg0, %c0_i32 : i32, i32
  }
  func.func @transform_1(%arg0: i32) -> (i32, i32) {
    %c0_i32 = arith.constant 0 : i32
    %c0_i32_0 = arith.constant 0 : i32
    %c0_i32_1 = arith.constant 0 : i32
    return %c0_i32, %c0_i32_0 : i32, i32
  }
  func.func @transform_2(%arg0: i32) -> (i32, i32) {
    %c0_i32 = arith.constant 0 : i32
    %c0_i32_0 = arith.constant 0 : i32
    %c0_i32_1 = arith.constant 0 : i32
    return %c0_i32, %c0_i32_0 : i32, i32
  }
  func.func @transform_3(%arg0: i32) -> (i32, i32) {
    %c0_i32 = arith.constant 0 : i32
    %c0_i32_0 = arith.constant 0 : i32
    return %arg0, %c0_i32 : i32, i32
  }
}

module attributes {stable_mosaic.version = 11 : i64} {
  func.func @_fc_critic_kernel(%arg0: i32, %arg1: memref<2x1568xf32, #tpu.memory_space<vmem>>, %arg2: memref<1568x512xbf16, #tpu.memory_space<vmem>>, %arg3: memref<1x512xf32, #tpu.memory_space<vmem>>, %arg4: memref<512x1xf32, #tpu.memory_space<vmem>>, %arg5: memref<1x1xf32, #tpu.memory_space<vmem>>, %arg6: memref<2x512xf32, #tpu.memory_space<vmem>>, %arg7: memref<2x1xf32, #tpu.memory_space<vmem>>) attributes {dimension_semantics = [#tpu.dimension_semantics<parallel>], iteration_bounds = array<i64: 1>, scalar_prefetch = 0 : i64, scratch_operands = 0 : i64, tpu.core_type = #tpu.core_type<tc>, window_params = [{transform_indices = @transform_0, window_bounds = array<i64: 2, 1568>}, {pipeline_mode = #tpu.pipeline_mode<synchronous>, transform_indices = @transform_1, window_bounds = array<i64: 1568, 512>}, {pipeline_mode = #tpu.pipeline_mode<synchronous>, transform_indices = @transform_2, window_bounds = array<i64: 1, 512>}, {pipeline_mode = #tpu.pipeline_mode<synchronous>, transform_indices = @transform_3, window_bounds = array<i64: 512, 1>}, {pipeline_mode = #tpu.pipeline_mode<synchronous>, transform_indices = @transform_4, window_bounds = array<i64: 1, 1>}, {transform_indices = @transform_5, window_bounds = array<i64: 2, 512>}, {transform_indices = @transform_6, window_bounds = array<i64: 2, 1>}]} {
    %c0 = arith.constant 0 : index
    %c0_0 = arith.constant 0 : index
    %0 = vector.load %arg1[%c0, %c0_0] : memref<2x1568xf32, #tpu.memory_space<vmem>>, vector<2x1568xf32>
    %1 = arith.truncf %0 : vector<2x1568xf32> to vector<2x1568xbf16>
    %c0_1 = arith.constant 0 : index
    %c0_2 = arith.constant 0 : index
    %2 = vector.load %arg2[%c0_1, %c0_2] : memref<1568x512xbf16, #tpu.memory_space<vmem>>, vector<1568x512xbf16>
    %cst = arith.constant dense<0.000000e+00> : vector<2x512xf32>
    %3 = tpu.matmul %1, %2, %cst {dimension_numbers = #tpu.dot_dimension_numbers<[1], [0], [0], [1], [0, 0, 1, 1], [], []>} : vector<2x1568xbf16>, vector<1568x512xbf16>, vector<2x512xf32> -> vector<2x512xf32>
    %c0_3 = arith.constant 0 : index
    %c0_4 = arith.constant 0 : index
    %4 = vector.load %arg3[%c0_3, %c0_4] : memref<1x512xf32, #tpu.memory_space<vmem>>, vector<1x512xf32>
    %5 = vector.broadcast %4 : vector<1x512xf32> to vector<2x512xf32>
    %6 = arith.addf %3, %5 : vector<2x512xf32>
    %cst_5 = arith.constant 0.000000e+00 : f32
    %7 = vector.broadcast %cst_5 : f32 to vector<2x512xf32>
    %8 = arith.maximumf %6, %7 : vector<2x512xf32>
    %c0_6 = arith.constant 0 : index
    %c0_7 = arith.constant 0 : index
    %9 = vector.load %arg6[%c0_6, %c0_7] : memref<2x512xf32, #tpu.memory_space<vmem>>, vector<2x512xf32>
    tpu.vector_store %arg6[%c0_6, %c0_7], %8 {strides = array<i32>} : memref<2x512xf32, #tpu.memory_space<vmem>>, vector<2x512xf32>,
    %c0_8 = arith.constant 0 : index
    %c0_9 = arith.constant 0 : index
    %10 = vector.load %arg4[%c0_8, %c0_9] : memref<512x1xf32, #tpu.memory_space<vmem>>, vector<512x1xf32>
    %cst_10 = arith.constant dense<0.000000e+00> : vector<2x1xf32>
    %11 = tpu.matmul %8, %10, %cst_10 {dimension_numbers = #tpu.dot_dimension_numbers<[1], [0], [0], [1], [0, 0, 1, 1], [], []>} : vector<2x512xf32>, vector<512x1xf32>, vector<2x1xf32> -> vector<2x1xf32>
    %c0_11 = arith.constant 0 : index
    %c0_12 = arith.constant 0 : index
    %12 = vector.load %arg5[%c0_11, %c0_12] : memref<1x1xf32, #tpu.memory_space<vmem>>, vector<1x1xf32>
    %13 = vector.broadcast %12 : vector<1x1xf32> to vector<2x1xf32>
    %14 = arith.addf %11, %13 : vector<2x1xf32>
    %c0_13 = arith.constant 0 : index
    %c0_14 = arith.constant 0 : index
    %15 = vector.load %arg7[%c0_13, %c0_14] : memref<2x1xf32, #tpu.memory_space<vmem>>, vector<2x1xf32>
    tpu.vector_store %arg7[%c0_13, %c0_14], %14 {strides = array<i32>} : memref<2x1xf32, #tpu.memory_space<vmem>>, vector<2x1xf32>,
    return
  }
  func.func @transform_0(%arg0: i32) -> (i32, i32) {
    %c0_i32 = arith.constant 0 : i32
    %c0_i32_0 = arith.constant 0 : i32
    return %arg0, %c0_i32 : i32, i32
  }
  func.func @transform_1(%arg0: i32) -> (i32, i32) {
    %c0_i32 = arith.constant 0 : i32
    %c0_i32_0 = arith.constant 0 : i32
    %c0_i32_1 = arith.constant 0 : i32
    return %c0_i32, %c0_i32_0 : i32, i32
  }
  func.func @transform_2(%arg0: i32) -> (i32, i32) {
    %c0_i32 = arith.constant 0 : i32
    %c0_i32_0 = arith.constant 0 : i32
    %c0_i32_1 = arith.constant 0 : i32
    return %c0_i32, %c0_i32_0 : i32, i32
  }
  func.func @transform_3(%arg0: i32) -> (i32, i32) {
    %c0_i32 = arith.constant 0 : i32
    %c0_i32_0 = arith.constant 0 : i32
    %c0_i32_1 = arith.constant 0 : i32
    return %c0_i32, %c0_i32_0 : i32, i32
  }
  func.func @transform_4(%arg0: i32) -> (i32, i32) {
    %c0_i32 = arith.constant 0 : i32
    %c0_i32_0 = arith.constant 0 : i32
    %c0_i32_1 = arith.constant 0 : i32
    return %c0_i32, %c0_i32_0 : i32, i32
  }
  func.func @transform_5(%arg0: i32) -> (i32, i32) {
    %c0_i32 = arith.constant 0 : i32
    %c0_i32_0 = arith.constant 0 : i32
    return %arg0, %c0_i32 : i32, i32
  }
  func.func @transform_6(%arg0: i32) -> (i32, i32) {
    %c0_i32 = arith.constant 0 : i32
    %c0_i32_0 = arith.constant 0 : i32
    return %arg0, %c0_i32 : i32, i32
  }
}

</mosaic_0001>

<bundles_post_ra>
// kernel: cnn_base_forward.4
= control target key start
LH: loop header
LB: loop body
LE: loop exit
PB: predicated region body
PF: predicated region fallthrough
CT: control target
= control target key end

     0   :  { %s1833_s12 = smov 0   ;;  %s1835_s13 = smov 0   ;;  %s2486_s0 = inlined_call_operand.vmem [shape: f32[800,256], index: 0, kind: input, shape index: {}]   ;;  %s2487_s1 = inlined_call_operand.vmem [shape: bf16[256,32], index: 1, kind: input, shape index: {}]   ;;  %s2488_s2 = inlined_call_operand.vmem [shape: f32[1,32], index: 2, kind: input, shape index: {}]   ;;  %s2489_s3 = inlined_call_operand.vmem [shape: f32[800,32], index: 3, kind: output, shape index: {}]  }
   0x1   :  { %s1837_s14 = smov 0  }
   0x2 LB: > { %s1846_s15 = sadd.s32 4294967295, %s1778_s14   ;;  %s1848_s16 = sadd.s32 1, %s1778_s14   ;;  %s1778_s14 = sphi %s1837_s14, %s2498_s14   ;;  %s1774_s13 = sphi %s1835_s13, %s2497_s13   ;;  %s1770_s12 = sphi %s1833_s12, %s2496_s12  }
   0x3   : > { %s85_s17 = ssub.s32 %s1778_s14, %s1848_s16  ;;  %s88_s18 = sadd.s32 1, %s1774_s13 }
   0x4   : > { %p86_p0 = scmp.eq.s32.totalorder %s85_s17, 0  ;;  %p98_p1 = scmp.ne.s32.totalorder %s1774_s13, %s1770_s12 }
   0x5   : > { %p99_p2 = scmp.eq.s32.totalorder %s1846_s15, 1  ;;  %p1544_p3 = scmp.ge.s32.totalorder %s1778_s14, 1 }
   0x6   : > { %s1856_s19 = scalar_select %p86_p0, %s1774_s13, %s88_s18  }
   0x7   : > { %p1858_p4 = por %p99_p2, %p98_p1  ;;  %p149_p5 = scmp.lt.s32.totalorder %s1778_s14, 3 }
   0x9   : > { %p150_p6 = pnand %p1544_p3, %p149_p5 }
   0xa   : > { %v1708_v0 = vld [vmem:[%s2487_s1] sm:$0xff] (!%p150_p6)   ;;  %v1812_v1 = vmov (!%p150_p6), 0   ;;  %s1868_s23 = sshll.u32 (!%p150_p6), %s1846_s15, 6  ;;  %v1709_v2 = vld [vmem:[%s2487_s1 + $0x8] sm:$0xff] (!%p150_p6)   ;;  %v1710_v3 = vld [vmem:[%s2487_s1 + $0x10] sm:$0xff] (!%p150_p6)   ;;  %s175_s17 = sand.u32 (!%p150_p6), 1, %s1770_s12  }
   0xb   : > { %153 = sbr.rel (%p150_p6) target bundleno = 486 (0x1e6), region = 32  ;;  %656 = vmatprep.subr.bf16.mxu0 (!%p150_p6), %v1812_v1  ;;  %1587 = vmatprep.subr.bf16.mxu1 (!%p150_p6), %v1812_v1  ;;  %p184_p7 = scmp.lt.s32.totalorder (!%p150_p6), %s1868_s23, 99  ;;  %v1711_v4 = vld [vmem:[%s2487_s1 + $0x18] sm:$0xff] (!%p150_p6)   ;;  %v1712_v5 = vld [vmem:[%s2487_s1 + $0x20] sm:$0xff] (!%p150_p6)   ;;  %v1713_v12 = vld [vmem:[%s2487_s1 + $0x28] sm:$0xff] (!%p150_p6)   ;;  %vm1009_vm0 = vcmask (!%p150_p6), 261120  }
   0xc   : > { %657 = vmatpush1.bf16.msra.mxu0 (!%p150_p6), %v1708_v0  ;;  %1603 = vmatpush1.bf16.msra.mxu1 (!%p150_p6), %v1708_v0  ;;  %v1714_v17 = vld [vmem:[%s2487_s1 + $0x30] sm:$0xff] (!%p150_p6)   ;;  %v1715_v18 = vld [vmem:[%s2487_s1 + $0x38] sm:$0xff] (!%p150_p6)   ;;  %v1716_v19 = vld [vmem:[%s2487_s1 + $0x40] sm:$0xff] (!%p150_p6)   ;;  %s1545_s22 = sshll.u32 (!%p150_p6), %s175_s17, 9 }
   0xd   : > { %658 = vmatprep.subr.bf16.mxu0 (!%p150_p6), %v1812_v1  ;;  %1588 = vmatprep.subr.bf16.mxu1 (!%p150_p6), %v1812_v1  ;;  %v1717_v20 = vld [vmem:[%s2487_s1 + $0x48] sm:$0xff] (!%p150_p6)   ;;  %v1718_v21 = vld [vmem:[%s2487_s1 + $0x50] sm:$0xff] (!%p150_p6)   ;;  %v1719_v22 = vld [vmem:[%s2487_s1 + $0x58] sm:$0xff] (!%p150_p6)   ;;  %s2090_s12 = scalar_lea.vmem (!%p150_p6), [#allocation2], %s1545_s22  }
   0xe   : > { %v1720_v23 = vld [vmem:[%s2487_s1 + $0x60] sm:$0xff] (!%p150_p6)   ;;  %v1721_v24 = vld [vmem:[%s2487_s1 + $0x68] sm:$0xff] (!%p150_p6)   ;;  %v1722_v25 = vld [vmem:[%s2487_s1 + $0x70] sm:$0xff] (!%p150_p6)  }
   0xf   : > { %v1723_v34 = vld [vmem:[%s2487_s1 + $0x78] sm:$0xff] (!%p150_p6)  }
  0x10   : > { %659 = vmatpush1.bf16.msra.mxu0 (!%p150_p6), %v1709_v2  ;;  %1604 = vmatpush1.bf16.msra.mxu1 (!%p150_p6), %v1709_v2 }
  0x11   : > { %660 = vmatprep.subr.bf16.mxu0 (!%p150_p6), %v1812_v1  ;;  %1589 = vmatprep.subr.bf16.mxu1 (!%p150_p6), %v1812_v1 }
  0x12   : > { %s185_s28 = scalar_select %p184_p7, %s1868_s23, 99 }
  0x13   : > { %s1584_s24 = sshll.u32 (%p1858_p4), %s1846_s15, 9 }
  0x14   : > { %661 = vmatpush1.bf16.msra.mxu0 %v1710_v3  ;;  %1605 = vmatpush1.bf16.msra.mxu1 %v1710_v3  ;;  %s1583_s4 = sshll.u32 %s185_s28, 4  ;;  %s2287_s27 = scalar_lea.vmem (%p1858_p4), %s2489_s3, %s1584_s24  }
  0x15   : > { %662 = vmatprep.subr.bf16.mxu0 %v1812_v1  ;;  %1590 = vmatprep.subr.bf16.mxu1 %v1812_v1  ;;  %s1890_s7 = scalar_lea.vmem %s2486_s0, %s1583_s4 }
  0x16   : > { %v202_v6 = vld [vmem:[%s1890_s7 + $0x8] sm:$0xff]  ;;  %v204_v7 = vld [vmem:[%s1890_s7 + $0x18] sm:$0xff]  ;;  %v201_v26 = vld [vmem:[%s1890_s7] sm:$0xff] }
  0x17   : > { %v266_v8 = vld [vmem:[%s1890_s7 + $0x208] sm:$0xff]  ;;  %v330_v9 = vmul.f32 0.003921569, %v202_v6  ;;  %v332_v10 = vmul.f32 0.003921569, %v204_v7  ;;  %v268_v11 = vld [vmem:[%s1890_s7 + $0x218] sm:$0xff] }
  0x18   : > { %663 = vmatpush1.bf16.msra.mxu0 %v1711_v4  ;;  %1606 = vmatpush1.bf16.msra.mxu1 %v1711_v4  ;;  %v394_v13 = vmul.f32 0.003921569, %v266_v8  ;;  %v396_v14 = vmul.f32 0.003921569, %v268_v11  ;;  %v203_v27 = vld [vmem:[%s1890_s7 + $0x10] sm:$0xff]  ;;  %v265_v28 = vld [vmem:[%s1890_s7 + $0x200] sm:$0xff] }
  0x19   : > { %664 = vmatprep.subr.bf16.mxu0 %v1812_v1  ;;  %1591 = vmatprep.subr.bf16.mxu1 %v1812_v1  ;;  %v458_v15 = vpack.c.bf16 %v332_v10, %v330_v9  ;;  %v267_v29 = vld [vmem:[%s1890_s7 + $0x210] sm:$0xff]  ;;  %v206_v30 = vld [vmem:[%s1890_s7 + $0x28] sm:$0xff]  ;;  %v208_v31 = vld [vmem:[%s1890_s7 + $0x38] sm:$0xff]  ;;  %v329_v35 = vmul.f32 0.003921569, %v201_v26 }
  0x1a   : > { %v490_v16 = vpack.c.bf16 %v396_v14, %v394_v13  ;;  %v270_v32 = vld [vmem:[%s1890_s7 + $0x228] sm:$0xff]  ;;  %v272_v33 = vld [vmem:[%s1890_s7 + $0x238] sm:$0xff]  ;;  %v331_v36 = vmul.f32 0.003921569, %v203_v27  ;;  %v393_v37 = vmul.f32 0.003921569, %v265_v28 }
  0x1b   : > { %688 = vmatprep.mubr.bf16.mxu0 %v458_v15  ;;  %v395_v38 = vmul.f32 0.003921569, %v267_v29  ;;  %v334_v39 = vmul.f32 0.003921569, %v206_v30  ;;  %v336_v40 = vmul.f32 0.003921569, %v208_v31 }
  0x1c   : > { %665 = vmatpush1.bf16.msra.mxu0 %v1712_v5  ;;  %1607 = vmatpush1.bf16.msra.mxu1 %v1712_v5  ;;  %v398_v41 = vmul.f32 0.003921569, %v270_v32  ;;  %v400_v42 = vmul.f32 0.003921569, %v272_v33  ;;  %v457_v43 = vpack.c.bf16 %v331_v36, %v329_v35  ;;  %v205_v45 = vld [vmem:[%s1890_s7 + $0x20] sm:$0xff]  ;;  %v207_v46 = vld [vmem:[%s1890_s7 + $0x30] sm:$0xff] }
  0x1d   : > { %666 = vmatprep.subr.bf16.mxu0 %v1812_v1  ;;  %1592 = vmatprep.subr.bf16.mxu1 %v1812_v1  ;;  %v489_v44 = vpack.c.bf16 %v395_v38, %v393_v37  ;;  %v460_v47 = vpack.c.bf16 %v336_v40, %v334_v39  ;;  %v269_v49 = vld [vmem:[%s1890_s7 + $0x220] sm:$0xff]  ;;  %v271_v50 = vld [vmem:[%s1890_s7 + $0x230] sm:$0xff]  ;;  %v210_v51 = vld [vmem:[%s1890_s7 + $0x48] sm:$0xff]  ;;  %v333_v55 = vmul.f32 0.003921569, %v205_v45 }
  0x1e   : > { %816 = vmatprep.mubr.bf16.mxu1 %v490_v16  ;;  %v492_v48 = vpack.c.bf16 %v400_v42, %v398_v41  ;;  %v212_v52 = vld [vmem:[%s1890_s7 + $0x58] sm:$0xff]  ;;  %v274_v53 = vld [vmem:[%s1890_s7 + $0x248] sm:$0xff]  ;;  %v335_v56 = vmul.f32 0.003921569, %v207_v46  ;;  %v397_v57 = vmul.f32 0.003921569, %v269_v49 }
  0x1f   : > { %v276_v54 = vld [vmem:[%s1890_s7 + $0x258] sm:$0xff]  ;;  %v399_v58 = vmul.f32 0.003921569, %v271_v50  ;;  %v338_v59 = vmul.f32 0.003921569, %v210_v51  ;;  %v211_v2 = vld [vmem:[%s1890_s7 + $0x50] sm:$0xff] }
  0x20   : > { %667 = vmatpush1.bf16.msra.mxu0 %v1713_v12  ;;  %1608 = vmatpush1.bf16.msra.mxu1 %v1713_v12  ;;  %v340_v60 = vmul.f32 0.003921569, %v212_v52  ;;  %v402_v61 = vmul.f32 0.003921569, %v274_v53  ;;  %v404_v62 = vmul.f32 0.003921569, %v276_v54  ;;  %v459_v63 = vpack.c.bf16 %v335_v56, %v333_v55 }
  0x21   : > { %668 = vmatprep.subr.bf16.mxu0 %v1812_v1  ;;  %1593 = vmatprep.subr.bf16.mxu1 %v1812_v1  ;;  %v491_v0 = vpack.c.bf16 %v399_v58, %v397_v57  ;;  %v273_v5 = vld [vmem:[%s1890_s7 + $0x240] sm:$0xff]  ;;  %v275_v6 = vld [vmem:[%s1890_s7 + $0x250] sm:$0xff]  ;;  %v214_v7 = vld [vmem:[%s1890_s7 + $0x68] sm:$0xff]  ;;  %v339_v12 = vmul.f32 0.003921569, %v211_v2 }
  0x22   : > { %v462_v3 = vpack.c.bf16 %v340_v60, %v338_v59  ;;  %v494_v4 = vpack.c.bf16 %v404_v62, %v402_v61  ;;  %v216_v8 = vld [vmem:[%s1890_s7 + $0x78] sm:$0xff]  ;;  %v278_v9 = vld [vmem:[%s1890_s7 + $0x268] sm:$0xff]  ;;  %v401_v13 = vmul.f32 0.003921569, %v273_v5  ;;  %v403_v14 = vmul.f32 0.003921569, %v275_v6 }
  0x23   : > { %v280_v10 = vld [vmem:[%s1890_s7 + $0x278] sm:$0xff]  ;;  %v342_v15 = vmul.f32 0.003921569, %v214_v7  ;;  %v344_v16 = vmul.f32 0.003921569, %v216_v8  ;;  %v279_v26 = vld [vmem:[%s1890_s7 + $0x270] sm:$0xff] }
  0x24   : > { %669 = vmatpush1.bf16.msra.mxu0 %v1714_v17  ;;  %1609 = vmatpush1.bf16.msra.mxu1 %v1714_v17  ;;  %v406_v17 = vmul.f32 0.003921569, %v278_v9  ;;  %v218_v27 = vld [vmem:[%s1890_s7 + $0x88] sm:$0xff]  ;;  %v220_v28 = vld [vmem:[%s1890_s7 + $0x98] sm:$0xff]  ;;  %v217_v41 = vld [vmem:[%s1890_s7 + $0x80] sm:$0xff] }
  0x25   : > { %670 = vmatprep.subr.bf16.mxu0 %v1812_v1  ;;  %1594 = vmatprep.subr.bf16.mxu1 %v1812_v1  ;;  %v282_v29 = vld [vmem:[%s1890_s7 + $0x288] sm:$0xff]  ;;  %v284_v30 = vld [vmem:[%s1890_s7 + $0x298] sm:$0xff]  ;;  %v346_v35 = vmul.f32 0.003921569, %v218_v27  ;;  %v348_v36 = vmul.f32 0.003921569, %v220_v28 }
  0x26   : > { %v410_v37 = vmul.f32 0.003921569, %v282_v29  ;;  %v412_v38 = vmul.f32 0.003921569, %v284_v30  ;;  %v219_v42 = vld [vmem:[%s1890_s7 + $0x90] sm:$0xff]  ;;  %v281_v45 = vld [vmem:[%s1890_s7 + $0x280] sm:$0xff] }
  0x27   : > { %v283_v46 = vld [vmem:[%s1890_s7 + $0x290] sm:$0xff]  ;;  %v286_v49 = vld [vmem:[%s1890_s7 + $0x2a8] sm:$0xff]  ;;  %v288_v50 = vld [vmem:[%s1890_s7 + $0x2b8] sm:$0xff]  ;;  %v345_v51 = vmul.f32 0.003921569, %v217_v41 }
  0x28   : > { %671 = vmatpush1.bf16.msra.mxu0 %v1715_v18  ;;  %1610 = vmatpush1.bf16.msra.mxu1 %v1715_v18  ;;  %v408_v18 = vmul.f32 0.003921569, %v280_v10  ;;  %v347_v52 = vmul.f32 0.003921569, %v219_v42  ;;  %v409_v53 = vmul.f32 0.003921569, %v281_v45 }
  0x29   : > { %672 = vmatprep.subr.bf16.mxu0 %v1812_v1  ;;  %1595 = vmatprep.subr.bf16.mxu1 %v1812_v1  ;;  %v411_v54 = vmul.f32 0.003921569, %v283_v46  ;;  %v414_v57 = vmul.f32 0.003921569, %v286_v49  ;;  %v416_v58 = vmul.f32 0.003921569, %v288_v50 }
  0x2a   : > { %v465_v59 = vpack.c.bf16 %v347_v52, %v345_v51  ;;  %v221_v61 = vld [vmem:[%s1890_s7 + $0xa0] sm:$0xff]  ;;  %v223_v62 = vld [vmem:[%s1890_s7 + $0xb0] sm:$0xff]  ;;  %v290_v5 = vld [vmem:[%s1890_s7 + $0x2c8] sm:$0xff] }
  0x2b   : > { %v497_v60 = vpack.c.bf16 %v411_v54, %v409_v53  ;;  %v287_v2 = vld [vmem:[%s1890_s7 + $0x2b0] sm:$0xff]  ;;  %v292_v6 = vld [vmem:[%s1890_s7 + $0x2d8] sm:$0xff]  ;;  %v349_v7 = vmul.f32 0.003921569, %v221_v61  ;;  %v351_v8 = vmul.f32 0.003921569, %v223_v62 }
  0x2c   : > { %673 = vmatpush1.bf16.msra.mxu0 %v1716_v19  ;;  %1611 = vmatpush1.bf16.msra.mxu1 %v1716_v19  ;;  %v415_v10 = vmul.f32 0.003921569, %v287_v2  ;;  %v293_v41 = vld [vmem:[%s1890_s7 + $0x2e0] sm:$0xff]  ;;  %v295_v42 = vld [vmem:[%s1890_s7 + $0x2f0] sm:$0xff]  ;;  %v298_v45 = vld [vmem:[%s1890_s7 + $0x308] sm:$0xff] }
  0x2d   : > { %674 = vmatprep.subr.bf16.mxu0 %v1812_v1  ;;  %1596 = vmatprep.subr.bf16.mxu1 %v1812_v1  ;;  %v300_v46 = vld [vmem:[%s1890_s7 + $0x318] sm:$0xff]  ;;  %v421_v49 = vmul.f32 0.003921569, %v293_v41  ;;  %v423_v50 = vmul.f32 0.003921569, %v295_v42  ;;  %v297_v61 = vld [vmem:[%s1890_s7 + $0x300] sm:$0xff] }
  0x2e   : > { %v426_v53 = vmul.f32 0.003921569, %v298_v45  ;;  %v428_v54 = vmul.f32 0.003921569, %v300_v46  ;;  %v299_v62 = vld [vmem:[%s1890_s7 + $0x310] sm:$0xff]  ;;  %v304_v2 = vld [vmem:[%s1890_s7 + $0x338] sm:$0xff] }
  0x2f   : > { %v310_v41 = vld [vmem:[%s1890_s7 + $0x368] sm:$0xff]  ;;  %v312_v42 = vld [vmem:[%s1890_s7 + $0x378] sm:$0xff] }
  0x30   : > { %675 = vmatpush1.bf16.msra.mxu0 %v1717_v20  ;;  %1612 = vmatpush1.bf16.msra.mxu1 %v1717_v20  ;;  %v493_v20 = vpack.c.bf16 %v403_v14, %v401_v13  ;;  %v418_v13 = vmul.f32 0.003921569, %v290_v5  ;;  %v420_v14 = vmul.f32 0.003921569, %v292_v6  ;;  %v425_v5 = vmul.f32 0.003921569, %v297_v61 }
  0x31   : > { %676 = vmatprep.subr.bf16.mxu0 %v1812_v1  ;;  %1597 = vmatprep.subr.bf16.mxu1 %v1812_v1  ;;  %v427_v6 = vmul.f32 0.003921569, %v299_v62  ;;  %v314_v61 = vld [vmem:[%s1890_s7 + $0x388] sm:$0xff]  ;;  %v316_v62 = vld [vmem:[%s1890_s7 + $0x398] sm:$0xff] }
  0x34   : > { %677 = vmatpush1.bf16.msra.mxu0 %v1718_v21  ;;  %1613 = vmatpush1.bf16.msra.mxu1 %v1718_v21  ;;  %v213_v21 = vld [vmem:[%s1890_s7 + $0x60] sm:$0xff] }
  0x35   : > { %678 = vmatprep.subr.bf16.mxu0 %v1812_v1  ;;  %1598 = vmatprep.subr.bf16.mxu1 %v1812_v1  ;;  %v341_v31 = vmul.f32 0.003921569, %v213_v21  ;;  %v289_v21 = vld [vmem:[%s1890_s7 + $0x2c0] sm:$0xff] }
  0x36   : > { %v417_v29 = vmul.f32 0.003921569, %v289_v21  ;;  %v306_v21 = vld [vmem:[%s1890_s7 + $0x348] sm:$0xff] }
  0x38   : > { %679 = vmatpush1.bf16.msra.mxu0 %v1719_v22  ;;  %1614 = vmatpush1.bf16.msra.mxu1 %v1719_v22  ;;  %v215_v22 = vld [vmem:[%s1890_s7 + $0x70] sm:$0xff] }
  0x39   : > { %680 = vmatprep.subr.bf16.mxu0 %v1812_v1  ;;  %1599 = vmatprep.subr.bf16.mxu1 %v1812_v1  ;;  %v343_v32 = vmul.f32 0.003921569, %v215_v22  ;;  %v291_v22 = vld [vmem:[%s1890_s7 + $0x2d0] sm:$0xff] }
  0x3a   : > { %v419_v30 = vmul.f32 0.003921569, %v291_v22  ;;  %v308_v22 = vld [vmem:[%s1890_s7 + $0x358] sm:$0xff] }
  0x3b   : > { %v463_v39 = vpack.c.bf16 %v343_v32, %v341_v31 }
  0x3c   : > { %681 = vmatpush1.bf16.msra.mxu0 %v1720_v23  ;;  %1615 = vmatpush1.bf16.msra.mxu1 %v1720_v23  ;;  %v464_v23 = vpack.c.bf16 %v344_v16, %v342_v15  ;;  %v467_v15 = vpack.c.bf16 %v351_v8, %v349_v7 }
  0x3d   : > { %682 = vmatprep.subr.bf16.mxu0 %v1812_v1  ;;  %1600 = vmatprep.subr.bf16.mxu1 %v1812_v1 }
  0x40   : > { %683 = vmatpush1.bf16.msra.mxu0 %v1721_v24  ;;  %1616 = vmatpush1.bf16.msra.mxu1 %v1721_v24  ;;  %v496_v24 = vpack.c.bf16 %v408_v18, %v406_v17  ;;  %v225_v17 = vld [vmem:[%s1890_s7 + $0xc0] sm:$0xff]  ;;  %v227_v18 = vld [vmem:[%s1890_s7 + $0xd0] sm:$0xff] }
  0x41   : > { %684 = vmatprep.subr.bf16.mxu0 %v1812_v1  ;;  %1601 = vmatprep.subr.bf16.mxu1 %v1812_v1  ;;  %v353_v27 = vmul.f32 0.003921569, %v225_v17  ;;  %v355_v28 = vmul.f32 0.003921569, %v227_v18  ;;  %v301_v17 = vld [vmem:[%s1890_s7 + $0x320] sm:$0xff]  ;;  %v303_v18 = vld [vmem:[%s1890_s7 + $0x330] sm:$0xff] }
  0x44   : > { %685 = vmatpush1.bf16.msra.mxu0 %v1722_v25  ;;  %1617 = vmatpush1.bf16.msra.mxu1 %v1722_v25  ;;  %v277_v25 = vld [vmem:[%s1890_s7 + $0x260] sm:$0xff] }
  0x45   : > { %686 = vmatprep.subr.bf16.mxu0 %v1812_v1  ;;  %1602 = vmatprep.subr.bf16.mxu1 %v1812_v1  ;;  %v209_v1 = vld [vmem:[%s1890_s7 + $0x40] sm:$0xff]  ;;  %v405_v33 = vmul.f32 0.003921569, %v277_v25  ;;  %v294_v25 = vld [vmem:[%s1890_s7 + $0x2e8] sm:$0xff] }
  0x46   : > { %v337_v11 = vmul.f32 0.003921569, %v209_v1  ;;  %v285_v1 = vld [vmem:[%s1890_s7 + $0x2a0] sm:$0xff] }
  0x47   : > { %v413_v9 = vmul.f32 0.003921569, %v285_v1  ;;  %v302_v1 = vld [vmem:[%s1890_s7 + $0x328] sm:$0xff] }
  0x48   : > { %687 = vmatpush1.bf16.msra.mxu0 %v1723_v34  ;;  %1618 = vmatpush1.bf16.msra.mxu1 %v1723_v34  ;;  %v461_v19 = vpack.c.bf16 %v339_v12, %v337_v11  ;;  %v407_v34 = vmul.f32 0.003921569, %v279_v26  ;;  %v296_v26 = vld [vmem:[%s1890_s7 + $0x2f8] sm:$0xff] }
  0x49   : > { %v499_v16 = vpack.c.bf16 %v415_v10, %v413_v9  ;;  %v430_v9 = vmul.f32 0.003921569, %v302_v1  ;;  %v432_v10 = vmul.f32 0.003921569, %v304_v2 }
  0x4a   : > { %v495_v40 = vpack.c.bf16 %v407_v34, %v405_v33  ;;  %v422_v33 = vmul.f32 0.003921569, %v294_v25  ;;  %v424_v34 = vmul.f32 0.003921569, %v296_v26  ;;  %v429_v25 = vmul.f32 0.003921569, %v301_v17 }
  0x4b   : > { %689 = vmatmul.mubr.bf16.vlgmr.msra.gmra.mrb[0].mxu0 %v457_v43  ;;  %817 = vmatmul.mubr.bf16.vlgmr.msra.gmra.mrb[0].mxu1 %v489_v44  ;;  %v466_v43 = vpack.c.bf16 %v348_v36, %v346_v35  ;;  %v498_v44 = vpack.c.bf16 %v412_v38, %v410_v37  ;;  %v469_v35 = vpack.c.bf16 %v355_v28, %v353_v27  ;;  %v229_v37 = vld [vmem:[%s1890_s7 + $0xe0] sm:$0xff]  ;;  %v231_v38 = vld [vmem:[%s1890_s7 + $0xf0] sm:$0xff]  ;;  %v431_v26 = vmul.f32 0.003921569, %v303_v18  ;;  %v318_v17 = vld [vmem:[%s1890_s7 + $0x3a8] sm:$0xff] }
  0x4c   : > { %696 = vmatprep.mubr.bf16.mxu0 %v460_v47  ;;  %824 = vmatprep.mubr.bf16.mxu1 %v492_v48  ;;  %v222_v47 = vld [vmem:[%s1890_s7 + $0xa8] sm:$0xff]  ;;  %v224_v48 = vld [vmem:[%s1890_s7 + $0xb8] sm:$0xff]  ;;  %v501_v36 = vpack.c.bf16 %v419_v30, %v417_v29  ;;  %v434_v29 = vmul.f32 0.003921569, %v306_v21  ;;  %v436_v30 = vmul.f32 0.003921569, %v308_v22 }
  0x4d   : > { %v350_v55 = vmul.f32 0.003921569, %v222_v47  ;;  %v352_v56 = vmul.f32 0.003921569, %v224_v48  ;;  %v357_v47 = vmul.f32 0.003921569, %v229_v37 }
  0x4e   : > { %v359_v48 = vmul.f32 0.003921569, %v231_v38  ;;  %v305_v37 = vld [vmem:[%s1890_s7 + $0x340] sm:$0xff]  ;;  %v307_v38 = vld [vmem:[%s1890_s7 + $0x350] sm:$0xff]  ;;  %v320_v18 = vld [vmem:[%s1890_s7 + $0x3b8] sm:$0xff] }
  0x4f   : > { %v433_v45 = vmul.f32 0.003921569, %v305_v37  ;;  %v435_v46 = vmul.f32 0.003921569, %v307_v38  ;;  %v322_v37 = vld [vmem:[%s1890_s7 + $0x3c8] sm:$0xff]  ;;  %v324_v38 = vld [vmem:[%s1890_s7 + $0x3d8] sm:$0xff] }
  0x53   : > { %697 = vmatmul.mubr.bf16.gmra.mrb[4].mxu0 %v459_v63  ;;  %825 = vmatmul.mubr.bf16.gmra.mrb[4].mxu1 %v491_v0  ;;  %v468_v63 = vpack.c.bf16 %v352_v56, %v350_v55  ;;  %v500_v0 = vpack.c.bf16 %v416_v58, %v414_v57  ;;  %v471_v55 = vpack.c.bf16 %v359_v48, %v357_v47  ;;  %v233_v57 = vld [vmem:[%s1890_s7 + $0x100] sm:$0xff]  ;;  %v235_v58 = vld [vmem:[%s1890_s7 + $0x110] sm:$0xff] }
  0x54   : > { %704 = vmatprep.mubr.bf16.mxu0 %v462_v3  ;;  %832 = vmatprep.mubr.bf16.mxu1 %v494_v4  ;;  %v226_v3 = vld [vmem:[%s1890_s7 + $0xc8] sm:$0xff]  ;;  %v228_v4 = vld [vmem:[%s1890_s7 + $0xd8] sm:$0xff]  ;;  %v503_v56 = vpack.c.bf16 %v423_v50, %v421_v49  ;;  %v438_v49 = vmul.f32 0.003921569, %v310_v41  ;;  %v440_v50 = vmul.f32 0.003921569, %v312_v42 }
  0x55   : > { %v354_v11 = vmul.f32 0.003921569, %v226_v3  ;;  %v356_v12 = vmul.f32 0.003921569, %v228_v4  ;;  %v361_v3 = vmul.f32 0.003921569, %v233_v57 }
  0x56   : > { %v363_v4 = vmul.f32 0.003921569, %v235_v58  ;;  %v309_v57 = vld [vmem:[%s1890_s7 + $0x360] sm:$0xff]  ;;  %v311_v58 = vld [vmem:[%s1890_s7 + $0x370] sm:$0xff] }
  0x57   : > { %v437_v1 = vmul.f32 0.003921569, %v309_v57  ;;  %v439_v2 = vmul.f32 0.003921569, %v311_v58  ;;  %v326_v57 = vld [vmem:[%s1890_s7 + $0x3e8] sm:$0xff]  ;;  %v328_v58 = vld [vmem:[%s1890_s7 + $0x3f8] sm:$0xff] }
  0x5b   : > { %705 = vmatmul.mubr.bf16.gmra.mrb[8].mxu0 %v461_v19  ;;  %833 = vmatmul.mubr.bf16.gmra.mrb[8].mxu1 %v493_v20  ;;  %v470_v19 = vpack.c.bf16 %v356_v12, %v354_v11  ;;  %v502_v20 = vpack.c.bf16 %v420_v14, %v418_v13  ;;  %v473_v11 = vpack.c.bf16 %v363_v4, %v361_v3  ;;  %v237_v13 = vld [vmem:[%s1890_s7 + $0x120] sm:$0xff]  ;;  %v239_v14 = vld [vmem:[%s1890_s7 + $0x130] sm:$0xff] }
  0x5c   : > { %712 = vmatprep.mubr.bf16.mxu0 %v464_v23  ;;  %840 = vmatprep.mubr.bf16.mxu1 %v496_v24  ;;  %v230_v23 = vld [vmem:[%s1890_s7 + $0xe8] sm:$0xff]  ;;  %v232_v24 = vld [vmem:[%s1890_s7 + $0xf8] sm:$0xff]  ;;  %v505_v12 = vpack.c.bf16 %v427_v6, %v425_v5  ;;  %v442_v5 = vmul.f32 0.003921569, %v314_v61  ;;  %v444_v6 = vmul.f32 0.003921569, %v316_v62 }
  0x5d   : > { %v358_v31 = vmul.f32 0.003921569, %v230_v23  ;;  %v360_v32 = vmul.f32 0.003921569, %v232_v24  ;;  %v365_v23 = vmul.f32 0.003921569, %v237_v13 }
  0x5e   : > { %v367_v24 = vmul.f32 0.003921569, %v239_v14  ;;  %v313_v13 = vld [vmem:[%s1890_s7 + $0x380] sm:$0xff]  ;;  %v315_v14 = vld [vmem:[%s1890_s7 + $0x390] sm:$0xff] }
  0x5f   : > { %v441_v21 = vmul.f32 0.003921569, %v313_v13  ;;  %v443_v22 = vmul.f32 0.003921569, %v315_v14 }
  0x63   : > { %713 = vmatmul.mubr.bf16.gmra.mrb[12].mxu0 %v463_v39  ;;  %841 = vmatmul.mubr.bf16.gmra.mrb[12].mxu1 %v495_v40  ;;  %v472_v39 = vpack.c.bf16 %v360_v32, %v358_v31  ;;  %v504_v40 = vpack.c.bf16 %v424_v34, %v422_v33  ;;  %v475_v31 = vpack.c.bf16 %v367_v24, %v365_v23  ;;  %v241_v33 = vld [vmem:[%s1890_s7 + $0x140] sm:$0xff]  ;;  %v243_v34 = vld [vmem:[%s1890_s7 + $0x150] sm:$0xff] }
  0x64   : > { %720 = vmatprep.mubr.bf16.mxu0 %v466_v43  ;;  %848 = vmatprep.mubr.bf16.mxu1 %v498_v44  ;;  %v234_v43 = vld [vmem:[%s1890_s7 + $0x108] sm:$0xff]  ;;  %v236_v44 = vld [vmem:[%s1890_s7 + $0x118] sm:$0xff]  ;;  %v507_v32 = vpack.c.bf16 %v431_v26, %v429_v25  ;;  %v446_v25 = vmul.f32 0.003921569, %v318_v17  ;;  %v448_v26 = vmul.f32 0.003921569, %v320_v18 }
  0x65   : > { %v362_v51 = vmul.f32 0.003921569, %v234_v43  ;;  %v364_v52 = vmul.f32 0.003921569, %v236_v44  ;;  %v369_v43 = vmul.f32 0.003921569, %v241_v33 }
  0x66   : > { %v371_v44 = vmul.f32 0.003921569, %v243_v34  ;;  %v317_v33 = vld [vmem:[%s1890_s7 + $0x3a0] sm:$0xff]  ;;  %v319_v34 = vld [vmem:[%s1890_s7 + $0x3b0] sm:$0xff] }
  0x67   : > { %v445_v41 = vmul.f32 0.003921569, %v317_v33  ;;  %v447_v42 = vmul.f32 0.003921569, %v319_v34  ;;  %v2084_v17 = vld [vmem:[%s2488_s2] ss:$0 sm:$0xff] }
  0x6b   : > { %721 = vmatmul.mubr.bf16.gmra.mrb[16].mxu0 %v465_v59  ;;  %849 = vmatmul.mubr.bf16.gmra.mrb[16].mxu1 %v497_v60  ;;  %v474_v59 = vpack.c.bf16 %v364_v52, %v362_v51  ;;  %v506_v60 = vpack.c.bf16 %v428_v54, %v426_v53  ;;  %v477_v51 = vpack.c.bf16 %v371_v44, %v369_v43  ;;  %v245_v53 = vld [vmem:[%s1890_s7 + $0x160] sm:$0xff]  ;;  %v247_v54 = vld [vmem:[%s1890_s7 + $0x170] sm:$0xff] }
  0x6c   : > { %728 = vmatprep.mubr.bf16.mxu0 %v468_v63  ;;  %856 = vmatprep.mubr.bf16.mxu1 %v500_v0  ;;  %v238_v63 = vld [vmem:[%s1890_s7 + $0x128] sm:$0xff]  ;;  %v240_v0 = vld [vmem:[%s1890_s7 + $0x138] sm:$0xff]  ;;  %v509_v52 = vpack.c.bf16 %v435_v46, %v433_v45  ;;  %v450_v45 = vmul.f32 0.003921569, %v322_v37  ;;  %v452_v46 = vmul.f32 0.003921569, %v324_v38 }
  0x6d   : > { %v366_v7 = vmul.f32 0.003921569, %v238_v63  ;;  %v368_v8 = vmul.f32 0.003921569, %v240_v0  ;;  %v373_v63 = vmul.f32 0.003921569, %v245_v53 }
  0x6e   : > { %v375_v0 = vmul.f32 0.003921569, %v247_v54  ;;  %v321_v53 = vld [vmem:[%s1890_s7 + $0x3c0] sm:$0xff]  ;;  %v323_v54 = vld [vmem:[%s1890_s7 + $0x3d0] sm:$0xff] }
  0x6f   : > { %v449_v61 = vmul.f32 0.003921569, %v321_v53  ;;  %v451_v62 = vmul.f32 0.003921569, %v323_v54 }
  0x73   : > { %729 = vmatmul.mubr.bf16.gmra.mrb[20].mxu0 %v467_v15  ;;  %857 = vmatmul.mubr.bf16.gmra.mrb[20].mxu1 %v499_v16  ;;  %v476_v15 = vpack.c.bf16 %v368_v8, %v366_v7  ;;  %v508_v16 = vpack.c.bf16 %v432_v10, %v430_v9  ;;  %v479_v7 = vpack.c.bf16 %v375_v0, %v373_v63  ;;  %v249_v9 = vld [vmem:[%s1890_s7 + $0x180] sm:$0xff]  ;;  %v251_v10 = vld [vmem:[%s1890_s7 + $0x190] sm:$0xff] }
  0x74   : > { %736 = vmatprep.mubr.bf16.mxu0 %v470_v19  ;;  %864 = vmatprep.mubr.bf16.mxu1 %v502_v20  ;;  %v242_v19 = vld [vmem:[%s1890_s7 + $0x148] sm:$0xff]  ;;  %v244_v20 = vld [vmem:[%s1890_s7 + $0x158] sm:$0xff]  ;;  %v511_v8 = vpack.c.bf16 %v439_v2, %v437_v1  ;;  %v454_v1 = vmul.f32 0.003921569, %v326_v57  ;;  %v456_v2 = vmul.f32 0.003921569, %v328_v58 }
  0x75   : > { %v370_v27 = vmul.f32 0.003921569, %v242_v19  ;;  %v372_v28 = vmul.f32 0.003921569, %v244_v20  ;;  %v377_v19 = vmul.f32 0.003921569, %v249_v9 }
  0x76   : > { %v379_v20 = vmul.f32 0.003921569, %v251_v10  ;;  %v325_v9 = vld [vmem:[%s1890_s7 + $0x3e0] sm:$0xff]  ;;  %v327_v10 = vld [vmem:[%s1890_s7 + $0x3f0] sm:$0xff] }
  0x77   : > { %v453_v13 = vmul.f32 0.003921569, %v325_v9  ;;  %v455_v14 = vmul.f32 0.003921569, %v327_v10 }
  0x7b   : > { %737 = vmatmul.mubr.bf16.gmra.mrb[24].mxu0 %v469_v35  ;;  %865 = vmatmul.mubr.bf16.gmra.mrb[24].mxu1 %v501_v36  ;;  %v478_v35 = vpack.c.bf16 %v372_v28, %v370_v27  ;;  %v510_v36 = vpack.c.bf16 %v436_v30, %v434_v29  ;;  %v481_v27 = vpack.c.bf16 %v379_v20, %v377_v19  ;;  %v253_v29 = vld [vmem:[%s1890_s7 + $0x1a0] sm:$0xff]  ;;  %v255_v30 = vld [vmem:[%s1890_s7 + $0x1b0] sm:$0xff] }
  0x7c   : > { %744 = vmatprep.mubr.bf16.mxu0 %v472_v39  ;;  %872 = vmatprep.mubr.bf16.mxu1 %v504_v40  ;;  %v246_v39 = vld [vmem:[%s1890_s7 + $0x168] sm:$0xff]  ;;  %v248_v40 = vld [vmem:[%s1890_s7 + $0x178] sm:$0xff]  ;;  %v513_v28 = vpack.c.bf16 %v443_v22, %v441_v21 }
  0x7d   : > { %v374_v47 = vmul.f32 0.003921569, %v246_v39  ;;  %v376_v48 = vmul.f32 0.003921569, %v248_v40  ;;  %v381_v39 = vmul.f32 0.003921569, %v253_v29 }
  0x7e   : > { %v383_v40 = vmul.f32 0.003921569, %v255_v30 }
  0x83   : > { %745 = vmatmul.mubr.bf16.gmra.mrb[28].mxu0 %v471_v55  ;;  %873 = vmatmul.mubr.bf16.gmra.mrb[28].mxu1 %v503_v56  ;;  %v480_v55 = vpack.c.bf16 %v376_v48, %v374_v47  ;;  %v512_v56 = vpack.c.bf16 %v440_v50, %v438_v49  ;;  %v483_v47 = vpack.c.bf16 %v383_v40, %v381_v39  ;;  %v257_v49 = vld [vmem:[%s1890_s7 + $0x1c0] sm:$0xff]  ;;  %v259_v50 = vld [vmem:[%s1890_s7 + $0x1d0] sm:$0xff] }
  0x84   : > { %752 = vmatprep.mubr.bf16.mxu0 %v474_v59  ;;  %880 = vmatprep.mubr.bf16.mxu1 %v506_v60  ;;  %v250_v59 = vld [vmem:[%s1890_s7 + $0x188] sm:$0xff]  ;;  %v252_v60 = vld [vmem:[%s1890_s7 + $0x198] sm:$0xff]  ;;  %v515_v48 = vpack.c.bf16 %v447_v42, %v445_v41 }
  0x85   : > { %v378_v3 = vmul.f32 0.003921569, %v250_v59  ;;  %v380_v4 = vmul.f32 0.003921569, %v252_v60  ;;  %v385_v59 = vmul.f32 0.003921569, %v257_v49 }
  0x86   : > { %v387_v60 = vmul.f32 0.003921569, %v259_v50 }
  0x8b   : > { %753 = vmatmul.mubr.bf16.gmra.mrb[32].mxu0 %v473_v11  ;;  %881 = vmatmul.mubr.bf16.gmra.mrb[32].mxu1 %v505_v12  ;;  %v482_v11 = vpack.c.bf16 %v380_v4, %v378_v3  ;;  %v514_v12 = vpack.c.bf16 %v444_v6, %v442_v5  ;;  %v485_v3 = vpack.c.bf16 %v387_v60, %v385_v59  ;;  %v261_v5 = vld [vmem:[%s1890_s7 + $0x1e0] sm:$0xff] }
  0x8c   : > { %760 = vmatprep.mubr.bf16.mxu0 %v476_v15  ;;  %888 = vmatprep.mubr.bf16.mxu1 %v508_v16  ;;  %v254_v15 = vld [vmem:[%s1890_s7 + $0x1a8] sm:$0xff]  ;;  %v256_v16 = vld [vmem:[%s1890_s7 + $0x1b8] sm:$0xff]  ;;  %v517_v4 = vpack.c.bf16 %v451_v62, %v449_v61 }
  0x8d   : > { %v382_v23 = vmul.f32 0.003921569, %v254_v15  ;;  %v384_v24 = vmul.f32 0.003921569, %v256_v16  ;;  %v519_v16 = vpack.c.bf16 %v455_v14, %v453_v13 }
  0x93   : > { %761 = vmatmul.mubr.bf16.gmra.mrb[36].mxu0 %v475_v31  ;;  %889 = vmatmul.mubr.bf16.gmra.mrb[36].mxu1 %v507_v32  ;;  %v484_v31 = vpack.c.bf16 %v384_v24, %v382_v23  ;;  %v516_v32 = vpack.c.bf16 %v448_v26, %v446_v25 }
  0x94   : > { %768 = vmatprep.mubr.bf16.mxu0 %v478_v35  ;;  %896 = vmatprep.mubr.bf16.mxu1 %v510_v36  ;;  %v258_v35 = vld [vmem:[%s1890_s7 + $0x1c8] sm:$0xff]  ;;  %v260_v36 = vld [vmem:[%s1890_s7 + $0x1d8] sm:$0xff] }
  0x95   : > { %v386_v43 = vmul.f32 0.003921569, %v258_v35  ;;  %v388_v44 = vmul.f32 0.003921569, %v260_v36 }
  0x9b   : > { %769 = vmatmul.mubr.bf16.gmra.mrb[40].mxu0 %v477_v51  ;;  %897 = vmatmul.mubr.bf16.gmra.mrb[40].mxu1 %v509_v52  ;;  %v486_v51 = vpack.c.bf16 %v388_v44, %v386_v43  ;;  %v518_v52 = vpack.c.bf16 %v452_v46, %v450_v45 }
  0x9c   : > { %776 = vmatprep.mubr.bf16.mxu0 %v480_v55  ;;  %904 = vmatprep.mubr.bf16.mxu1 %v512_v56  ;;  %v262_v55 = vld [vmem:[%s1890_s7 + $0x1e8] sm:$0xff]  ;;  %v264_v56 = vld [vmem:[%s1890_s7 + $0x1f8] sm:$0xff] }
  0x9d   : > { %v390_v63 = vmul.f32 0.003921569, %v262_v55  ;;  %v392_v0 = vmul.f32 0.003921569, %v264_v56 }
  0x9f   : > { %v488_v6 = vpack.c.bf16 %v392_v0, %v390_v63 }
  0xa3   : > { %777 = vmatmul.mubr.bf16.gmra.mrb[44].mxu0 %v479_v7  ;;  %905 = vmatmul.mubr.bf16.gmra.mrb[44].mxu1 %v511_v8  ;;  %v520_v7 = vpack.c.bf16 %v456_v2, %v454_v1  ;;  %v263_v8 = vld [vmem:[%s1890_s7 + $0x1f0] sm:$0xff]  ;;  %s1082_s7 = ssub.s32 (%p1858_p4), 100, %s1868_s23 }
  0xa4   : > { %784 = vmatprep.mubr.bf16.mxu0 %v482_v11  ;;  %912 = vmatprep.mubr.bf16.mxu1 %v514_v12  ;;  %v389_v11 = vmul.f32 0.003921569, %v261_v5  ;;  %v391_v12 = vmul.f32 0.003921569, %v263_v8  ;;  %p1083_p8 = scmp.lt.s32.totalorder (%p1858_p4), %s1082_s7, 64 }
  0xa6   : > { %v487_v15 = vpack.c.bf16 %v391_v12, %v389_v11 }
  0xab   : > { %785 = vmatmul.mubr.bf16.gmra.mrb[48].mxu0 %v481_v27  ;;  %913 = vmatmul.mubr.bf16.gmra.mrb[48].mxu1 %v513_v28 }
  0xac   : > { %792 = vmatprep.mubr.bf16.mxu0 %v484_v31  ;;  %920 = vmatprep.mubr.bf16.mxu1 %v516_v32 }
  0xb3   : > { %793 = vmatmul.mubr.bf16.gmra.mrb[52].mxu0 %v483_v47  ;;  %921 = vmatmul.mubr.bf16.gmra.mrb[52].mxu1 %v515_v48 }
  0xb4   : > { %800 = vmatprep.mubr.bf16.mxu0 %v486_v51  ;;  %928 = vmatprep.mubr.bf16.mxu1 %v518_v52 }
  0xbb   : > { %801 = vmatmul.mubr.bf16.gmra.mrb[56].mxu0 %v485_v3  ;;  %929 = vmatmul.mubr.bf16.gmra.mrb[56].mxu1 %v517_v4 }
  0xbc   : > { %808 = vmatprep.mubr.bf16.mxu0 %v488_v6  ;;  %936 = vmatprep.mubr.bf16.mxu1 %v520_v7 }
  0xc3   : > { %809 = vmatmul.mubr.bf16.gmra.mrb[60].mxu0 %v487_v15  ;;  %937 = vmatmul.mubr.bf16.gmra.mrb[60].mxu1 %v519_v16 }
 0x11e   : > { %v690_v18 = vpop.f32.mrb[0].mxu0  ;;  %v818_v19 = vpop.f32.mrb[0].mxu1 }
 0x11f   : > { %v691_v20 = vadd.f32 %v2084_v17, %v690_v18  ;;  %v819_v21 = vadd.f32 %v2084_v17, %v818_v19  ;;  %v692_v22 = vpop.f32.mrb[1].mxu0  ;;  %v820_v23 = vpop.f32.mrb[1].mxu1 }
 0x120   : > { %v693_v24 = vpop.f32.mrb[2].mxu0  ;;  %v821_v25 = vpop.f32.mrb[2].mxu1 }
 0x121   : > { %v945_v26 = vmax.f32 %v691_v20, 0.0  ;;  %v977_v27 = vmax.f32 %v819_v21, 0.0  ;;  %v694_v28 = vadd.f32 %v2084_v17, %v693_v24  ;;  %v822_v29 = vadd.f32 %v2084_v17, %v821_v25  ;;  %v695_v30 = vpop.f32.mrb[3].mxu0  ;;  %v823_v31 = vpop.f32.mrb[3].mxu1 }
 0x123   : > { %1010 = vst.msk [vmem:[%s2090_s12] sm:$0xff] %vm1009_vm0, %v945_v26  ;;  %1042 = vst.msk [vmem:[%s2090_s12 + $0x100] sm:$0xff] %vm1009_vm0, %v977_v27  ;;  %v946_v32 = vmax.f32 %v694_v28, 0.0  ;;  %v978_v33 = vmax.f32 %v822_v29, 0.0 }
 0x125   : > { %1011 = vst.msk [vmem:[%s2090_s12 + $0x8] sm:$0xff] %vm1009_vm0, %v946_v32  ;;  %1043 = vst.msk [vmem:[%s2090_s12 + $0x108] sm:$0xff] %vm1009_vm0, %v978_v33 }
 0x126   : > { %v698_v34 = vpop.f32.mrb[4].mxu0  ;;  %v826_v35 = vpop.f32.mrb[4].mxu1 }
 0x127   : > { %v699_v36 = vadd.f32 %v2084_v17, %v698_v34  ;;  %v827_v37 = vadd.f32 %v2084_v17, %v826_v35  ;;  %v700_v38 = vpop.f32.mrb[5].mxu0  ;;  %v828_v39 = vpop.f32.mrb[5].mxu1 }
 0x128   : > { %v701_v40 = vpop.f32.mrb[6].mxu0  ;;  %v829_v41 = vpop.f32.mrb[6].mxu1 }
 0x129   : > { %v947_v42 = vmax.f32 %v699_v36, 0.0  ;;  %v979_v43 = vmax.f32 %v827_v37, 0.0  ;;  %v702_v44 = vadd.f32 %v2084_v17, %v701_v40  ;;  %v830_v45 = vadd.f32 %v2084_v17, %v829_v41  ;;  %v703_v46 = vpop.f32.mrb[7].mxu0  ;;  %v831_v47 = vpop.f32.mrb[7].mxu1 }
 0x12b   : > { %1012 = vst.msk [vmem:[%s2090_s12 + $0x10] sm:$0xff] %vm1009_vm0, %v947_v42  ;;  %1044 = vst.msk [vmem:[%s2090_s12 + $0x110] sm:$0xff] %vm1009_vm0, %v979_v43  ;;  %v948_v48 = vmax.f32 %v702_v44, 0.0  ;;  %v980_v49 = vmax.f32 %v830_v45, 0.0 }
 0x12d   : > { %1013 = vst.msk [vmem:[%s2090_s12 + $0x18] sm:$0xff] %vm1009_vm0, %v948_v48  ;;  %1045 = vst.msk [vmem:[%s2090_s12 + $0x118] sm:$0xff] %vm1009_vm0, %v980_v49 }
 0x12e   : > { %v706_v50 = vpop.f32.mrb[8].mxu0  ;;  %v834_v51 = vpop.f32.mrb[8].mxu1 }
 0x12f   : > { %v707_v52 = vadd.f32 %v2084_v17, %v706_v50  ;;  %v835_v53 = vadd.f32 %v2084_v17, %v834_v51  ;;  %v708_v54 = vpop.f32.mrb[9].mxu0  ;;  %v836_v55 = vpop.f32.mrb[9].mxu1 }
 0x130   : > { %v709_v56 = vpop.f32.mrb[10].mxu0  ;;  %v837_v57 = vpop.f32.mrb[10].mxu1 }
 0x131   : > { %v949_v58 = vmax.f32 %v707_v52, 0.0  ;;  %v981_v59 = vmax.f32 %v835_v53, 0.0  ;;  %v710_v60 = vadd.f32 %v2084_v17, %v709_v56  ;;  %v838_v61 = vadd.f32 %v2084_v17, %v837_v57  ;;  %v711_v62 = vpop.f32.mrb[11].mxu0  ;;  %v839_v63 = vpop.f32.mrb[11].mxu1 }
 0x133   : > { %1014 = vst.msk [vmem:[%s2090_s12 + $0x20] sm:$0xff] %vm1009_vm0, %v949_v58  ;;  %1046 = vst.msk [vmem:[%s2090_s12 + $0x120] sm:$0xff] %vm1009_vm0, %v981_v59  ;;  %v950_v0 = vmax.f32 %v710_v60, 0.0  ;;  %v982_v1 = vmax.f32 %v838_v61, 0.0 }
 0x135   : > { %1015 = vst.msk [vmem:[%s2090_s12 + $0x28] sm:$0xff] %vm1009_vm0, %v950_v0  ;;  %1047 = vst.msk [vmem:[%s2090_s12 + $0x128] sm:$0xff] %vm1009_vm0, %v982_v1 }
 0x136   : > { %v714_v2 = vpop.f32.mrb[12].mxu0  ;;  %v842_v3 = vpop.f32.mrb[12].mxu1 }
 0x137   : > { %v715_v4 = vadd.f32 %v2084_v17, %v714_v2  ;;  %v843_v5 = vadd.f32 %v2084_v17, %v842_v3  ;;  %v716_v6 = vpop.f32.mrb[13].mxu0  ;;  %v844_v7 = vpop.f32.mrb[13].mxu1 }
 0x138   : > { %v717_v8 = vpop.f32.mrb[14].mxu0  ;;  %v845_v9 = vpop.f32.mrb[14].mxu1 }
 0x139   : > { %v951_v10 = vmax.f32 %v715_v4, 0.0  ;;  %v983_v11 = vmax.f32 %v843_v5, 0.0  ;;  %v718_v12 = vadd.f32 %v2084_v17, %v717_v8  ;;  %v846_v13 = vadd.f32 %v2084_v17, %v845_v9  ;;  %v719_v14 = vpop.f32.mrb[15].mxu0  ;;  %v847_v15 = vpop.f32.mrb[15].mxu1 }
 0x13b   : > { %1016 = vst.msk [vmem:[%s2090_s12 + $0x30] sm:$0xff] %vm1009_vm0, %v951_v10  ;;  %1048 = vst.msk [vmem:[%s2090_s12 + $0x130] sm:$0xff] %vm1009_vm0, %v983_v11  ;;  %v952_v16 = vmax.f32 %v718_v12, 0.0  ;;  %v984_v18 = vmax.f32 %v846_v13, 0.0 }
 0x13d   : > { %1017 = vst.msk [vmem:[%s2090_s12 + $0x38] sm:$0xff] %vm1009_vm0, %v952_v16  ;;  %1049 = vst.msk [vmem:[%s2090_s12 + $0x138] sm:$0xff] %vm1009_vm0, %v984_v18 }
 0x13e   : > { %v722_v19 = vpop.f32.mrb[16].mxu0  ;;  %v850_v20 = vpop.f32.mrb[16].mxu1 }
 0x13f   : > { %v723_v21 = vadd.f32 %v2084_v17, %v722_v19  ;;  %v851_v22 = vadd.f32 %v2084_v17, %v850_v20  ;;  %v724_v23 = vpop.f32.mrb[17].mxu0  ;;  %v852_v24 = vpop.f32.mrb[17].mxu1 }
 0x140   : > { %v725_v25 = vpop.f32.mrb[18].mxu0  ;;  %v853_v26 = vpop.f32.mrb[18].mxu1 }
 0x141   : > { %v953_v27 = vmax.f32 %v723_v21, 0.0  ;;  %v985_v28 = vmax.f32 %v851_v22, 0.0  ;;  %v726_v29 = vadd.f32 %v2084_v17, %v725_v25  ;;  %v854_v30 = vadd.f32 %v2084_v17, %v853_v26  ;;  %v727_v31 = vpop.f32.mrb[19].mxu0  ;;  %v855_v32 = vpop.f32.mrb[19].mxu1 }
 0x143   : > { %1018 = vst.msk [vmem:[%s2090_s12 + $0x40] sm:$0xff] %vm1009_vm0, %v953_v27  ;;  %1050 = vst.msk [vmem:[%s2090_s12 + $0x140] sm:$0xff] %vm1009_vm0, %v985_v28  ;;  %v954_v33 = vmax.f32 %v726_v29, 0.0  ;;  %v986_v34 = vmax.f32 %v854_v30, 0.0 }
 0x145   : > { %1019 = vst.msk [vmem:[%s2090_s12 + $0x48] sm:$0xff] %vm1009_vm0, %v954_v33  ;;  %1051 = vst.msk [vmem:[%s2090_s12 + $0x148] sm:$0xff] %vm1009_vm0, %v986_v34 }
 0x146   : > { %v730_v35 = vpop.f32.mrb[20].mxu0  ;;  %v858_v36 = vpop.f32.mrb[20].mxu1 }
 0x147   : > { %v731_v37 = vadd.f32 %v2084_v17, %v730_v35  ;;  %v859_v38 = vadd.f32 %v2084_v17, %v858_v36  ;;  %v732_v39 = vpop.f32.mrb[21].mxu0  ;;  %v860_v40 = vpop.f32.mrb[21].mxu1 }
 0x148   : > { %v733_v41 = vpop.f32.mrb[22].mxu0  ;;  %v861_v42 = vpop.f32.mrb[22].mxu1 }
 0x149   : > { %v955_v43 = vmax.f32 %v731_v37, 0.0  ;;  %v987_v44 = vmax.f32 %v859_v38, 0.0  ;;  %v734_v45 = vadd.f32 %v2084_v17, %v733_v41  ;;  %v862_v46 = vadd.f32 %v2084_v17, %v861_v42  ;;  %v735_v47 = vpop.f32.mrb[23].mxu0  ;;  %v863_v48 = vpop.f32.mrb[23].mxu1 }
 0x14b   : > { %1020 = vst.msk [vmem:[%s2090_s12 + $0x50] sm:$0xff] %vm1009_vm0, %v955_v43  ;;  %1052 = vst.msk [vmem:[%s2090_s12 + $0x150] sm:$0xff] %vm1009_vm0, %v987_v44  ;;  %v956_v49 = vmax.f32 %v734_v45, 0.0  ;;  %v988_v50 = vmax.f32 %v862_v46, 0.0 }
 0x14d   : > { %1021 = vst.msk [vmem:[%s2090_s12 + $0x58] sm:$0xff] %vm1009_vm0, %v956_v49  ;;  %1053 = vst.msk [vmem:[%s2090_s12 + $0x158] sm:$0xff] %vm1009_vm0, %v988_v50 }
 0x14e   : > { %v738_v51 = vpop.f32.mrb[24].mxu0  ;;  %v866_v52 = vpop.f32.mrb[24].mxu1 }
 0x14f   : > { %v739_v53 = vadd.f32 %v2084_v17, %v738_v51  ;;  %v867_v54 = vadd.f32 %v2084_v17, %v866_v52  ;;  %v740_v55 = vpop.f32.mrb[25].mxu0  ;;  %v868_v56 = vpop.f32.mrb[25].mxu1 }
 0x150   : > { %v741_v57 = vpop.f32.mrb[26].mxu0  ;;  %v869_v58 = vpop.f32.mrb[26].mxu1 }
 0x151   : > { %v957_v59 = vmax.f32 %v739_v53, 0.0  ;;  %v989_v60 = vmax.f32 %v867_v54, 0.0  ;;  %v742_v61 = vadd.f32 %v2084_v17, %v741_v57  ;;  %v870_v62 = vadd.f32 %v2084_v17, %v869_v58  ;;  %v743_v63 = vpop.f32.mrb[27].mxu0  ;;  %v871_v0 = vpop.f32.mrb[27].mxu1 }
 0x153   : > { %1022 = vst.msk [vmem:[%s2090_s12 + $0x60] sm:$0xff] %vm1009_vm0, %v957_v59  ;;  %1054 = vst.msk [vmem:[%s2090_s12 + $0x160] sm:$0xff] %vm1009_vm0, %v989_v60  ;;  %v958_v1 = vmax.f32 %v742_v61, 0.0  ;;  %v990_v2 = vmax.f32 %v870_v62, 0.0 }
 0x155   : > { %1023 = vst.msk [vmem:[%s2090_s12 + $0x68] sm:$0xff] %vm1009_vm0, %v958_v1  ;;  %1055 = vst.msk [vmem:[%s2090_s12 + $0x168] sm:$0xff] %vm1009_vm0, %v990_v2 }
 0x156   : > { %v746_v3 = vpop.f32.mrb[28].mxu0  ;;  %v874_v4 = vpop.f32.mrb[28].mxu1 }
 0x157   : > { %v747_v5 = vadd.f32 %v2084_v17, %v746_v3  ;;  %v875_v6 = vadd.f32 %v2084_v17, %v874_v4  ;;  %v748_v7 = vpop.f32.mrb[29].mxu0  ;;  %v876_v8 = vpop.f32.mrb[29].mxu1 }
 0x158   : > { %v749_v9 = vpop.f32.mrb[30].mxu0  ;;  %v877_v10 = vpop.f32.mrb[30].mxu1 }
 0x159   : > { %v959_v11 = vmax.f32 %v747_v5, 0.0  ;;  %v991_v12 = vmax.f32 %v875_v6, 0.0  ;;  %v750_v13 = vadd.f32 %v2084_v17, %v749_v9  ;;  %v878_v14 = vadd.f32 %v2084_v17, %v877_v10  ;;  %v751_v15 = vpop.f32.mrb[31].mxu0  ;;  %v879_v16 = vpop.f32.mrb[31].mxu1 }
 0x15b   : > { %1024 = vst.msk [vmem:[%s2090_s12 + $0x70] sm:$0xff] %vm1009_vm0, %v959_v11  ;;  %1056 = vst.msk [vmem:[%s2090_s12 + $0x170] sm:$0xff] %vm1009_vm0, %v991_v12  ;;  %v960_v18 = vmax.f32 %v750_v13, 0.0  ;;  %v992_v19 = vmax.f32 %v878_v14, 0.0 }
 0x15d   : > { %1025 = vst.msk [vmem:[%s2090_s12 + $0x78] sm:$0xff] %vm1009_vm0, %v960_v18  ;;  %1057 = vst.msk [vmem:[%s2090_s12 + $0x178] sm:$0xff] %vm1009_vm0, %v992_v19 }
 0x15e   : > { %v754_v20 = vpop.f32.mrb[32].mxu0  ;;  %v882_v21 = vpop.f32.mrb[32].mxu1 }
 0x15f   : > { %v755_v22 = vadd.f32 %v2084_v17, %v754_v20  ;;  %v883_v23 = vadd.f32 %v2084_v17, %v882_v21  ;;  %v756_v24 = vpop.f32.mrb[33].mxu0  ;;  %v884_v25 = vpop.f32.mrb[33].mxu1 }
 0x160   : > { %v757_v26 = vpop.f32.mrb[34].mxu0  ;;  %v885_v27 = vpop.f32.mrb[34].mxu1 }
 0x161   : > { %v961_v28 = vmax.f32 %v755_v22, 0.0  ;;  %v993_v29 = vmax.f32 %v883_v23, 0.0  ;;  %v758_v30 = vadd.f32 %v2084_v17, %v757_v26  ;;  %v886_v31 = vadd.f32 %v2084_v17, %v885_v27  ;;  %v759_v32 = vpop.f32.mrb[35].mxu0  ;;  %v887_v33 = vpop.f32.mrb[35].mxu1 }
 0x163   : > { %1026 = vst.msk [vmem:[%s2090_s12 + $0x80] sm:$0xff] %vm1009_vm0, %v961_v28  ;;  %1058 = vst.msk [vmem:[%s2090_s12 + $0x180] sm:$0xff] %vm1009_vm0, %v993_v29  ;;  %v962_v34 = vmax.f32 %v758_v30, 0.0  ;;  %v994_v35 = vmax.f32 %v886_v31, 0.0 }
 0x165   : > { %1027 = vst.msk [vmem:[%s2090_s12 + $0x88] sm:$0xff] %vm1009_vm0, %v962_v34  ;;  %1059 = vst.msk [vmem:[%s2090_s12 + $0x188] sm:$0xff] %vm1009_vm0, %v994_v35 }
 0x166   : > { %v762_v36 = vpop.f32.mrb[36].mxu0  ;;  %v890_v37 = vpop.f32.mrb[36].mxu1 }
 0x167   : > { %v763_v38 = vadd.f32 %v2084_v17, %v762_v36  ;;  %v891_v39 = vadd.f32 %v2084_v17, %v890_v37  ;;  %v764_v40 = vpop.f32.mrb[37].mxu0  ;;  %v892_v41 = vpop.f32.mrb[37].mxu1 }
 0x168   : > { %v765_v42 = vpop.f32.mrb[38].mxu0  ;;  %v893_v43 = vpop.f32.mrb[38].mxu1 }
 0x169   : > { %v963_v44 = vmax.f32 %v763_v38, 0.0  ;;  %v995_v45 = vmax.f32 %v891_v39, 0.0  ;;  %v766_v46 = vadd.f32 %v2084_v17, %v765_v42  ;;  %v894_v47 = vadd.f32 %v2084_v17, %v893_v43  ;;  %v767_v48 = vpop.f32.mrb[39].mxu0  ;;  %v895_v49 = vpop.f32.mrb[39].mxu1 }
 0x16b   : > { %1028 = vst.msk [vmem:[%s2090_s12 + $0x90] sm:$0xff] %vm1009_vm0, %v963_v44  ;;  %1060 = vst.msk [vmem:[%s2090_s12 + $0x190] sm:$0xff] %vm1009_vm0, %v995_v45  ;;  %v964_v50 = vmax.f32 %v766_v46, 0.0  ;;  %v996_v51 = vmax.f32 %v894_v47, 0.0 }
 0x16d   : > { %1029 = vst.msk [vmem:[%s2090_s12 + $0x98] sm:$0xff] %vm1009_vm0, %v964_v50  ;;  %1061 = vst.msk [vmem:[%s2090_s12 + $0x198] sm:$0xff] %vm1009_vm0, %v996_v51 }
 0x16e   : > { %v770_v52 = vpop.f32.mrb[40].mxu0  ;;  %v898_v53 = vpop.f32.mrb[40].mxu1 }
 0x16f   : > { %v771_v54 = vadd.f32 %v2084_v17, %v770_v52  ;;  %v899_v55 = vadd.f32 %v2084_v17, %v898_v53  ;;  %v772_v56 = vpop.f32.mrb[41].mxu0  ;;  %v900_v57 = vpop.f32.mrb[41].mxu1 }
 0x170   : > { %v773_v58 = vpop.f32.mrb[42].mxu0  ;;  %v901_v59 = vpop.f32.mrb[42].mxu1 }
 0x171   : > { %v965_v60 = vmax.f32 %v771_v54, 0.0  ;;  %v997_v61 = vmax.f32 %v899_v55, 0.0  ;;  %v774_v62 = vadd.f32 %v2084_v17, %v773_v58  ;;  %v902_v63 = vadd.f32 %v2084_v17, %v901_v59  ;;  %v775_v0 = vpop.f32.mrb[43].mxu0  ;;  %v903_v1 = vpop.f32.mrb[43].mxu1 }
 0x173   : > { %1030 = vst.msk [vmem:[%s2090_s12 + $0xa0] sm:$0xff] %vm1009_vm0, %v965_v60  ;;  %1062 = vst.msk [vmem:[%s2090_s12 + $0x1a0] sm:$0xff] %vm1009_vm0, %v997_v61  ;;  %v966_v2 = vmax.f32 %v774_v62, 0.0  ;;  %v998_v3 = vmax.f32 %v902_v63, 0.0 }
 0x175   : > { %1031 = vst.msk [vmem:[%s2090_s12 + $0xa8] sm:$0xff] %vm1009_vm0, %v966_v2  ;;  %1063 = vst.msk [vmem:[%s2090_s12 + $0x1a8] sm:$0xff] %vm1009_vm0, %v998_v3 }
 0x176   : > { %v778_v4 = vpop.f32.mrb[44].mxu0  ;;  %v906_v5 = vpop.f32.mrb[44].mxu1 }
 0x177   : > { %v779_v6 = vadd.f32 %v2084_v17, %v778_v4  ;;  %v907_v7 = vadd.f32 %v2084_v17, %v906_v5  ;;  %v780_v8 = vpop.f32.mrb[45].mxu0  ;;  %v908_v9 = vpop.f32.mrb[45].mxu1 }
 0x178   : > { %v781_v10 = vpop.f32.mrb[46].mxu0  ;;  %v909_v11 = vpop.f32.mrb[46].mxu1 }
 0x179   : > { %v967_v12 = vmax.f32 %v779_v6, 0.0  ;;  %v999_v13 = vmax.f32 %v907_v7, 0.0  ;;  %v782_v14 = vadd.f32 %v2084_v17, %v781_v10  ;;  %v910_v15 = vadd.f32 %v2084_v17, %v909_v11  ;;  %v783_v16 = vpop.f32.mrb[47].mxu0  ;;  %v911_v18 = vpop.f32.mrb[47].mxu1 }
 0x17b   : > { %1032 = vst.msk [vmem:[%s2090_s12 + $0xb0] sm:$0xff] %vm1009_vm0, %v967_v12  ;;  %1064 = vst.msk [vmem:[%s2090_s12 + $0x1b0] sm:$0xff] %vm1009_vm0, %v999_v13  ;;  %v968_v19 = vmax.f32 %v782_v14, 0.0  ;;  %v1000_v20 = vmax.f32 %v910_v15, 0.0 }
 0x17d   : > { %1033 = vst.msk [vmem:[%s2090_s12 + $0xb8] sm:$0xff] %vm1009_vm0, %v968_v19  ;;  %1065 = vst.msk [vmem:[%s2090_s12 + $0x1b8] sm:$0xff] %vm1009_vm0, %v1000_v20 }
 0x17e   : > { %v786_v21 = vpop.f32.mrb[48].mxu0  ;;  %v914_v22 = vpop.f32.mrb[48].mxu1 }
 0x17f   : > { %v787_v23 = vadd.f32 %v2084_v17, %v786_v21  ;;  %v915_v24 = vadd.f32 %v2084_v17, %v914_v22  ;;  %v788_v25 = vpop.f32.mrb[49].mxu0  ;;  %v916_v26 = vpop.f32.mrb[49].mxu1 }
 0x180   : > { %v789_v27 = vpop.f32.mrb[50].mxu0  ;;  %v917_v28 = vpop.f32.mrb[50].mxu1 }
 0x181   : > { %v969_v29 = vmax.f32 %v787_v23, 0.0  ;;  %v1001_v30 = vmax.f32 %v915_v24, 0.0  ;;  %v790_v31 = vadd.f32 %v2084_v17, %v789_v27  ;;  %v918_v32 = vadd.f32 %v2084_v17, %v917_v28  ;;  %v791_v33 = vpop.f32.mrb[51].mxu0  ;;  %v919_v34 = vpop.f32.mrb[51].mxu1 }
 0x183   : > { %1034 = vst.msk [vmem:[%s2090_s12 + $0xc0] sm:$0xff] %vm1009_vm0, %v969_v29  ;;  %1066 = vst.msk [vmem:[%s2090_s12 + $0x1c0] sm:$0xff] %vm1009_vm0, %v1001_v30  ;;  %v970_v35 = vmax.f32 %v790_v31, 0.0  ;;  %v1002_v36 = vmax.f32 %v918_v32, 0.0 }
 0x185   : > { %1035 = vst.msk [vmem:[%s2090_s12 + $0xc8] sm:$0xff] %vm1009_vm0, %v970_v35  ;;  %1067 = vst.msk [vmem:[%s2090_s12 + $0x1c8] sm:$0xff] %vm1009_vm0, %v1002_v36 }
 0x186   : > { %v794_v37 = vpop.f32.mrb[52].mxu0  ;;  %v922_v38 = vpop.f32.mrb[52].mxu1 }
 0x187   : > { %v795_v39 = vadd.f32 %v2084_v17, %v794_v37  ;;  %v923_v40 = vadd.f32 %v2084_v17, %v922_v38  ;;  %v796_v41 = vpop.f32.mrb[53].mxu0  ;;  %v924_v42 = vpop.f32.mrb[53].mxu1 }
 0x188   : > { %v797_v43 = vpop.f32.mrb[54].mxu0  ;;  %v925_v44 = vpop.f32.mrb[54].mxu1 }
 0x189   : > { %v971_v45 = vmax.f32 %v795_v39, 0.0  ;;  %v1003_v46 = vmax.f32 %v923_v40, 0.0  ;;  %v798_v47 = vadd.f32 %v2084_v17, %v797_v43  ;;  %v926_v48 = vadd.f32 %v2084_v17, %v925_v44  ;;  %v799_v49 = vpop.f32.mrb[55].mxu0  ;;  %v927_v50 = vpop.f32.mrb[55].mxu1 }
 0x18b   : > { %1036 = vst.msk [vmem:[%s2090_s12 + $0xd0] sm:$0xff] %vm1009_vm0, %v971_v45  ;;  %1068 = vst.msk [vmem:[%s2090_s12 + $0x1d0] sm:$0xff] %vm1009_vm0, %v1003_v46  ;;  %v972_v51 = vmax.f32 %v798_v47, 0.0  ;;  %v1004_v52 = vmax.f32 %v926_v48, 0.0 }
 0x18d   : > { %1037 = vst.msk [vmem:[%s2090_s12 + $0xd8] sm:$0xff] %vm1009_vm0, %v972_v51  ;;  %1069 = vst.msk [vmem:[%s2090_s12 + $0x1d8] sm:$0xff] %vm1009_vm0, %v1004_v52 }
 0x18e   : > { %v802_v53 = vpop.f32.mrb[56].mxu0  ;;  %v930_v54 = vpop.f32.mrb[56].mxu1 }
 0x18f   : > { %v803_v55 = vadd.f32 %v2084_v17, %v802_v53  ;;  %v931_v56 = vadd.f32 %v2084_v17, %v930_v54  ;;  %v804_v57 = vpop.f32.mrb[57].mxu0  ;;  %v932_v58 = vpop.f32.mrb[57].mxu1 }
 0x190   : > { %v805_v59 = vpop.f32.mrb[58].mxu0  ;;  %v933_v60 = vpop.f32.mrb[58].mxu1 }
 0x191   : > { %v973_v61 = vmax.f32 %v803_v55, 0.0  ;;  %v1005_v62 = vmax.f32 %v931_v56, 0.0  ;;  %v806_v63 = vadd.f32 %v2084_v17, %v805_v59  ;;  %v934_v0 = vadd.f32 %v2084_v17, %v933_v60  ;;  %v807_v1 = vpop.f32.mrb[59].mxu0  ;;  %v935_v2 = vpop.f32.mrb[59].mxu1 }
 0x193   : > { %1038 = vst.msk [vmem:[%s2090_s12 + $0xe0] sm:$0xff] %vm1009_vm0, %v973_v61  ;;  %1070 = vst.msk [vmem:[%s2090_s12 + $0x1e0] sm:$0xff] %vm1009_vm0, %v1005_v62  ;;  %v974_v3 = vmax.f32 %v806_v63, 0.0  ;;  %v1006_v4 = vmax.f32 %v934_v0, 0.0 }
 0x195   : > { %1039 = vst.msk [vmem:[%s2090_s12 + $0xe8] sm:$0xff] %vm1009_vm0, %v974_v3  ;;  %1071 = vst.msk [vmem:[%s2090_s12 + $0x1e8] sm:$0xff] %vm1009_vm0, %v1006_v4 }
 0x196   : > { %v810_v5 = vpop.f32.mrb[60].mxu0  ;;  %v938_v6 = vpop.f32.mrb[60].mxu1 }
 0x197   : > { %v811_v7 = vadd.f32 %v2084_v17, %v810_v5  ;;  %v939_v8 = vadd.f32 %v2084_v17, %v938_v6  ;;  %v812_v9 = vpop.f32.mrb[61].mxu0  ;;  %v940_v10 = vpop.f32.mrb[61].mxu1  ;;  %1080 = sbr.rel (!%p1858_p4) target bundleno = 486 (0x1e6), region = 36 }
 0x198   : > { %v813_v11 = vpop.f32.mrb[62].mxu0  ;;  %v941_v12 = vpop.f32.mrb[62].mxu1 }
 0x199   : > { %v975_v13 = vmax.f32 %v811_v7, 0.0  ;;  %v1007_v14 = vmax.f32 %v939_v8, 0.0  ;;  %v814_v15 = vadd.f32 %v2084_v17, %v813_v11  ;;  %v942_v16 = vadd.f32 %v2084_v17, %v941_v12  ;;  %v815_v18 = vpop.f32.mrb[63].mxu0  ;;  %v943_v19 = vpop.f32.mrb[63].mxu1 }
 0x19b   : > { %1040 = vst.msk [vmem:[%s2090_s12 + $0xf0] sm:$0xff] %vm1009_vm0, %v975_v13  ;;  %1072 = vst.msk [vmem:[%s2090_s12 + $0x1f0] sm:$0xff] %vm1009_vm0, %v1007_v14  ;;  %v976_v20 = vmax.f32 %v814_v15, 0.0  ;;  %v1008_v21 = vmax.f32 %v942_v16, 0.0 }
 0x19d   : > { %1041 = vst.msk [vmem:[%s2090_s12 + $0xf8] sm:$0xff] %vm1009_vm0, %v976_v20  ;;  %1073 = vst.msk [vmem:[%s2090_s12 + $0x1f8] sm:$0xff] %vm1009_vm0, %v1008_v21 }
 0x19e   : > { %s2500_s7 = smov (!%p1083_p8, %s1082_s7), 64 }
 0x19f   : > { %s1568_s28 = sshll.u32 %s2500_s7, 7 }
 0x1a0   : > { %p1571_p9 = scmp.eq.s32.totalorder %s1568_s28, 0 }
 0x1a1   : > { %s2293_s29 = sshrl.u32 (!%p1571_p9), %s2500_s7, 6 }
 0x1a2   : > { %1091 = sbr.rel (%p1571_p9) target bundleno = 486 (0x1e6), region = 40  ;;  %p1572_p10 = scmp.le.s32.totalorder (!%p1571_p9), %s2293_s29, 0 }
 0x1a9   : > { %1497 = sbr.rel (%p1572_p10) target bundleno = 465 (0x1d1), region = 116  ;;  %s2491_s15 = smov (!%p1572_p10), %s2287_s27 }
 0x1aa   : > { %s2492_s20 = smov (!%p1572_p10), %s2090_s12  ;;  %s2302_s23 = smov (!%p1572_p10), 0  }
 0x1ab   : > { %s2304_s30 = smov (!%p1572_p10), 0  }
 0x1b0 LB: >> { %v1279_v17 = vld [vmem:[%s1786_s20] sm:$0xff]  ;;  %v1281_v22 = vld [vmem:[%s1786_s20 + $0x8] sm:$0xff]  ;;  %v1283_v23 = vld [vmem:[%s1786_s20 + $0x10] sm:$0xff]  ;;  %s1407_s4 = sadd.s32 1, %s1790_s23  ;;  %s1273_s30 = sadd.s32 1, %s1794_s30   ;;  %s1794_s30 = sphi %s2304_s30, %s1273_s30   ;;  %s1790_s23 = sphi %s2302_s23, %s2495_s23   ;;  %s1786_s20 = sphi %s2492_s20, %s2494_s20   ;;  %s1782_s15 = sphi %s2491_s15, %s2493_s15  }
 0x1b1   : >> { %1280 = vst [vmem:[%s1782_s15] sm:$0xff] %v1279_v17  ;;  %1282 = vst [vmem:[%s1782_s15 + $0x8] sm:$0xff] %v1281_v22  ;;  %v1285_v24 = vld [vmem:[%s1786_s20 + $0x18] sm:$0xff]  ;;  %v1287_v25 = vld [vmem:[%s1786_s20 + $0x20] sm:$0xff]  ;;  %p1408_p11 = scmp.ge.s32.totalorder %s1407_s4, %s2293_s29  ;;  %p1272_p12 = scmp.ge.s32.totalorder %s1273_s30, %s2293_s29 }
 0x1b2   : >> { %1284 = vst [vmem:[%s1782_s15 + $0x10] sm:$0xff] %v1283_v23  ;;  %v1289_v26 = vld [vmem:[%s1786_s20 + $0x28] sm:$0xff]  ;;  %1286 = vst [vmem:[%s1782_s15 + $0x18] sm:$0xff] %v1285_v24  ;;  %v1291_v27 = vld [vmem:[%s1786_s20 + $0x30] sm:$0xff] }
 0x1b3   : >> { %1288 = vst [vmem:[%s1782_s15 + $0x20] sm:$0xff] %v1287_v25  ;;  %1290 = vst [vmem:[%s1782_s15 + $0x28] sm:$0xff] %v1289_v26  ;;  %v1293_v28 = vld [vmem:[%s1786_s20 + $0x38] sm:$0xff]  ;;  %v1295_v29 = vld [vmem:[%s1786_s20 + $0x40] sm:$0xff]  ;;  %s2502_s4 = smov (%p1408_p11, %s1407_s4), 0 }
 0x1b4   : >> { %1292 = vst [vmem:[%s1782_s15 + $0x30] sm:$0xff] %v1291_v27  ;;  %1294 = vst [vmem:[%s1782_s15 + $0x38] sm:$0xff] %v1293_v28  ;;  %v1297_v30 = vld [vmem:[%s1786_s20 + $0x48] sm:$0xff]  ;;  %v1299_v31 = vld [vmem:[%s1786_s20 + $0x50] sm:$0xff]  ;;  %s1573_s5 = sshll.u32 %s2502_s4, 9  ;;  %s2495_s23 = smov %s2502_s4 }
 0x1b5   : >> { %1296 = vst [vmem:[%s1782_s15 + $0x40] sm:$0xff] %v1295_v29  ;;  %v1301_v32 = vld [vmem:[%s1786_s20 + $0x58] sm:$0xff]  ;;  %1298 = vst [vmem:[%s1782_s15 + $0x48] sm:$0xff] %v1297_v30  ;;  %v1303_v33 = vld [vmem:[%s1786_s20 + $0x60] sm:$0xff]  ;;  %s2360_s6 = scalar_lea.vmem %s2090_s12, %s1573_s5 [#allocation2]   ;;  %s2363_s8 = scalar_lea.vmem %s2287_s27, %s1573_s5  }
 0x1b6   : >> { %1300 = vst [vmem:[%s1782_s15 + $0x50] sm:$0xff] %v1299_v31  ;;  %1302 = vst [vmem:[%s1782_s15 + $0x58] sm:$0xff] %v1301_v32  ;;  %v1305_v34 = vld [vmem:[%s1786_s20 + $0x68] sm:$0xff]  ;;  %v1307_v35 = vld [vmem:[%s1786_s20 + $0x70] sm:$0xff] }
 0x1b7   : >> { %1304 = vst [vmem:[%s1782_s15 + $0x60] sm:$0xff] %v1303_v33  ;;  %1306 = vst [vmem:[%s1782_s15 + $0x68] sm:$0xff] %v1305_v34  ;;  %v1309_v36 = vld [vmem:[%s1786_s20 + $0x78] sm:$0xff]  ;;  %v1311_v37 = vld [vmem:[%s1786_s20 + $0x80] sm:$0xff] }
 0x1b8   : >> { %1308 = vst [vmem:[%s1782_s15 + $0x70] sm:$0xff] %v1307_v35  ;;  %v1313_v38 = vld [vmem:[%s1786_s20 + $0x88] sm:$0xff]  ;;  %1310 = vst [vmem:[%s1782_s15 + $0x78] sm:$0xff] %v1309_v36  ;;  %v1315_v39 = vld [vmem:[%s1786_s20 + $0x90] sm:$0xff] }
 0x1b9   : >> { %1312 = vst [vmem:[%s1782_s15 + $0x80] sm:$0xff] %v1311_v37  ;;  %1314 = vst [vmem:[%s1782_s15 + $0x88] sm:$0xff] %v1313_v38  ;;  %v1317_v40 = vld [vmem:[%s1786_s20 + $0x98] sm:$0xff]  ;;  %v1319_v41 = vld [vmem:[%s1786_s20 + $0xa0] sm:$0xff] }
 0x1ba   : >> { %1316 = vst [vmem:[%s1782_s15 + $0x90] sm:$0xff] %v1315_v39  ;;  %1318 = vst [vmem:[%s1782_s15 + $0x98] sm:$0xff] %v1317_v40  ;;  %v1321_v42 = vld [vmem:[%s1786_s20 + $0xa8] sm:$0xff]  ;;  %v1323_v43 = vld [vmem:[%s1786_s20 + $0xb0] sm:$0xff] }
 0x1bb   : >> { %1320 = vst [vmem:[%s1782_s15 + $0xa0] sm:$0xff] %v1319_v41  ;;  %v1325_v44 = vld [vmem:[%s1786_s20 + $0xb8] sm:$0xff]  ;;  %1322 = vst [vmem:[%s1782_s15 + $0xa8] sm:$0xff] %v1321_v42  ;;  %v1327_v45 = vld [vmem:[%s1786_s20 + $0xc0] sm:$0xff] }
 0x1bc   : >> { %1324 = vst [vmem:[%s1782_s15 + $0xb0] sm:$0xff] %v1323_v43  ;;  %1326 = vst [vmem:[%s1782_s15 + $0xb8] sm:$0xff] %v1325_v44  ;;  %v1329_v46 = vld [vmem:[%s1786_s20 + $0xc8] sm:$0xff]  ;;  %v1331_v47 = vld [vmem:[%s1786_s20 + $0xd0] sm:$0xff] }
 0x1bd   : >> { %1328 = vst [vmem:[%s1782_s15 + $0xc0] sm:$0xff] %v1327_v45  ;;  %1330 = vst [vmem:[%s1782_s15 + $0xc8] sm:$0xff] %v1329_v46  ;;  %v1333_v48 = vld [vmem:[%s1786_s20 + $0xd8] sm:$0xff]  ;;  %v1335_v49 = vld [vmem:[%s1786_s20 + $0xe0] sm:$0xff] }
 0x1be   : >> { %1332 = vst [vmem:[%s1782_s15 + $0xd0] sm:$0xff] %v1331_v47  ;;  %v1337_v50 = vld [vmem:[%s1786_s20 + $0xe8] sm:$0xff]  ;;  %1334 = vst [vmem:[%s1782_s15 + $0xd8] sm:$0xff] %v1333_v48  ;;  %v1339_v51 = vld [vmem:[%s1786_s20 + $0xf0] sm:$0xff] }
 0x1bf   : >> { %1336 = vst [vmem:[%s1782_s15 + $0xe0] sm:$0xff] %v1335_v49  ;;  %1338 = vst [vmem:[%s1782_s15 + $0xe8] sm:$0xff] %v1337_v50  ;;  %v1341_v52 = vld [vmem:[%s1786_s20 + $0xf8] sm:$0xff]  ;;  %v1343_v53 = vld [vmem:[%s1786_s20 + $0x100] sm:$0xff] }
 0x1c0   : >> { %1340 = vst [vmem:[%s1782_s15 + $0xf0] sm:$0xff] %v1339_v51  ;;  %1342 = vst [vmem:[%s1782_s15 + $0xf8] sm:$0xff] %v1341_v52  ;;  %v1345_v54 = vld [vmem:[%s1786_s20 + $0x108] sm:$0xff]  ;;  %v1347_v55 = vld [vmem:[%s1786_s20 + $0x110] sm:$0xff] }
 0x1c1   : >> { %1344 = vst [vmem:[%s1782_s15 + $0x100] sm:$0xff] %v1343_v53  ;;  %v1349_v56 = vld [vmem:[%s1786_s20 + $0x118] sm:$0xff]  ;;  %1346 = vst [vmem:[%s1782_s15 + $0x108] sm:$0xff] %v1345_v54  ;;  %v1351_v57 = vld [vmem:[%s1786_s20 + $0x120] sm:$0xff] }
 0x1c2   : >> { %1348 = vst [vmem:[%s1782_s15 + $0x110] sm:$0xff] %v1347_v55  ;;  %1350 = vst [vmem:[%s1782_s15 + $0x118] sm:$0xff] %v1349_v56  ;;  %v1353_v58 = vld [vmem:[%s1786_s20 + $0x128] sm:$0xff]  ;;  %v1355_v59 = vld [vmem:[%s1786_s20 + $0x130] sm:$0xff] }
 0x1c3   : >> { %1352 = vst [vmem:[%s1782_s15 + $0x120] sm:$0xff] %v1351_v57  ;;  %1354 = vst [vmem:[%s1782_s15 + $0x128] sm:$0xff] %v1353_v58  ;;  %v1357_v60 = vld [vmem:[%s1786_s20 + $0x138] sm:$0xff]  ;;  %v1359_v61 = vld [vmem:[%s1786_s20 + $0x140] sm:$0xff] }
 0x1c4   : >> { %1356 = vst [vmem:[%s1782_s15 + $0x130] sm:$0xff] %v1355_v59  ;;  %v1361_v62 = vld [vmem:[%s1786_s20 + $0x148] sm:$0xff]  ;;  %1358 = vst [vmem:[%s1782_s15 + $0x138] sm:$0xff] %v1357_v60  ;;  %v1363_v63 = vld [vmem:[%s1786_s20 + $0x150] sm:$0xff] }
 0x1c5   : >> { %1360 = vst [vmem:[%s1782_s15 + $0x140] sm:$0xff] %v1359_v61  ;;  %1362 = vst [vmem:[%s1782_s15 + $0x148] sm:$0xff] %v1361_v62  ;;  %v1365_v0 = vld [vmem:[%s1786_s20 + $0x158] sm:$0xff]  ;;  %v1367_v1 = vld [vmem:[%s1786_s20 + $0x160] sm:$0xff] }
 0x1c6   : >> { %1364 = vst [vmem:[%s1782_s15 + $0x150] sm:$0xff] %v1363_v63  ;;  %1366 = vst [vmem:[%s1782_s15 + $0x158] sm:$0xff] %v1365_v0  ;;  %v1369_v2 = vld [vmem:[%s1786_s20 + $0x168] sm:$0xff]  ;;  %v1371_v3 = vld [vmem:[%s1786_s20 + $0x170] sm:$0xff] }
 0x1c7   : >> { %1368 = vst [vmem:[%s1782_s15 + $0x160] sm:$0xff] %v1367_v1  ;;  %v1373_v4 = vld [vmem:[%s1786_s20 + $0x178] sm:$0xff]  ;;  %1370 = vst [vmem:[%s1782_s15 + $0x168] sm:$0xff] %v1369_v2  ;;  %v1375_v5 = vld [vmem:[%s1786_s20 + $0x180] sm:$0xff] }
 0x1c8   : >> { %1372 = vst [vmem:[%s1782_s15 + $0x170] sm:$0xff] %v1371_v3  ;;  %1374 = vst [vmem:[%s1782_s15 + $0x178] sm:$0xff] %v1373_v4  ;;  %v1377_v6 = vld [vmem:[%s1786_s20 + $0x188] sm:$0xff]  ;;  %v1379_v7 = vld [vmem:[%s1786_s20 + $0x190] sm:$0xff] }
 0x1c9   : >> { %1376 = vst [vmem:[%s1782_s15 + $0x180] sm:$0xff] %v1375_v5  ;;  %1378 = vst [vmem:[%s1782_s15 + $0x188] sm:$0xff] %v1377_v6  ;;  %v1381_v8 = vld [vmem:[%s1786_s20 + $0x198] sm:$0xff]  ;;  %v1383_v9 = vld [vmem:[%s1786_s20 + $0x1a0] sm:$0xff] }
 0x1ca   : >> { %1380 = vst [vmem:[%s1782_s15 + $0x190] sm:$0xff] %v1379_v7  ;;  %v1385_v10 = vld [vmem:[%s1786_s20 + $0x1a8] sm:$0xff]  ;;  %1382 = vst [vmem:[%s1782_s15 + $0x198] sm:$0xff] %v1381_v8  ;;  %v1387_v11 = vld [vmem:[%s1786_s20 + $0x1b0] sm:$0xff]  ;;  %1275 = sbr.rel (!%p1272_p12) target bundleno = 432 (0x1b0), region = 122 }
 0x1cb   : >> { %1384 = vst [vmem:[%s1782_s15 + $0x1a0] sm:$0xff] %v1383_v9  ;;  %1386 = vst [vmem:[%s1782_s15 + $0x1a8] sm:$0xff] %v1385_v10  ;;  %v1389_v12 = vld [vmem:[%s1786_s20 + $0x1b8] sm:$0xff]  ;;  %v1391_v13 = vld [vmem:[%s1786_s20 + $0x1c0] sm:$0xff] }
 0x1cc   : >> { %1388 = vst [vmem:[%s1782_s15 + $0x1b0] sm:$0xff] %v1387_v11  ;;  %1390 = vst [vmem:[%s1782_s15 + $0x1b8] sm:$0xff] %v1389_v12  ;;  %v1393_v14 = vld [vmem:[%s1786_s20 + $0x1c8] sm:$0xff]  ;;  %v1395_v15 = vld [vmem:[%s1786_s20 + $0x1d0] sm:$0xff] }
 0x1cd   : >> { %1392 = vst [vmem:[%s1782_s15 + $0x1c0] sm:$0xff] %v1391_v13  ;;  %v1397_v16 = vld [vmem:[%s1786_s20 + $0x1d8] sm:$0xff]  ;;  %1394 = vst [vmem:[%s1782_s15 + $0x1c8] sm:$0xff] %v1393_v14  ;;  %v1399_v18 = vld [vmem:[%s1786_s20 + $0x1e0] sm:$0xff] }
 0x1ce   : >> { %1396 = vst [vmem:[%s1782_s15 + $0x1d0] sm:$0xff] %v1395_v15  ;;  %1398 = vst [vmem:[%s1782_s15 + $0x1d8] sm:$0xff] %v1397_v16  ;;  %v1401_v19 = vld [vmem:[%s1786_s20 + $0x1e8] sm:$0xff]  ;;  %v1403_v20 = vld [vmem:[%s1786_s20 + $0x1f0] sm:$0xff] }
 0x1cf   : >> { %1400 = vst [vmem:[%s1782_s15 + $0x1e0] sm:$0xff] %v1399_v18  ;;  %1402 = vst [vmem:[%s1782_s15 + $0x1e8] sm:$0xff] %v1401_v19  ;;  %v1405_v21 = vld [vmem:[%s1786_s20 + $0x1f8] sm:$0xff]  ;;  %s2494_s20 = smov %s2360_s6 }
 0x1d0   : >> { %1404 = vst [vmem:[%s1782_s15 + $0x1f0] sm:$0xff] %v1403_v20  ;;  %1406 = vst [vmem:[%s1782_s15 + $0x1f8] sm:$0xff] %v1405_v21  ;;  %s2493_s15 = smov %s2363_s8 }
 0x1d1 PF: > { %s2468_s9 = sand.u32 63, %s2500_s7   ;;  %s1585_s10 = sshll.u32 %s2293_s29, 9 }
 0x1d2   : > { %s1418_s11 = scalar_lea.vmem %s2090_s12, %s1585_s10 [#allocation2]   ;;  %s1420_s14 = scalar_lea.vmem %s2287_s27, %s1585_s10  }
 0x1d3   : > { %p1578_p13 = scmp.le.s32.totalorder %s2468_s9, 0 }
 0x1d4   : > { %s1796_s17 = smov (!%p1578_p13), %s1420_s14   ;;  %s1800_s18 = smov (!%p1578_p13), %s1418_s11  }
 0x1d5   : > { %1511 = sbr.rel (%p1578_p13) target bundleno = 486 (0x1e6), region = 127  ;;  %s1804_s21 = smov (!%p1578_p13), 0  }
 0x1d6   : > { %s1808_s22 = smov (!%p1578_p13), 0  }
 0x1dc LB: >> { %v1430_v17 = vld [vmem:[%s1802_s18] sm:$0xff]  ;;  %s1432_s7 = sadd.s32 1, %s1806_s21  ;;  %s1424_s22 = sadd.s32 1, %s1810_s22   ;;  %s1810_s22 = sphi %s1808_s22, %s1424_s22   ;;  %s1806_s21 = sphi %s1804_s21, %s1805_s21   ;;  %s1802_s18 = sphi %s1800_s18, %s1437_s18   ;;  %s1798_s17 = sphi %s1796_s17, %s1438_s17  }
 0x1dd   : >> { %1431 = vst [vmem:[%s1798_s17] sm:$0xff] %v1430_v17  ;;  %p1433_p0 = scmp.ge.s32.totalorder %s1432_s7, %s2468_s9  ;;  %p1423_p1 = scmp.ge.s32.totalorder %s1424_s22, %s2468_s9 }
 0x1df   : >> { %s2504_s7 = smov (%p1433_p0, %s1432_s7), 0  ;;  %1426 = sbr.rel (!%p1423_p1) target bundleno = 476 (0x1dc), region = 133 }
 0x1e0   : >> { %s1579_s12 = sshll.u32 %s2504_s7, 3  ;;  %s1805_s21 = smov %s2504_s7  }
 0x1e1   : >> { %s1437_s18 = scalar_lea.vmem %s1418_s11, %s1579_s12 [#allocation2]   ;;  %s1438_s17 = scalar_lea.vmem %s1420_s14, %s1579_s12  }
 0x1e6 PF: > { %p10_p2 = scmp.ge.s32.totalorder %s1848_s16, 4   ;;  %s2496_s12 = smov %s1774_s13 }
 0x1e7   : > { %s2497_s13 = smov %s1856_s19  ;;  %s2498_s14 = smov %s1848_s16 }
 0x1e8   :  { %12 = sbr.rel (!%p10_p2) target bundleno = 2 (0x2), region = 144 }

// kernel: cnn_base_forward.5
= control target key start
LH: loop header
LB: loop body
LE: loop exit
PB: predicated region body
PF: predicated region fallthrough
CT: control target
= control target key end

     0   :  { %vm667_vm0 = vcmask 523264   ;;  %vm688_vm1 = vcmask 517120   ;;  %s1400_s1 = inlined_call_operand.vmem [shape: bf16[512,64], index: 1, kind: input, shape index: {}]   ;;  %s1401_s0 = inlined_call_operand.vmem [shape: f32[162,512], index: 0, kind: input, shape index: {}]   ;;  %s1402_s2 = inlined_call_operand.vmem [shape: f32[1,64], index: 2, kind: input, shape index: {}]   ;;  %s1403_s3 = inlined_call_operand.vmem [shape: f32[162,64], index: 3, kind: output, shape index: {}]  }
   0x1   :  { %v891_v0 = vld [vmem:[%s1400_s1 + $0x40] sm:$0xff]   ;;  %v895_v4 = vld [vmem:[%s1400_s1 + $0x48] sm:$0xff]   ;;  %v899_v8 = vld [vmem:[%s1400_s1 + $0x50] sm:$0xff]  }
   0x2   :  { %v892_v1 = vld [vmem:[%s1400_s1 + $0xc0] sm:$0xff]   ;;  %727 = vmatprep.subr.bf16.mxu0 %v891_v0  ;;  %v896_v5 = vld [vmem:[%s1400_s1 + $0xc8] sm:$0xff]   ;;  %v900_v9 = vld [vmem:[%s1400_s1 + $0xd0] sm:$0xff]  }
   0x3   :  { %v893_v2 = vld [vmem:[%s1400_s1] sm:$0xff]   ;;  %809 = vmatprep.subr.bf16.mxu1 %v892_v1  ;;  %v897_v6 = vld [vmem:[%s1400_s1 + $0x8] sm:$0xff]   ;;  %v901_v10 = vld [vmem:[%s1400_s1 + $0x10] sm:$0xff]  }
   0x4   :  { %v894_v3 = vld [vmem:[%s1400_s1 + $0x80] sm:$0xff]   ;;  %728 = vmatpush3.bf16.msra.mxu0 %v893_v2  ;;  %v898_v7 = vld [vmem:[%s1400_s1 + $0x88] sm:$0xff]   ;;  %v902_v11 = vld [vmem:[%s1400_s1 + $0x90] sm:$0xff]  }
   0x5   :  { %810 = vmatpush3.bf16.msra.mxu1 %v894_v3  ;;  %729 = vmatprep.subr.bf16.mxu0 %v895_v4  ;;  %v903_v12 = vld [vmem:[%s1400_s1 + $0x58] sm:$0xff]   ;;  %v907_v16 = vld [vmem:[%s1400_s1 + $0x60] sm:$0xff]   ;;  %v911_v20 = vld [vmem:[%s1400_s1 + $0x68] sm:$0xff]  }
   0x6   :  { %811 = vmatprep.subr.bf16.mxu1 %v896_v5  ;;  %v904_v13 = vld [vmem:[%s1400_s1 + $0xd8] sm:$0xff]   ;;  %v908_v17 = vld [vmem:[%s1400_s1 + $0xe0] sm:$0xff]   ;;  %v912_v21 = vld [vmem:[%s1400_s1 + $0xe8] sm:$0xff]  }
   0x7   :  { %v905_v14 = vld [vmem:[%s1400_s1 + $0x18] sm:$0xff]   ;;  %v909_v18 = vld [vmem:[%s1400_s1 + $0x20] sm:$0xff]   ;;  %v913_v22 = vld [vmem:[%s1400_s1 + $0x28] sm:$0xff]  }
   0x8   :  { %730 = vmatpush3.bf16.msra.mxu0 %v897_v6  ;;  %v906_v15 = vld [vmem:[%s1400_s1 + $0x98] sm:$0xff]   ;;  %v910_v19 = vld [vmem:[%s1400_s1 + $0xa0] sm:$0xff]   ;;  %v914_v23 = vld [vmem:[%s1400_s1 + $0xa8] sm:$0xff]  }
   0x9   :  { %812 = vmatpush3.bf16.msra.mxu1 %v898_v7  ;;  %731 = vmatprep.subr.bf16.mxu0 %v899_v8  ;;  %v915_v24 = vld [vmem:[%s1400_s1 + $0x70] sm:$0xff]   ;;  %v919_v28 = vld [vmem:[%s1400_s1 + $0x78] sm:$0xff]   ;;  %v16_v32 = vld [vmem:[%s1401_s0 + $0x8] sm:$0xff] }
   0xa   :  { %813 = vmatprep.subr.bf16.mxu1 %v900_v9  ;;  %v916_v25 = vld [vmem:[%s1400_s1 + $0xf0] sm:$0xff]   ;;  %v920_v29 = vld [vmem:[%s1400_s1 + $0xf8] sm:$0xff]   ;;  %v20_v33 = vld [vmem:[%s1401_s0 + $0x28] sm:$0xff] }
   0xb   :  { %v917_v26 = vld [vmem:[%s1400_s1 + $0x30] sm:$0xff]   ;;  %v921_v30 = vld [vmem:[%s1400_s1 + $0x38] sm:$0xff]   ;;  %v100_v35 = vpack.c.bf16 %v20_v33, %v16_v32  ;;  %v15_v37 = vld [vmem:[%s1401_s0] sm:$0xff] }
   0xc   :  { %732 = vmatpush3.bf16.msra.mxu0 %v901_v10  ;;  %v918_v27 = vld [vmem:[%s1400_s1 + $0xb0] sm:$0xff]   ;;  %v922_v31 = vld [vmem:[%s1400_s1 + $0xb8] sm:$0xff]   ;;  %v19_v38 = vld [vmem:[%s1401_s0 + $0x20] sm:$0xff] }
   0xd   :  { %814 = vmatpush3.bf16.msra.mxu1 %v902_v11  ;;  %733 = vmatprep.subr.bf16.mxu0 %v903_v12  ;;  %v18_v34 = vld [vmem:[%s1401_s0 + $0x18] sm:$0xff]  ;;  %v99_v40 = vpack.c.bf16 %v19_v38, %v15_v37  ;;  %v17_v41 = vld [vmem:[%s1401_s0 + $0x10] sm:$0xff]  ;;  %v24_v43 = vld [vmem:[%s1401_s0 + $0x48] sm:$0xff] }
   0xe   :  { %815 = vmatprep.subr.bf16.mxu1 %v904_v13  ;;  %v22_v36 = vld [vmem:[%s1401_s0 + $0x38] sm:$0xff]  ;;  %v21_v42 = vld [vmem:[%s1401_s0 + $0x30] sm:$0xff]  ;;  %438 = vmatprep.mubr.bf16.mxu0 %v100_v35  ;;  %v28_v45 = vld [vmem:[%s1401_s0 + $0x68] sm:$0xff] }
   0xf   :  { %v102_v39 = vpack.c.bf16 %v22_v36, %v18_v34  ;;  %v101_v44 = vpack.c.bf16 %v21_v42, %v17_v41  ;;  %v26_v46 = vld [vmem:[%s1401_s0 + $0x58] sm:$0xff]  ;;  %v104_v48 = vpack.c.bf16 %v28_v45, %v24_v43  ;;  %v23_v50 = vld [vmem:[%s1401_s0 + $0x40] sm:$0xff]  ;;  %v25_v52 = vld [vmem:[%s1401_s0 + $0x50] sm:$0xff] }
  0x10   :  { %734 = vmatpush3.bf16.msra.mxu0 %v905_v14  ;;  %v30_v47 = vld [vmem:[%s1401_s0 + $0x78] sm:$0xff]  ;;  %v27_v51 = vld [vmem:[%s1401_s0 + $0x60] sm:$0xff]  ;;  %v29_v53 = vld [vmem:[%s1401_s0 + $0x70] sm:$0xff] }
  0x11   :  { %816 = vmatpush3.bf16.msra.mxu1 %v906_v15  ;;  %735 = vmatprep.subr.bf16.mxu0 %v907_v16  ;;  %v106_v49 = vpack.c.bf16 %v30_v47, %v26_v46  ;;  %v32_v54 = vld [vmem:[%s1401_s0 + $0x88] sm:$0xff]  ;;  %v34_v56 = vld [vmem:[%s1401_s0 + $0x98] sm:$0xff]  ;;  %v103_v58 = vpack.c.bf16 %v27_v51, %v23_v50  ;;  %v105_v59 = vpack.c.bf16 %v29_v53, %v25_v52  ;;  %v31_v62 = vld [vmem:[%s1401_s0 + $0x80] sm:$0xff] }
  0x12   :  { %817 = vmatprep.subr.bf16.mxu1 %v908_v17  ;;  %558 = vmatprep.mubr.bf16.mxu1 %v102_v39  ;;  %v36_v55 = vld [vmem:[%s1401_s0 + $0xa8] sm:$0xff]  ;;  %v38_v57 = vld [vmem:[%s1401_s0 + $0xb8] sm:$0xff]  ;;  %v35_v63 = vld [vmem:[%s1401_s0 + $0xa0] sm:$0xff] }
  0x13   :  { %v108_v60 = vpack.c.bf16 %v36_v55, %v32_v54  ;;  %v110_v61 = vpack.c.bf16 %v38_v57, %v34_v56  ;;  %v33_v0 = vld [vmem:[%s1401_s0 + $0x90] sm:$0xff]  ;;  %v40_v2 = vld [vmem:[%s1401_s0 + $0xc8] sm:$0xff]  ;;  %v42_v4 = vld [vmem:[%s1401_s0 + $0xd8] sm:$0xff]  ;;  %v107_v6 = vpack.c.bf16 %v35_v63, %v31_v62 }
  0x14   :  { %736 = vmatpush3.bf16.msra.mxu0 %v909_v18  ;;  %v37_v1 = vld [vmem:[%s1401_s0 + $0xb0] sm:$0xff]  ;;  %v44_v3 = vld [vmem:[%s1401_s0 + $0xe8] sm:$0xff]  ;;  %v46_v5 = vld [vmem:[%s1401_s0 + $0xf8] sm:$0xff] }
  0x15   :  { %818 = vmatpush3.bf16.msra.mxu1 %v910_v19  ;;  %737 = vmatprep.subr.bf16.mxu0 %v911_v20  ;;  %v109_v7 = vpack.c.bf16 %v37_v1, %v33_v0  ;;  %v112_v8 = vpack.c.bf16 %v44_v3, %v40_v2  ;;  %v114_v9 = vpack.c.bf16 %v46_v5, %v42_v4  ;;  %v39_v10 = vld [vmem:[%s1401_s0 + $0xc0] sm:$0xff]  ;;  %v41_v12 = vld [vmem:[%s1401_s0 + $0xd0] sm:$0xff]  ;;  %v48_v14 = vld [vmem:[%s1401_s0 + $0x108] sm:$0xff] }
  0x16   :  { %819 = vmatprep.subr.bf16.mxu1 %v912_v21  ;;  %v43_v11 = vld [vmem:[%s1401_s0 + $0xe0] sm:$0xff]  ;;  %v45_v13 = vld [vmem:[%s1401_s0 + $0xf0] sm:$0xff]  ;;  %v52_v15 = vld [vmem:[%s1401_s0 + $0x128] sm:$0xff] }
  0x17   :  { %v50_v16 = vld [vmem:[%s1401_s0 + $0x118] sm:$0xff]  ;;  %v111_v18 = vpack.c.bf16 %v43_v11, %v39_v10  ;;  %v113_v19 = vpack.c.bf16 %v45_v13, %v41_v12  ;;  %v116_v20 = vpack.c.bf16 %v52_v15, %v48_v14  ;;  %v55_v34 = vld [vmem:[%s1401_s0 + $0x140] sm:$0xff]  ;;  %v57_v36 = vld [vmem:[%s1401_s0 + $0x150] sm:$0xff] }
  0x18   :  { %738 = vmatpush3.bf16.msra.mxu0 %v913_v22  ;;  %v54_v17 = vld [vmem:[%s1401_s0 + $0x138] sm:$0xff]  ;;  %v47_v22 = vld [vmem:[%s1401_s0 + $0x100] sm:$0xff]  ;;  %v61_v37 = vld [vmem:[%s1401_s0 + $0x170] sm:$0xff] }
  0x19   :  { %820 = vmatpush3.bf16.msra.mxu1 %v914_v23  ;;  %739 = vmatprep.subr.bf16.mxu0 %v915_v24  ;;  %v118_v21 = vpack.c.bf16 %v54_v17, %v50_v16  ;;  %v51_v23 = vld [vmem:[%s1401_s0 + $0x120] sm:$0xff]  ;;  %v49_v24 = vld [vmem:[%s1401_s0 + $0x110] sm:$0xff]  ;;  %v64_v38 = vld [vmem:[%s1401_s0 + $0x188] sm:$0xff]  ;;  %v121_v43 = vpack.c.bf16 %v61_v37, %v57_v36 }
  0x1a   :  { %821 = vmatprep.subr.bf16.mxu1 %v916_v25  ;;  %v53_v25 = vld [vmem:[%s1401_s0 + $0x130] sm:$0xff]  ;;  %v59_v35 = vld [vmem:[%s1401_s0 + $0x160] sm:$0xff]  ;;  %v68_v39 = vld [vmem:[%s1401_s0 + $0x1a8] sm:$0xff] }
  0x1b   :  { %v70_v41 = vld [vmem:[%s1401_s0 + $0x1b8] sm:$0xff]  ;;  %v119_v42 = vpack.c.bf16 %v59_v35, %v55_v34  ;;  %v63_v46 = vld [vmem:[%s1401_s0 + $0x180] sm:$0xff]  ;;  %v72_v50 = vld [vmem:[%s1401_s0 + $0x1c8] sm:$0xff] }
  0x1c   :  { %740 = vmatpush3.bf16.msra.mxu0 %v917_v26  ;;  %v56_v26 = vld [vmem:[%s1401_s0 + $0x148] sm:$0xff]  ;;  %v67_v47 = vld [vmem:[%s1401_s0 + $0x1a0] sm:$0xff]  ;;  %v74_v52 = vld [vmem:[%s1401_s0 + $0x1d8] sm:$0xff] }
  0x1d   :  { %822 = vmatpush3.bf16.msra.mxu1 %v918_v27  ;;  %741 = vmatprep.subr.bf16.mxu0 %v919_v28  ;;  %v60_v27 = vld [vmem:[%s1401_s0 + $0x168] sm:$0xff]  ;;  %v58_v28 = vld [vmem:[%s1401_s0 + $0x158] sm:$0xff]  ;;  %v123_v54 = vpack.c.bf16 %v67_v47, %v63_v46  ;;  %v1294_v34 = vld [vmem:[%s1402_s2] ss:$0 sm:$0xff] }
  0x1e   :  { %823 = vmatprep.subr.bf16.mxu1 %v920_v29  ;;  %v62_v29 = vld [vmem:[%s1401_s0 + $0x178] sm:$0xff]  ;;  %v120_v32 = vpack.c.bf16 %v60_v27, %v56_v26  ;;  %v76_v51 = vld [vmem:[%s1401_s0 + $0x1e8] sm:$0xff] }
  0x1f   :  { %v122_v33 = vpack.c.bf16 %v62_v29, %v58_v28  ;;  %v78_v53 = vld [vmem:[%s1401_s0 + $0x1f8] sm:$0xff]  ;;  %v128_v56 = vpack.c.bf16 %v76_v51, %v72_v50  ;;  %v80_v62 = vld [vmem:[%s1401_s0 + $0x208] sm:$0xff]  ;;  %v95_v28 = vld [vmem:[%s1401_s0 + $0x280] sm:$0x3] }
  0x20   :  { %742 = vmatpush3.bf16.msra.mxu0 %v921_v30  ;;  %v115_v30 = vpack.c.bf16 %v51_v23, %v47_v22  ;;  %v130_v57 = vpack.c.bf16 %v78_v53, %v74_v52  ;;  %v84_v63 = vld [vmem:[%s1401_s0 + $0x228] sm:$0xff]  ;;  %v82_v0 = vld [vmem:[%s1401_s0 + $0x218] sm:$0xff]  ;;  %v97_v29 = vld [vmem:[%s1401_s0 + $0x290] sm:$0x3] }
  0x21   :  { %824 = vmatpush3.bf16.msra.mxu1 %v922_v31  ;;  %v117_v31 = vpack.c.bf16 %v53_v25, %v49_v24  ;;  %v86_v1 = vld [vmem:[%s1401_s0 + $0x238] sm:$0xff]  ;;  %v132_v4 = vpack.c.bf16 %v84_v63, %v80_v62  ;;  %v88_v10 = vld [vmem:[%s1401_s0 + $0x248] sm:$0xff] }
  0x22   :  { %v134_v5 = vpack.c.bf16 %v86_v1, %v82_v0  ;;  %v92_v11 = vld [vmem:[%s1401_s0 + $0x268] sm:$0xff]  ;;  %v90_v12 = vld [vmem:[%s1401_s0 + $0x258] sm:$0xff] }
  0x23   :  { %439 = vmatmul.mubr.bf16.vlgmr.msra.gmra.mrb[0].mxu0 %v99_v40  ;;  %v66_v40 = vld [vmem:[%s1401_s0 + $0x198] sm:$0xff]  ;;  %v136_v16 = vpack.c.bf16 %v92_v11, %v88_v10  ;;  %v96_v22 = vld [vmem:[%s1401_s0 + $0x288] sm:$0x3] }
  0x24   :  { %559 = vmatmul.mubr.bf16.vlgmr.msra.gmra.mrb[0].mxu1 %v101_v44  ;;  %446 = vmatprep.mubr.bf16.mxu0 %v104_v48  ;;  %v124_v44 = vpack.c.bf16 %v68_v39, %v64_v38  ;;  %v126_v45 = vpack.c.bf16 %v70_v41, %v66_v40  ;;  %v65_v48 = vld [vmem:[%s1401_s0 + $0x190] sm:$0xff]  ;;  %v94_v13 = vld [vmem:[%s1401_s0 + $0x278] sm:$0xff]  ;;  %v140_v26 = vpack.c.bf16 %v96_v22, %v96_v22 }
  0x25   :  { %566 = vmatprep.mubr.bf16.mxu1 %v106_v49  ;;  %v69_v49 = vld [vmem:[%s1401_s0 + $0x1b0] sm:$0xff]  ;;  %v138_v17 = vpack.c.bf16 %v94_v13, %v90_v12  ;;  %v98_v23 = vld [vmem:[%s1401_s0 + $0x298] sm:$0x3] }
  0x26   :  { %v125_v55 = vpack.c.bf16 %v69_v49, %v65_v48  ;;  %v142_v27 = vpack.c.bf16 %v98_v23, %v98_v23 }
  0x2b   :  { %447 = vmatmul.mubr.bf16.gmra.mrb[4].mxu0 %v103_v58  ;;  %v71_v58 = vld [vmem:[%s1401_s0 + $0x1c0] sm:$0xff] }
  0x2c   :  { %567 = vmatmul.mubr.bf16.gmra.mrb[4].mxu1 %v105_v59  ;;  %454 = vmatprep.mubr.bf16.mxu0 %v108_v60  ;;  %v75_v59 = vld [vmem:[%s1401_s0 + $0x1e0] sm:$0xff]  ;;  %v73_v60 = vld [vmem:[%s1401_s0 + $0x1d0] sm:$0xff] }
  0x2d   :  { %574 = vmatprep.mubr.bf16.mxu1 %v110_v61  ;;  %v77_v61 = vld [vmem:[%s1401_s0 + $0x1f0] sm:$0xff]  ;;  %v127_v2 = vpack.c.bf16 %v75_v59, %v71_v58 }
  0x2e   :  { %v129_v3 = vpack.c.bf16 %v77_v61, %v73_v60 }
  0x33   :  { %455 = vmatmul.mubr.bf16.gmra.mrb[8].mxu0 %v107_v6  ;;  %v79_v6 = vld [vmem:[%s1401_s0 + $0x200] sm:$0xff] }
  0x34   :  { %575 = vmatmul.mubr.bf16.gmra.mrb[8].mxu1 %v109_v7  ;;  %462 = vmatprep.mubr.bf16.mxu0 %v112_v8  ;;  %v83_v7 = vld [vmem:[%s1401_s0 + $0x220] sm:$0xff]  ;;  %v81_v8 = vld [vmem:[%s1401_s0 + $0x210] sm:$0xff] }
  0x35   :  { %582 = vmatprep.mubr.bf16.mxu1 %v114_v9  ;;  %v85_v9 = vld [vmem:[%s1401_s0 + $0x230] sm:$0xff]  ;;  %v131_v14 = vpack.c.bf16 %v83_v7, %v79_v6 }
  0x36   :  { %v133_v15 = vpack.c.bf16 %v85_v9, %v81_v8 }
  0x3b   :  { %463 = vmatmul.mubr.bf16.gmra.mrb[12].mxu0 %v111_v18  ;;  %v87_v18 = vld [vmem:[%s1401_s0 + $0x240] sm:$0xff] }
  0x3c   :  { %583 = vmatmul.mubr.bf16.gmra.mrb[12].mxu1 %v113_v19  ;;  %470 = vmatprep.mubr.bf16.mxu0 %v116_v20  ;;  %v91_v19 = vld [vmem:[%s1401_s0 + $0x260] sm:$0xff]  ;;  %v89_v20 = vld [vmem:[%s1401_s0 + $0x250] sm:$0xff] }
  0x3d   :  { %590 = vmatprep.mubr.bf16.mxu1 %v118_v21  ;;  %v93_v21 = vld [vmem:[%s1401_s0 + $0x270] sm:$0xff]  ;;  %v135_v24 = vpack.c.bf16 %v91_v19, %v87_v18 }
  0x3e   :  { %v137_v25 = vpack.c.bf16 %v93_v21, %v89_v20 }
  0x43   :  { %471 = vmatmul.mubr.bf16.gmra.mrb[16].mxu0 %v115_v30  ;;  %v139_v30 = vpack.c.bf16 %v95_v28, %v95_v28 }
  0x44   :  { %591 = vmatmul.mubr.bf16.gmra.mrb[16].mxu1 %v117_v31  ;;  %478 = vmatprep.mubr.bf16.mxu0 %v120_v32  ;;  %v141_v31 = vpack.c.bf16 %v97_v29, %v97_v29 }
  0x45   :  { %598 = vmatprep.mubr.bf16.mxu1 %v122_v33 }
  0x4b   :  { %479 = vmatmul.mubr.bf16.gmra.mrb[20].mxu0 %v119_v42 }
  0x4c   :  { %599 = vmatmul.mubr.bf16.gmra.mrb[20].mxu1 %v121_v43  ;;  %486 = vmatprep.mubr.bf16.mxu0 %v124_v44 }
  0x4d   :  { %606 = vmatprep.mubr.bf16.mxu1 %v126_v45 }
  0x53   :  { %487 = vmatmul.mubr.bf16.gmra.mrb[24].mxu0 %v123_v54 }
  0x54   :  { %607 = vmatmul.mubr.bf16.gmra.mrb[24].mxu1 %v125_v55  ;;  %494 = vmatprep.mubr.bf16.mxu0 %v128_v56 }
  0x55   :  { %614 = vmatprep.mubr.bf16.mxu1 %v130_v57 }
  0x5b   :  { %495 = vmatmul.mubr.bf16.gmra.mrb[28].mxu0 %v127_v2 }
  0x5c   :  { %615 = vmatmul.mubr.bf16.gmra.mrb[28].mxu1 %v129_v3  ;;  %502 = vmatprep.mubr.bf16.mxu0 %v132_v4 }
  0x5d   :  { %622 = vmatprep.mubr.bf16.mxu1 %v134_v5 }
  0x63   :  { %503 = vmatmul.mubr.bf16.gmra.mrb[32].mxu0 %v131_v14 }
  0x64   :  { %623 = vmatmul.mubr.bf16.gmra.mrb[32].mxu1 %v133_v15  ;;  %510 = vmatprep.mubr.bf16.mxu0 %v136_v16 }
  0x65   :  { %630 = vmatprep.mubr.bf16.mxu1 %v138_v17 }
  0x6b   :  { %511 = vmatmul.mubr.bf16.gmra.mrb[36].mxu0 %v135_v24 }
  0x6c   :  { %631 = vmatmul.mubr.bf16.gmra.mrb[36].mxu1 %v137_v25  ;;  %518 = vmatprep.mubr.bf16.mxu0 %v140_v26 }
  0x6d   :  { %638 = vmatprep.mubr.bf16.mxu1 %v142_v27 }
  0x73   :  { %519 = vmatmul.mubr.bf16.gmra.mrb[40].mxu0 %v139_v30 }
  0x74   :  { %639 = vmatmul.mubr.bf16.gmra.mrb[40].mxu1 %v141_v31 }
  0xf6   :  { %v743_v32 = vpop.f32.mrb[0].mxu0 }
  0xf7   :  { %v825_v33 = vpop.f32.mrb[0].mxu1  ;;  %v744_v35 = vpop.f32.mrb[1].mxu0 }
  0xf8   :  { %v745_v36 = vadd.f32 %v744_v35, %v743_v32  ;;  %v826_v37 = vpop.f32.mrb[1].mxu1  ;;  %v746_v38 = vpop.f32.mrb[2].mxu0 }
  0xf9   :  { %v827_v39 = vadd.f32 %v826_v37, %v825_v33  ;;  %v828_v40 = vpop.f32.mrb[2].mxu1  ;;  %v747_v41 = vpop.f32.mrb[3].mxu0 }
  0xfa   :  { %v441_v42 = vadd.f32 %v745_v36, %v1294_v34  ;;  %v748_v43 = vadd.f32 %v747_v41, %v746_v38  ;;  %v829_v44 = vpop.f32.mrb[3].mxu1 }
  0xfb   :  { %v830_v45 = vadd.f32 %v829_v44, %v828_v40 }
  0xfc   :  { %v561_v46 = vadd.f32 %v827_v39, %v441_v42  ;;  %v444_v47 = vadd.f32 %v748_v43, %v1294_v34 }
  0xfe   :  { %v646_v48 = vmax.f32 %v561_v46, 0.0  ;;  %v564_v49 = vadd.f32 %v830_v45, %v444_v47  ;;  %v749_v50 = vpop.f32.mrb[4].mxu0 }
  0xff   :  { %v831_v51 = vpop.f32.mrb[4].mxu1  ;;  %v750_v52 = vpop.f32.mrb[5].mxu0 }
 0x100   :  { %668 = vst.msk [vmem:[%s1403_s3] sm:$0xff] %vm667_vm0, %v646_v48  ;;  %v647_v53 = vmax.f32 %v564_v49, 0.0  ;;  %v751_v54 = vadd.f32 %v750_v52, %v749_v50  ;;  %v832_v55 = vpop.f32.mrb[5].mxu1  ;;  %v752_v56 = vpop.f32.mrb[6].mxu0 }
 0x101   :  { %v833_v57 = vadd.f32 %v832_v55, %v831_v51  ;;  %v834_v58 = vpop.f32.mrb[6].mxu1  ;;  %v753_v59 = vpop.f32.mrb[7].mxu0 }
 0x102   :  { %669 = vst.msk [vmem:[%s1403_s3 + $0x8] sm:$0xff] %vm667_vm0, %v647_v53  ;;  %v449_v60 = vadd.f32 %v751_v54, %v1294_v34  ;;  %v754_v61 = vadd.f32 %v753_v59, %v752_v56  ;;  %v835_v62 = vpop.f32.mrb[7].mxu1 }
 0x103   :  { %v836_v63 = vadd.f32 %v835_v62, %v834_v58 }
 0x104   :  { %v569_v0 = vadd.f32 %v833_v57, %v449_v60  ;;  %v452_v1 = vadd.f32 %v754_v61, %v1294_v34 }
 0x106   :  { %v648_v2 = vmax.f32 %v569_v0, 0.0  ;;  %v572_v3 = vadd.f32 %v836_v63, %v452_v1  ;;  %v755_v4 = vpop.f32.mrb[8].mxu0 }
 0x107   :  { %v837_v5 = vpop.f32.mrb[8].mxu1  ;;  %v756_v6 = vpop.f32.mrb[9].mxu0 }
 0x108   :  { %670 = vst.msk [vmem:[%s1403_s3 + $0x10] sm:$0xff] %vm667_vm0, %v648_v2  ;;  %v649_v7 = vmax.f32 %v572_v3, 0.0  ;;  %v757_v8 = vadd.f32 %v756_v6, %v755_v4  ;;  %v838_v9 = vpop.f32.mrb[9].mxu1  ;;  %v758_v10 = vpop.f32.mrb[10].mxu0 }
 0x109   :  { %v839_v11 = vadd.f32 %v838_v9, %v837_v5  ;;  %v840_v12 = vpop.f32.mrb[10].mxu1  ;;  %v759_v13 = vpop.f32.mrb[11].mxu0 }
 0x10a   :  { %671 = vst.msk [vmem:[%s1403_s3 + $0x18] sm:$0xff] %vm667_vm0, %v649_v7  ;;  %v457_v14 = vadd.f32 %v757_v8, %v1294_v34  ;;  %v760_v15 = vadd.f32 %v759_v13, %v758_v10  ;;  %v841_v16 = vpop.f32.mrb[11].mxu1 }
 0x10b   :  { %v842_v17 = vadd.f32 %v841_v16, %v840_v12 }
 0x10c   :  { %v577_v18 = vadd.f32 %v839_v11, %v457_v14  ;;  %v460_v19 = vadd.f32 %v760_v15, %v1294_v34 }
 0x10e   :  { %v650_v20 = vmax.f32 %v577_v18, 0.0  ;;  %v580_v21 = vadd.f32 %v842_v17, %v460_v19  ;;  %v761_v22 = vpop.f32.mrb[12].mxu0 }
 0x10f   :  { %v843_v23 = vpop.f32.mrb[12].mxu1  ;;  %v762_v24 = vpop.f32.mrb[13].mxu0 }
 0x110   :  { %672 = vst.msk [vmem:[%s1403_s3 + $0x20] sm:$0xff] %vm667_vm0, %v650_v20  ;;  %v651_v25 = vmax.f32 %v580_v21, 0.0  ;;  %v763_v26 = vadd.f32 %v762_v24, %v761_v22  ;;  %v844_v27 = vpop.f32.mrb[13].mxu1  ;;  %v764_v28 = vpop.f32.mrb[14].mxu0 }
 0x111   :  { %v845_v29 = vadd.f32 %v844_v27, %v843_v23  ;;  %v846_v30 = vpop.f32.mrb[14].mxu1  ;;  %v765_v31 = vpop.f32.mrb[15].mxu0 }
 0x112   :  { %673 = vst.msk [vmem:[%s1403_s3 + $0x28] sm:$0xff] %vm667_vm0, %v651_v25  ;;  %v465_v32 = vadd.f32 %v763_v26, %v1294_v34  ;;  %v766_v33 = vadd.f32 %v765_v31, %v764_v28  ;;  %v847_v35 = vpop.f32.mrb[15].mxu1 }
 0x113   :  { %v848_v36 = vadd.f32 %v847_v35, %v846_v30 }
 0x114   :  { %v585_v37 = vadd.f32 %v845_v29, %v465_v32  ;;  %v468_v38 = vadd.f32 %v766_v33, %v1294_v34 }
 0x116   :  { %v652_v39 = vmax.f32 %v585_v37, 0.0  ;;  %v588_v40 = vadd.f32 %v848_v36, %v468_v38  ;;  %v767_v41 = vpop.f32.mrb[16].mxu0 }
 0x117   :  { %v849_v42 = vpop.f32.mrb[16].mxu1  ;;  %v768_v43 = vpop.f32.mrb[17].mxu0 }
 0x118   :  { %674 = vst.msk [vmem:[%s1403_s3 + $0x30] sm:$0xff] %vm667_vm0, %v652_v39  ;;  %v653_v44 = vmax.f32 %v588_v40, 0.0  ;;  %v769_v45 = vadd.f32 %v768_v43, %v767_v41  ;;  %v850_v46 = vpop.f32.mrb[17].mxu1  ;;  %v770_v47 = vpop.f32.mrb[18].mxu0 }
 0x119   :  { %v851_v48 = vadd.f32 %v850_v46, %v849_v42  ;;  %v852_v49 = vpop.f32.mrb[18].mxu1  ;;  %v771_v50 = vpop.f32.mrb[19].mxu0 }
 0x11a   :  { %675 = vst.msk [vmem:[%s1403_s3 + $0x38] sm:$0xff] %vm667_vm0, %v653_v44  ;;  %v473_v51 = vadd.f32 %v769_v45, %v1294_v34  ;;  %v772_v52 = vadd.f32 %v771_v50, %v770_v47  ;;  %v853_v53 = vpop.f32.mrb[19].mxu1 }
 0x11b   :  { %v854_v54 = vadd.f32 %v853_v53, %v852_v49 }
 0x11c   :  { %v593_v55 = vadd.f32 %v851_v48, %v473_v51  ;;  %v476_v56 = vadd.f32 %v772_v52, %v1294_v34 }
 0x11e   :  { %v654_v57 = vmax.f32 %v593_v55, 0.0  ;;  %v596_v58 = vadd.f32 %v854_v54, %v476_v56  ;;  %v773_v59 = vpop.f32.mrb[20].mxu0 }
 0x11f   :  { %v855_v60 = vpop.f32.mrb[20].mxu1  ;;  %v774_v61 = vpop.f32.mrb[21].mxu0 }
 0x120   :  { %676 = vst.msk [vmem:[%s1403_s3 + $0x40] sm:$0xff] %vm667_vm0, %v654_v57  ;;  %v655_v62 = vmax.f32 %v596_v58, 0.0  ;;  %v775_v63 = vadd.f32 %v774_v61, %v773_v59  ;;  %v856_v0 = vpop.f32.mrb[21].mxu1  ;;  %v776_v1 = vpop.f32.mrb[22].mxu0 }
 0x121   :  { %v857_v2 = vadd.f32 %v856_v0, %v855_v60  ;;  %v858_v3 = vpop.f32.mrb[22].mxu1  ;;  %v777_v4 = vpop.f32.mrb[23].mxu0 }
 0x122   :  { %677 = vst.msk [vmem:[%s1403_s3 + $0x48] sm:$0xff] %vm667_vm0, %v655_v62  ;;  %v481_v5 = vadd.f32 %v775_v63, %v1294_v34  ;;  %v778_v6 = vadd.f32 %v777_v4, %v776_v1  ;;  %v859_v7 = vpop.f32.mrb[23].mxu1 }
 0x123   :  { %v860_v8 = vadd.f32 %v859_v7, %v858_v3 }
 0x124   :  { %v601_v9 = vadd.f32 %v857_v2, %v481_v5  ;;  %v484_v10 = vadd.f32 %v778_v6, %v1294_v34 }
 0x126   :  { %v656_v11 = vmax.f32 %v601_v9, 0.0  ;;  %v604_v12 = vadd.f32 %v860_v8, %v484_v10  ;;  %v779_v13 = vpop.f32.mrb[24].mxu0 }
 0x127   :  { %v861_v14 = vpop.f32.mrb[24].mxu1  ;;  %v780_v15 = vpop.f32.mrb[25].mxu0 }
 0x128   :  { %678 = vst.msk [vmem:[%s1403_s3 + $0x50] sm:$0xff] %vm667_vm0, %v656_v11  ;;  %v657_v16 = vmax.f32 %v604_v12, 0.0  ;;  %v781_v17 = vadd.f32 %v780_v15, %v779_v13  ;;  %v862_v18 = vpop.f32.mrb[25].mxu1  ;;  %v782_v19 = vpop.f32.mrb[26].mxu0 }
 0x129   :  { %v863_v20 = vadd.f32 %v862_v18, %v861_v14  ;;  %v864_v21 = vpop.f32.mrb[26].mxu1  ;;  %v783_v22 = vpop.f32.mrb[27].mxu0 }
 0x12a   :  { %679 = vst.msk [vmem:[%s1403_s3 + $0x58] sm:$0xff] %vm667_vm0, %v657_v16  ;;  %v489_v23 = vadd.f32 %v781_v17, %v1294_v34  ;;  %v784_v24 = vadd.f32 %v783_v22, %v782_v19  ;;  %v865_v25 = vpop.f32.mrb[27].mxu1 }
 0x12b   :  { %v866_v26 = vadd.f32 %v865_v25, %v864_v21 }
 0x12c   :  { %v609_v27 = vadd.f32 %v863_v20, %v489_v23  ;;  %v492_v28 = vadd.f32 %v784_v24, %v1294_v34 }
 0x12e   :  { %v658_v29 = vmax.f32 %v609_v27, 0.0  ;;  %v612_v30 = vadd.f32 %v866_v26, %v492_v28  ;;  %v785_v31 = vpop.f32.mrb[28].mxu0 }
 0x12f   :  { %v867_v32 = vpop.f32.mrb[28].mxu1  ;;  %v786_v33 = vpop.f32.mrb[29].mxu0 }
 0x130   :  { %680 = vst.msk [vmem:[%s1403_s3 + $0x60] sm:$0xff] %vm667_vm0, %v658_v29  ;;  %v659_v35 = vmax.f32 %v612_v30, 0.0  ;;  %v787_v36 = vadd.f32 %v786_v33, %v785_v31  ;;  %v868_v37 = vpop.f32.mrb[29].mxu1  ;;  %v788_v38 = vpop.f32.mrb[30].mxu0 }
 0x131   :  { %v869_v39 = vadd.f32 %v868_v37, %v867_v32  ;;  %v870_v40 = vpop.f32.mrb[30].mxu1  ;;  %v789_v41 = vpop.f32.mrb[31].mxu0 }
 0x132   :  { %681 = vst.msk [vmem:[%s1403_s3 + $0x68] sm:$0xff] %vm667_vm0, %v659_v35  ;;  %v497_v42 = vadd.f32 %v787_v36, %v1294_v34  ;;  %v790_v43 = vadd.f32 %v789_v41, %v788_v38  ;;  %v871_v44 = vpop.f32.mrb[31].mxu1 }
 0x133   :  { %v872_v45 = vadd.f32 %v871_v44, %v870_v40 }
 0x134   :  { %v617_v46 = vadd.f32 %v869_v39, %v497_v42  ;;  %v500_v47 = vadd.f32 %v790_v43, %v1294_v34 }
 0x136   :  { %v660_v48 = vmax.f32 %v617_v46, 0.0  ;;  %v620_v49 = vadd.f32 %v872_v45, %v500_v47  ;;  %v791_v50 = vpop.f32.mrb[32].mxu0 }
 0x137   :  { %v873_v51 = vpop.f32.mrb[32].mxu1  ;;  %v792_v52 = vpop.f32.mrb[33].mxu0 }
 0x138   :  { %682 = vst.msk [vmem:[%s1403_s3 + $0x70] sm:$0xff] %vm667_vm0, %v660_v48  ;;  %v661_v53 = vmax.f32 %v620_v49, 0.0  ;;  %v793_v54 = vadd.f32 %v792_v52, %v791_v50  ;;  %v874_v55 = vpop.f32.mrb[33].mxu1  ;;  %v794_v56 = vpop.f32.mrb[34].mxu0 }
 0x139   :  { %v875_v57 = vadd.f32 %v874_v55, %v873_v51  ;;  %v876_v58 = vpop.f32.mrb[34].mxu1  ;;  %v795_v59 = vpop.f32.mrb[35].mxu0 }
 0x13a   :  { %683 = vst.msk [vmem:[%s1403_s3 + $0x78] sm:$0xff] %vm667_vm0, %v661_v53  ;;  %v505_v60 = vadd.f32 %v793_v54, %v1294_v34  ;;  %v796_v61 = vadd.f32 %v795_v59, %v794_v56  ;;  %v877_v62 = vpop.f32.mrb[35].mxu1 }
 0x13b   :  { %v878_v63 = vadd.f32 %v877_v62, %v876_v58 }
 0x13c   :  { %v625_v0 = vadd.f32 %v875_v57, %v505_v60  ;;  %v508_v1 = vadd.f32 %v796_v61, %v1294_v34 }
 0x13e   :  { %v662_v2 = vmax.f32 %v625_v0, 0.0  ;;  %v628_v3 = vadd.f32 %v878_v63, %v508_v1  ;;  %v797_v4 = vpop.f32.mrb[36].mxu0 }
 0x13f   :  { %v879_v5 = vpop.f32.mrb[36].mxu1  ;;  %v798_v6 = vpop.f32.mrb[37].mxu0 }
 0x140   :  { %684 = vst.msk [vmem:[%s1403_s3 + $0x80] sm:$0xff] %vm667_vm0, %v662_v2  ;;  %v663_v7 = vmax.f32 %v628_v3, 0.0  ;;  %v799_v8 = vadd.f32 %v798_v6, %v797_v4  ;;  %v880_v9 = vpop.f32.mrb[37].mxu1  ;;  %v800_v10 = vpop.f32.mrb[38].mxu0 }
 0x141   :  { %v881_v11 = vadd.f32 %v880_v9, %v879_v5  ;;  %v882_v12 = vpop.f32.mrb[38].mxu1  ;;  %v801_v13 = vpop.f32.mrb[39].mxu0 }
 0x142   :  { %685 = vst.msk [vmem:[%s1403_s3 + $0x88] sm:$0xff] %vm667_vm0, %v663_v7  ;;  %v513_v14 = vadd.f32 %v799_v8, %v1294_v34  ;;  %v802_v15 = vadd.f32 %v801_v13, %v800_v10  ;;  %v883_v16 = vpop.f32.mrb[39].mxu1 }
 0x143   :  { %v884_v17 = vadd.f32 %v883_v16, %v882_v12 }
 0x144   :  { %v633_v18 = vadd.f32 %v881_v11, %v513_v14  ;;  %v516_v19 = vadd.f32 %v802_v15, %v1294_v34 }
 0x146   :  { %v664_v20 = vmax.f32 %v633_v18, 0.0  ;;  %v636_v21 = vadd.f32 %v884_v17, %v516_v19  ;;  %v803_v22 = vpop.f32.mrb[40].mxu0 }
 0x147   :  { %v885_v23 = vpop.f32.mrb[40].mxu1  ;;  %v804_v24 = vpop.f32.mrb[41].mxu0 }
 0x148   :  { %686 = vst.msk [vmem:[%s1403_s3 + $0x90] sm:$0xff] %vm667_vm0, %v664_v20  ;;  %v665_v25 = vmax.f32 %v636_v21, 0.0  ;;  %v805_v26 = vadd.f32 %v804_v24, %v803_v22  ;;  %v886_v27 = vpop.f32.mrb[41].mxu1  ;;  %v806_v28 = vpop.f32.mrb[42].mxu0 }
 0x149   :  { %v887_v29 = vadd.f32 %v886_v27, %v885_v23  ;;  %v888_v30 = vpop.f32.mrb[42].mxu1  ;;  %v807_v31 = vpop.f32.mrb[43].mxu0 }
 0x14a   :  { %687 = vst.msk [vmem:[%s1403_s3 + $0x98] sm:$0xff] %vm667_vm0, %v665_v25  ;;  %v521_v32 = vadd.f32 %v805_v26, %v1294_v34  ;;  %v889_v33 = vpop.f32.mrb[43].mxu1 }
 0x14c   :  { %v641_v35 = vadd.f32 %v887_v29, %v521_v32 }
 0x14e   :  { %v666_v36 = vmax.f32 %v641_v35, 0.0 }
 0x150   :  { %689 = vst.msk [vmem:[%s1403_s3 + $0xa0] sm:$0x3] %vm688_vm1, %v666_v36 }

// kernel: cnn_base_forward.6
= control target key start
LH: loop header
LB: loop body
LE: loop exit
PB: predicated region body
PF: predicated region fallthrough
CT: control target
= control target key end

     0   :  { %v981_v39 = vmov 0.0   ;;  %vm982_vm0 = vmmov 0   ;;  %vm410_vm1 = vcmask 523264   ;;  %vm709_vm2 = vcmask 261120   ;;  %s1428_s1 = inlined_call_operand.vmem [shape: bf16[576,32], index: 1, kind: input, shape index: {}]   ;;  %s1429_s0 = inlined_call_operand.vmem [shape: f32[98,576], index: 0, kind: input, shape index: {}]   ;;  %s1430_s2 = inlined_call_operand.vmem [shape: f32[1,32], index: 2, kind: input, shape index: {}]   ;;  %s1431_s3 = inlined_call_operand.vmem [shape: f32[98,32], index: 3, kind: output, shape index: {}]  }
   0x1   :  { %v945_v0 = vld [vmem:[%s1428_s1 + $0x40] sm:$0xff]   ;;  %v949_v4 = vld [vmem:[%s1428_s1 + $0x48] sm:$0xff]   ;;  %v953_v8 = vld [vmem:[%s1428_s1 + $0x50] sm:$0xff]   ;;  %vm722_vm3 = vcmask 254976  }
   0x2   :  { %v946_v1 = vld [vmem:[%s1428_s1 + $0xc0] sm:$0xff]   ;;  %772 = vmatprep.subr.bf16.mxu0 %v945_v0  ;;  %v950_v5 = vld [vmem:[%s1428_s1 + $0xc8] sm:$0xff]   ;;  %v954_v9 = vld [vmem:[%s1428_s1 + $0xd0] sm:$0xff]  }
   0x3   :  { %v947_v2 = vld [vmem:[%s1428_s1] sm:$0xff]   ;;  %830 = vmatprep.subr.bf16.mxu1 %v946_v1  ;;  %v951_v6 = vld [vmem:[%s1428_s1 + $0x8] sm:$0xff]   ;;  %v955_v10 = vld [vmem:[%s1428_s1 + $0x10] sm:$0xff]  }
   0x4   :  { %v948_v3 = vld [vmem:[%s1428_s1 + $0x80] sm:$0xff]   ;;  %773 = vmatpush3.bf16.msra.mxu0 %v947_v2  ;;  %v952_v7 = vld [vmem:[%s1428_s1 + $0x88] sm:$0xff]   ;;  %v956_v11 = vld [vmem:[%s1428_s1 + $0x90] sm:$0xff]  }
   0x5   :  { %831 = vmatpush3.bf16.msra.mxu1 %v948_v3  ;;  %774 = vmatprep.subr.bf16.mxu0 %v949_v4  ;;  %v957_v12 = vld [vmem:[%s1428_s1 + $0x58] sm:$0xff]   ;;  %v961_v16 = vld [vmem:[%s1428_s1 + $0x60] sm:$0xff]   ;;  %v965_v20 = vld [vmem:[%s1428_s1 + $0x68] sm:$0xff]  }
   0x6   :  { %832 = vmatprep.subr.bf16.mxu1 %v950_v5  ;;  %v958_v13 = vld [vmem:[%s1428_s1 + $0xd8] sm:$0xff]   ;;  %v962_v17 = vld [vmem:[%s1428_s1 + $0xe0] sm:$0xff]   ;;  %v966_v21 = vld [vmem:[%s1428_s1 + $0xe8] sm:$0xff]  }
   0x7   :  { %v959_v14 = vld [vmem:[%s1428_s1 + $0x18] sm:$0xff]   ;;  %v963_v18 = vld [vmem:[%s1428_s1 + $0x20] sm:$0xff]   ;;  %v967_v22 = vld [vmem:[%s1428_s1 + $0x28] sm:$0xff]  }
   0x8   :  { %775 = vmatpush3.bf16.msra.mxu0 %v951_v6  ;;  %v960_v15 = vld [vmem:[%s1428_s1 + $0x98] sm:$0xff]   ;;  %v964_v19 = vld [vmem:[%s1428_s1 + $0xa0] sm:$0xff]   ;;  %v968_v23 = vld [vmem:[%s1428_s1 + $0xa8] sm:$0xff]  }
   0x9   :  { %833 = vmatpush3.bf16.msra.mxu1 %v952_v7  ;;  %776 = vmatprep.subr.bf16.mxu0 %v953_v8  ;;  %v969_v24 = vld [vmem:[%s1428_s1 + $0x70] sm:$0xff]   ;;  %v973_v28 = vld [vmem:[%s1428_s1 + $0x78] sm:$0xff]   ;;  %v16_v32 = vld [vmem:[%s1429_s0 + $0x8] sm:$0xff] }
   0xa   :  { %834 = vmatprep.subr.bf16.mxu1 %v954_v9  ;;  %v970_v25 = vld [vmem:[%s1428_s1 + $0xf0] sm:$0xff]   ;;  %v974_v29 = vld [vmem:[%s1428_s1 + $0xf8] sm:$0xff]   ;;  %v23_v36 = vld [vmem:[%s1429_s0 + $0x40] sm:$0xff] }
   0xb   :  { %v971_v26 = vld [vmem:[%s1428_s1 + $0x30] sm:$0xff]   ;;  %v975_v30 = vld [vmem:[%s1428_s1 + $0x38] sm:$0xff]   ;;  %v15_v37 = vld [vmem:[%s1429_s0] sm:$0xff] }
   0xc   :  { %777 = vmatpush3.bf16.msra.mxu0 %v955_v10  ;;  %v972_v27 = vld [vmem:[%s1428_s1 + $0xb0] sm:$0xff]   ;;  %v976_v31 = vld [vmem:[%s1428_s1 + $0xb8] sm:$0xff]   ;;  %v20_v38 = vld [vmem:[%s1429_s0 + $0x28] sm:$0xff] }
   0xd   :  { %835 = vmatpush3.bf16.msra.mxu1 %v956_v11  ;;  %778 = vmatprep.subr.bf16.mxu0 %v957_v12  ;;  %v21_v33 = vld [vmem:[%s1429_s0 + $0x30] sm:$0xff]  ;;  %v18_v34 = vld [vmem:[%s1429_s0 + $0x18] sm:$0xff]  ;;  %v80_v41 = vpack.c.bf16 %v20_v38, %v15_v37  ;;  %v977_v45 = vld [vmem:[%s1428_s1 + $0x100] sm:$0xff]  }
   0xe   :  { %836 = vmatprep.subr.bf16.mxu1 %v958_v13  ;;  %v81_v35 = vpack.c.bf16 %v21_v33, %v16_v32  ;;  %v83_v40 = vpack.c.bf16 %v23_v36, %v18_v34  ;;  %v17_v42 = vld [vmem:[%s1429_s0 + $0x10] sm:$0xff]  ;;  %v22_v43 = vld [vmem:[%s1429_s0 + $0x38] sm:$0xff]  ;;  %v31_v47 = vld [vmem:[%s1429_s0 + $0x80] sm:$0xff] }
   0xf   :  { %v82_v44 = vpack.c.bf16 %v22_v43, %v17_v42  ;;  %v26_v46 = vld [vmem:[%s1429_s0 + $0x58] sm:$0xff]  ;;  %v28_v48 = vld [vmem:[%s1429_s0 + $0x68] sm:$0xff]  ;;  %v33_v49 = vld [vmem:[%s1429_s0 + $0x90] sm:$0xff] }
  0x10   :  { %779 = vmatpush3.bf16.msra.mxu0 %v959_v14  ;;  %464 = vmatprep.mubr.bf16.mxu0 %v81_v35  ;;  %v86_v50 = vpack.c.bf16 %v31_v47, %v26_v46  ;;  %v88_v51 = vpack.c.bf16 %v33_v49, %v28_v48  ;;  %v25_v52 = vld [vmem:[%s1429_s0 + $0x50] sm:$0xff]  ;;  %v30_v53 = vld [vmem:[%s1429_s0 + $0x78] sm:$0xff]  ;;  %v27_v54 = vld [vmem:[%s1429_s0 + $0x60] sm:$0xff] }
  0x11   :  { %837 = vmatpush3.bf16.msra.mxu1 %v960_v15  ;;  %780 = vmatprep.subr.bf16.mxu0 %v961_v16  ;;  %v32_v55 = vld [vmem:[%s1429_s0 + $0x88] sm:$0xff]  ;;  %v41_v57 = vld [vmem:[%s1429_s0 + $0xd0] sm:$0xff]  ;;  %v38_v58 = vld [vmem:[%s1429_s0 + $0xb8] sm:$0xff]  ;;  %v85_v60 = vpack.c.bf16 %v30_v53, %v25_v52 }
  0x12   :  { %838 = vmatprep.subr.bf16.mxu1 %v962_v17  ;;  %552 = vmatprep.mubr.bf16.mxu1 %v83_v40  ;;  %v36_v56 = vld [vmem:[%s1429_s0 + $0xa8] sm:$0xff]  ;;  %v43_v59 = vld [vmem:[%s1429_s0 + $0xe0] sm:$0xff]  ;;  %v87_v62 = vpack.c.bf16 %v32_v55, %v27_v54  ;;  %v37_v3 = vld [vmem:[%s1429_s0 + $0xb0] sm:$0xff] }
  0x13   :  { %v978_v61 = vld [vmem:[%s1428_s1 + $0x108] sm:$0xff]   ;;  %v91_v63 = vpack.c.bf16 %v41_v57, %v36_v56  ;;  %v93_v0 = vpack.c.bf16 %v43_v59, %v38_v58  ;;  %v35_v1 = vld [vmem:[%s1429_s0 + $0xa0] sm:$0xff]  ;;  %v979_v4 = vld [vmem:[%s1428_s1 + $0x110] sm:$0xff]  }
  0x14   :  { %781 = vmatpush3.bf16.msra.mxu0 %v963_v18  ;;  %v40_v2 = vld [vmem:[%s1429_s0 + $0xc8] sm:$0xff]  ;;  %v42_v5 = vld [vmem:[%s1429_s0 + $0xd8] sm:$0xff]  ;;  %v51_v7 = vld [vmem:[%s1429_s0 + $0x120] sm:$0xff] }
  0x15   :  { %839 = vmatpush3.bf16.msra.mxu1 %v964_v19  ;;  %782 = vmatprep.subr.bf16.mxu0 %v965_v20  ;;  %v46_v6 = vld [vmem:[%s1429_s0 + $0xf8] sm:$0xff]  ;;  %v48_v8 = vld [vmem:[%s1429_s0 + $0x108] sm:$0xff]  ;;  %v53_v9 = vld [vmem:[%s1429_s0 + $0x130] sm:$0xff]  ;;  %v90_v10 = vpack.c.bf16 %v40_v2, %v35_v1  ;;  %v92_v11 = vpack.c.bf16 %v42_v5, %v37_v3 }
  0x16   :  { %840 = vmatprep.subr.bf16.mxu1 %v966_v21  ;;  %v96_v12 = vpack.c.bf16 %v51_v7, %v46_v6  ;;  %v98_v13 = vpack.c.bf16 %v53_v9, %v48_v8  ;;  %v980_v14 = vld [vmem:[%s1428_s1 + $0x118] sm:$0xff]   ;;  %v45_v15 = vld [vmem:[%s1429_s0 + $0xf0] sm:$0xff]  ;;  %v47_v17 = vld [vmem:[%s1429_s0 + $0x100] sm:$0xff] }
  0x17   :  { %v50_v16 = vld [vmem:[%s1429_s0 + $0x118] sm:$0xff]  ;;  %v52_v18 = vld [vmem:[%s1429_s0 + $0x128] sm:$0xff]  ;;  %v61_v20 = vld [vmem:[%s1429_s0 + $0x170] sm:$0xff] }
  0x18   :  { %783 = vmatpush3.bf16.msra.mxu0 %v967_v22  ;;  %v56_v19 = vld [vmem:[%s1429_s0 + $0x148] sm:$0xff]  ;;  %v58_v21 = vld [vmem:[%s1429_s0 + $0x158] sm:$0xff]  ;;  %v63_v22 = vld [vmem:[%s1429_s0 + $0x180] sm:$0xff] }
  0x19   :  { %841 = vmatpush3.bf16.msra.mxu1 %v968_v23  ;;  %784 = vmatprep.subr.bf16.mxu0 %v969_v24  ;;  %v95_v23 = vpack.c.bf16 %v50_v16, %v45_v15  ;;  %v97_v24 = vpack.c.bf16 %v52_v18, %v47_v17  ;;  %v71_v32 = vld [vmem:[%s1429_s0 + $0x1c0] sm:$0xff]  ;;  %v68_v33 = vld [vmem:[%s1429_s0 + $0x1a8] sm:$0xff]  ;;  %v73_v34 = vld [vmem:[%s1429_s0 + $0x1d0] sm:$0xff] }
  0x1a   :  { %842 = vmatprep.subr.bf16.mxu1 %v970_v25  ;;  %v101_v25 = vpack.c.bf16 %v61_v20, %v56_v19  ;;  %v108_v38 = vpack.c.bf16 %v73_v34, %v68_v33  ;;  %v65_v40 = vld [vmem:[%s1429_s0 + $0x190] sm:$0xff]  ;;  %v67_v42 = vld [vmem:[%s1429_s0 + $0x1a0] sm:$0xff]  ;;  %v72_v43 = vld [vmem:[%s1429_s0 + $0x1c8] sm:$0xff] }
  0x1b   :  { %v107_v47 = vpack.c.bf16 %v72_v43, %v67_v42  ;;  %v19_v54 = vld [vmem:[%s1429_s0 + $0x20] sm:$0xff]  ;;  %v24_v55 = vld [vmem:[%s1429_s0 + $0x48] sm:$0xff]  ;;  %v49_v7 = vld [vmem:[%s1429_s0 + $0x110] sm:$0xff] }
  0x1c   :  { %785 = vmatpush3.bf16.msra.mxu0 %v971_v26  ;;  %v103_v26 = vpack.c.bf16 %v63_v22, %v58_v21  ;;  %v59_v56 = vld [vmem:[%s1429_s0 + $0x160] sm:$0xff]  ;;  %v64_v57 = vld [vmem:[%s1429_s0 + $0x188] sm:$0xff]  ;;  %v84_v58 = vpack.c.bf16 %v24_v55, %v19_v54  ;;  %v54_v8 = vld [vmem:[%s1429_s0 + $0x138] sm:$0xff] }
  0x1d   :  { %843 = vmatpush3.bf16.msra.mxu1 %v972_v27  ;;  %786 = vmatprep.subr.bf16.mxu0 %v973_v28  ;;  %v55_v27 = vld [vmem:[%s1429_s0 + $0x140] sm:$0xff]  ;;  %v60_v28 = vld [vmem:[%s1429_s0 + $0x168] sm:$0xff]  ;;  %v104_v59 = vpack.c.bf16 %v64_v57, %v59_v56  ;;  %v99_v9 = vpack.c.bf16 %v54_v8, %v49_v7 }
  0x1e   :  { %844 = vmatprep.subr.bf16.mxu1 %v974_v29  ;;  %v57_v29 = vld [vmem:[%s1429_s0 + $0x150] sm:$0xff]  ;;  %v100_v35 = vpack.c.bf16 %v60_v28, %v55_v27  ;;  %v39_v2 = vld [vmem:[%s1429_s0 + $0xc0] sm:$0xff]  ;;  %v44_v3 = vld [vmem:[%s1429_s0 + $0xe8] sm:$0xff] }
  0x1f   :  { %v94_v5 = vpack.c.bf16 %v44_v3, %v39_v2 }
  0x20   :  { %787 = vmatpush3.bf16.msra.mxu0 %v975_v30  ;;  %v62_v30 = vld [vmem:[%s1429_s0 + $0x178] sm:$0xff] }
  0x21   :  { %845 = vmatpush3.bf16.msra.mxu1 %v976_v31  ;;  %899 = vmatprep.subr.bf16.mxu0 %v981_v39  ;;  %v66_v31 = vld [vmem:[%s1429_s0 + $0x198] sm:$0xff]  ;;  %v102_v36 = vpack.c.bf16 %v62_v30, %v57_v29 }
  0x22   :  { %935 = vmatprep.subr.bf16.mxu1 %v981_v39  ;;  %v106_v37 = vpack.c.bf16 %v71_v32, %v66_v31 }
  0x23   :  { %465 = vmatmul.mubr.bf16.vlgmr.msra.gmra.mrb[0].mxu0 %v80_v41  ;;  %v70_v41 = vld [vmem:[%s1429_s0 + $0x1b8] sm:$0xff] }
  0x24   :  { %553 = vmatmul.mubr.bf16.vlgmr.msra.gmra.mrb[0].mxu1 %v82_v44  ;;  %900 = vmatpush3.bf16.msra.mxu0 %v977_v45  ;;  %v76_v44 = vld [vmem:[%s1429_s0 + $0x1e8] sm:$0x3]  ;;  %v105_v46 = vpack.c.bf16 %v70_v41, %v65_v40 }
  0x25   :  { %939 = vmatpush3.bf16.msra.mxu1 %v977_v45  ;;  %901 = vmatprep.subr.bf16.mxu0 %v981_v39  ;;  %v78_v45 = vld [vmem:[%s1429_s0 + $0x1f8] sm:$0x3]  ;;  %v111_v48 = vpack.c.bf16 %v76_v44, %v76_v44 }
  0x26   :  { %472 = vmatprep.mubr.bf16.mxu0 %v86_v50  ;;  %560 = vmatprep.mubr.bf16.mxu1 %v88_v51  ;;  %v113_v49 = vpack.c.bf16 %v78_v45, %v78_v45  ;;  %v75_v50 = vld [vmem:[%s1429_s0 + $0x1e0] sm:$0x3]  ;;  %v77_v51 = vld [vmem:[%s1429_s0 + $0x1f0] sm:$0x3] }
  0x27   :  { %936 = vmatprep.subr.bf16.mxu1 %v981_v39  ;;  %v110_v52 = vpack.c.bf16 %v75_v50, %v75_v50  ;;  %v112_v53 = vpack.c.bf16 %v77_v51, %v77_v51 }
  0x28   :  { %902 = vmatpush3.bf16.msra.mxu0 %v978_v61 }
  0x29   :  { %940 = vmatpush3.bf16.msra.mxu1 %v978_v61  ;;  %903 = vmatprep.subr.bf16.mxu0 %v981_v39  ;;  %v34_v61 = vld [vmem:[%s1429_s0 + $0x98] sm:$0xff] }
  0x2a   :  { %937 = vmatprep.subr.bf16.mxu1 %v981_v39 }
  0x2b   :  { %473 = vmatmul.mubr.bf16.gmra.mrb[4].mxu0 %v85_v60  ;;  %v29_v60 = vld [vmem:[%s1429_s0 + $0x70] sm:$0xff] }
  0x2c   :  { %561 = vmatmul.mubr.bf16.gmra.mrb[4].mxu1 %v87_v62  ;;  %480 = vmatprep.mubr.bf16.mxu0 %v91_v63  ;;  %v69_v62 = vld [vmem:[%s1429_s0 + $0x1b0] sm:$0xff]  ;;  %v74_v63 = vld [vmem:[%s1429_s0 + $0x1d8] sm:$0xff] }
  0x2d   :  { %568 = vmatprep.mubr.bf16.mxu1 %v93_v0  ;;  %904 = vmatpush3.bf16.msra.mxu0 %v979_v4  ;;  %v89_v0 = vpack.c.bf16 %v34_v61, %v29_v60  ;;  %v109_v1 = vpack.c.bf16 %v74_v63, %v69_v62 }
  0x2e   :  { %941 = vmatpush3.bf16.msra.mxu1 %v979_v4  ;;  %905 = vmatprep.subr.bf16.mxu0 %v981_v39  ;;  %v79_v4 = vld [vmem:[%s1429_s0 + $0x200] sm:$0x3] }
  0x2f   :  { %938 = vmatprep.subr.bf16.mxu1 %v981_v39  ;;  %v114_v6 = vpack.c.bf16 %v79_v4, %v79_v4 }
  0x31   :  { %906 = vmatpush3.bf16.msra.mxu0 %v980_v14 }
  0x32   :  { %942 = vmatpush3.bf16.msra.mxu1 %v980_v14 }
  0x33   :  { %481 = vmatmul.mubr.bf16.gmra.mrb[8].mxu0 %v90_v10 }
  0x34   :  { %569 = vmatmul.mubr.bf16.gmra.mrb[8].mxu1 %v92_v11  ;;  %488 = vmatprep.mubr.bf16.mxu0 %v96_v12  ;;  %v1338_v11 = vld [vmem:[%s1430_s2] ss:$0 sm:$0xff] }
  0x35   :  { %576 = vmatprep.mubr.bf16.mxu1 %v98_v13 }
  0x3b   :  { %489 = vmatmul.mubr.bf16.gmra.mrb[12].mxu0 %v95_v23 }
  0x3c   :  { %577 = vmatmul.mubr.bf16.gmra.mrb[12].mxu1 %v97_v24  ;;  %496 = vmatprep.mubr.bf16.mxu0 %v101_v25 }
  0x3d   :  { %584 = vmatprep.mubr.bf16.mxu1 %v103_v26 }
  0x43   :  { %497 = vmatmul.mubr.bf16.gmra.mrb[16].mxu0 %v100_v35 }
  0x44   :  { %585 = vmatmul.mubr.bf16.gmra.mrb[16].mxu1 %v102_v36  ;;  %504 = vmatprep.mubr.bf16.mxu0 %v106_v37 }
  0x45   :  { %592 = vmatprep.mubr.bf16.mxu1 %v108_v38 }
  0x4b   :  { %505 = vmatmul.mubr.bf16.gmra.mrb[20].mxu0 %v105_v46 }
  0x4c   :  { %593 = vmatmul.mubr.bf16.gmra.mrb[20].mxu1 %v107_v47  ;;  %512 = vmatprep.mubr.bf16.mxu0 %v111_v48 }
  0x4d   :  { %600 = vmatprep.mubr.bf16.mxu1 %v113_v49 }
  0x53   :  { %513 = vmatmul.mubr.bf16.gmra.mrb[24].mxu0 %v110_v52 }
  0x54   :  { %601 = vmatmul.mubr.bf16.gmra.mrb[24].mxu1 %v112_v53  ;;  %907 = vmatprep.mubr.msk.bf16.mxu0 %vm982_vm0, %v981_v39 }
  0x55   :  { %923 = vmatprep.mubr.msk.bf16.mxu1 %vm982_vm0, %v981_v39 }
  0x5b   :  { %908 = vmatmul.mubr.msk.bf16.vlgmr.msra.gmra.mrb[28].mxu0 %vm410_vm1, %v84_v58 }
  0x5c   :  { %924 = vmatmul.mubr.msk.bf16.vlgmr.msra.gmra.mrb[28].mxu1 %vm410_vm1, %v104_v59  ;;  %911 = vmatprep.mubr.msk.bf16.mxu0 %vm982_vm0, %v981_v39 }
  0x5d   :  { %927 = vmatprep.mubr.msk.bf16.mxu1 %vm982_vm0, %v981_v39 }
  0x63   :  { %912 = vmatmul.mubr.msk.bf16.gmra.mrb[32].mxu0 %vm410_vm1, %v89_v0 }
  0x64   :  { %928 = vmatmul.mubr.msk.bf16.gmra.mrb[32].mxu1 %vm410_vm1, %v109_v1  ;;  %915 = vmatprep.mubr.msk.bf16.mxu0 %vm982_vm0, %v981_v39 }
  0x65   :  { %931 = vmatprep.mubr.msk.bf16.mxu1 %vm982_vm0, %v981_v39 }
  0x6b   :  { %916 = vmatmul.mubr.msk.bf16.gmra.mrb[36].mxu0 %vm410_vm1, %v94_v5 }
  0x6c   :  { %932 = vmatmul.mubr.msk.bf16.gmra.mrb[36].mxu1 %vm410_vm1, %v114_v6  ;;  %919 = vmatprep.mubr.msk.bf16.mxu0 %vm982_vm0, %v981_v39 }
  0x73   :  { %920 = vmatmul.mubr.msk.bf16.gmra.mrb[40].mxu0 %vm410_vm1, %v99_v9 }
  0xf6   :  { %v788_v10 = vpop.f32.mrb[0].mxu0 }
  0xf7   :  { %v789_v12 = vpop.f32.mrb[1].mxu0  ;;  %v846_v13 = vpop.f32.mrb[0].mxu1 }
  0xf8   :  { %v790_v39 = vadd.f32 %v789_v12, %v788_v10  ;;  %v791_v14 = vpop.f32.mrb[2].mxu0  ;;  %v847_v15 = vpop.f32.mrb[1].mxu1 }
  0xf9   :  { %v792_v16 = vpop.f32.mrb[3].mxu0  ;;  %v848_v17 = vadd.f32 %v847_v15, %v846_v13  ;;  %v849_v18 = vpop.f32.mrb[2].mxu1 }
  0xfa   :  { %v467_v19 = vadd.f32 %v790_v39, %v1338_v11  ;;  %v793_v20 = vadd.f32 %v792_v16, %v791_v14  ;;  %v850_v21 = vpop.f32.mrb[3].mxu1 }
  0xfb   :  { %v851_v22 = vadd.f32 %v850_v21, %v849_v18 }
  0xfc   :  { %v470_v23 = vadd.f32 %v793_v20, %v1338_v11  ;;  %v1342_v24 = vadd.f32 %v848_v17, %v467_v19 }
  0xfe   :  { %v794_v25 = vpop.f32.mrb[4].mxu0  ;;  %v1344_v26 = vadd.f32 %v851_v22, %v470_v23 }
  0xff   :  { %v795_v27 = vpop.f32.mrb[5].mxu0  ;;  %v852_v28 = vpop.f32.mrb[4].mxu1 }
 0x100   :  { %v796_v29 = vadd.f32 %v795_v27, %v794_v25  ;;  %v797_v30 = vpop.f32.mrb[6].mxu0  ;;  %v853_v31 = vpop.f32.mrb[5].mxu1 }
 0x101   :  { %v798_v32 = vpop.f32.mrb[7].mxu0  ;;  %v854_v33 = vadd.f32 %v853_v31, %v852_v28  ;;  %v855_v34 = vpop.f32.mrb[6].mxu1 }
 0x102   :  { %v475_v35 = vadd.f32 %v796_v29, %v1338_v11  ;;  %v799_v36 = vadd.f32 %v798_v32, %v797_v30  ;;  %v856_v37 = vpop.f32.mrb[7].mxu1 }
 0x103   :  { %v857_v38 = vadd.f32 %v856_v37, %v855_v34 }
 0x104   :  { %v478_v40 = vadd.f32 %v799_v36, %v1338_v11  ;;  %v1348_v41 = vadd.f32 %v854_v33, %v475_v35 }
 0x106   :  { %v800_v42 = vpop.f32.mrb[8].mxu0  ;;  %v1350_v43 = vadd.f32 %v857_v38, %v478_v40 }
 0x107   :  { %v801_v44 = vpop.f32.mrb[9].mxu0  ;;  %v858_v45 = vpop.f32.mrb[8].mxu1 }
 0x108   :  { %v802_v46 = vadd.f32 %v801_v44, %v800_v42  ;;  %v803_v47 = vpop.f32.mrb[10].mxu0  ;;  %v859_v48 = vpop.f32.mrb[9].mxu1 }
 0x109   :  { %v804_v49 = vpop.f32.mrb[11].mxu0  ;;  %v860_v50 = vadd.f32 %v859_v48, %v858_v45  ;;  %v861_v51 = vpop.f32.mrb[10].mxu1 }
 0x10a   :  { %v483_v52 = vadd.f32 %v802_v46, %v1338_v11  ;;  %v805_v53 = vadd.f32 %v804_v49, %v803_v47  ;;  %v862_v54 = vpop.f32.mrb[11].mxu1 }
 0x10b   :  { %v863_v55 = vadd.f32 %v862_v54, %v861_v51 }
 0x10c   :  { %v486_v56 = vadd.f32 %v805_v53, %v1338_v11  ;;  %v1354_v57 = vadd.f32 %v860_v50, %v483_v52 }
 0x10e   :  { %v806_v58 = vpop.f32.mrb[12].mxu0  ;;  %v1356_v59 = vadd.f32 %v863_v55, %v486_v56 }
 0x10f   :  { %v807_v60 = vpop.f32.mrb[13].mxu0  ;;  %v864_v61 = vpop.f32.mrb[12].mxu1 }
 0x110   :  { %v808_v62 = vadd.f32 %v807_v60, %v806_v58  ;;  %v809_v63 = vpop.f32.mrb[14].mxu0  ;;  %v865_v0 = vpop.f32.mrb[13].mxu1 }
 0x111   :  { %v810_v1 = vpop.f32.mrb[15].mxu0  ;;  %v866_v2 = vadd.f32 %v865_v0, %v864_v61  ;;  %v867_v3 = vpop.f32.mrb[14].mxu1 }
 0x112   :  { %v491_v4 = vadd.f32 %v808_v62, %v1338_v11  ;;  %v811_v5 = vadd.f32 %v810_v1, %v809_v63  ;;  %v868_v6 = vpop.f32.mrb[15].mxu1 }
 0x113   :  { %v869_v7 = vadd.f32 %v868_v6, %v867_v3 }
 0x114   :  { %v494_v8 = vadd.f32 %v811_v5, %v1338_v11  ;;  %v1360_v9 = vadd.f32 %v866_v2, %v491_v4 }
 0x116   :  { %v812_v10 = vpop.f32.mrb[16].mxu0  ;;  %v1362_v12 = vadd.f32 %v869_v7, %v494_v8 }
 0x117   :  { %v813_v13 = vpop.f32.mrb[17].mxu0  ;;  %v870_v39 = vpop.f32.mrb[16].mxu1 }
 0x118   :  { %v814_v14 = vadd.f32 %v813_v13, %v812_v10  ;;  %v815_v15 = vpop.f32.mrb[18].mxu0  ;;  %v871_v16 = vpop.f32.mrb[17].mxu1 }
 0x119   :  { %v816_v17 = vpop.f32.mrb[19].mxu0  ;;  %v872_v18 = vadd.f32 %v871_v16, %v870_v39  ;;  %v873_v19 = vpop.f32.mrb[18].mxu1 }
 0x11a   :  { %v499_v20 = vadd.f32 %v814_v14, %v1338_v11  ;;  %v817_v21 = vadd.f32 %v816_v17, %v815_v15  ;;  %v874_v22 = vpop.f32.mrb[19].mxu1 }
 0x11b   :  { %v875_v23 = vadd.f32 %v874_v22, %v873_v19 }
 0x11c   :  { %v502_v25 = vadd.f32 %v817_v21, %v1338_v11  ;;  %v587_v27 = vadd.f32 %v872_v18, %v499_v20 }
 0x11e   :  { %v818_v28 = vpop.f32.mrb[20].mxu0  ;;  %v590_v29 = vadd.f32 %v875_v23, %v502_v25 }
 0x11f   :  { %v819_v30 = vpop.f32.mrb[21].mxu0  ;;  %v876_v31 = vpop.f32.mrb[20].mxu1 }
 0x120   :  { %v820_v32 = vadd.f32 %v819_v30, %v818_v28  ;;  %v821_v33 = vpop.f32.mrb[22].mxu0  ;;  %v877_v34 = vpop.f32.mrb[21].mxu1 }
 0x121   :  { %v822_v35 = vpop.f32.mrb[23].mxu0  ;;  %v878_v36 = vadd.f32 %v877_v34, %v876_v31  ;;  %v879_v37 = vpop.f32.mrb[22].mxu1 }
 0x122   :  { %v507_v38 = vadd.f32 %v820_v32, %v1338_v11  ;;  %v823_v40 = vadd.f32 %v822_v35, %v821_v33  ;;  %v880_v42 = vpop.f32.mrb[23].mxu1 }
 0x123   :  { %v881_v44 = vadd.f32 %v880_v42, %v879_v37 }
 0x124   :  { %v510_v45 = vadd.f32 %v823_v40, %v1338_v11  ;;  %v595_v46 = vadd.f32 %v878_v36, %v507_v38 }
 0x126   :  { %v824_v47 = vpop.f32.mrb[24].mxu0  ;;  %v598_v48 = vadd.f32 %v881_v44, %v510_v45 }
 0x127   :  { %v825_v49 = vpop.f32.mrb[25].mxu0  ;;  %v882_v50 = vpop.f32.mrb[24].mxu1 }
 0x128   :  { %v826_v51 = vadd.f32 %v825_v49, %v824_v47  ;;  %v827_v52 = vpop.f32.mrb[26].mxu0  ;;  %v883_v53 = vpop.f32.mrb[25].mxu1 }
 0x129   :  { %v828_v54 = vpop.f32.mrb[27].mxu0  ;;  %v884_v55 = vadd.f32 %v883_v53, %v882_v50  ;;  %v885_v56 = vpop.f32.mrb[26].mxu1 }
 0x12a   :  { %v515_v58 = vadd.f32 %v826_v51, %v1338_v11  ;;  %v886_v60 = vpop.f32.mrb[27].mxu1 }
 0x12c   :  { %v603_v61 = vadd.f32 %v884_v55, %v515_v58 }
 0x12e   :  { %v642_v62 = vpop.f32.mrb[28].mxu0 }
 0x12f   :  { %v643_v63 = vadd.f32 %v642_v62, %v1342_v24  ;;  %v674_v0 = vpop.f32.mrb[28].mxu1  ;;  %v909_v1 = vpop.f32.mrb[29].mxu0 }
 0x130   :  { %v675_v2 = vadd.f32 %v674_v0, %v587_v27  ;;  %v925_v3 = vpop.f32.mrb[29].mxu1  ;;  %v645_v4 = vpop.f32.mrb[30].mxu0 }
 0x131   :  { %v696_v5 = vmax.f32 %v643_v63, 0.0  ;;  %v646_v6 = vadd.f32 %v645_v4, %v1344_v26  ;;  %v677_v7 = vpop.f32.mrb[30].mxu1  ;;  %v910_v8 = vpop.f32.mrb[31].mxu0 }
 0x132   :  { %v704_v10 = vmax.f32 %v675_v2, 0.0  ;;  %v678_v13 = vadd.f32 %v677_v7, %v590_v29  ;;  %v926_v39 = vpop.f32.mrb[31].mxu1 }
 0x133   :  { %710 = vst.msk [vmem:[%s1431_s3] sm:$0xff] %vm709_vm2, %v696_v5  ;;  %v697_v11 = vmax.f32 %v646_v6, 0.0 }
 0x134   :  { %718 = vst.msk [vmem:[%s1431_s3 + $0x40] sm:$0xff] %vm709_vm2, %v704_v10  ;;  %v705_v24 = vmax.f32 %v678_v13, 0.0 }
 0x135   :  { %711 = vst.msk [vmem:[%s1431_s3 + $0x8] sm:$0xff] %vm709_vm2, %v697_v11 }
 0x136   :  { %719 = vst.msk [vmem:[%s1431_s3 + $0x48] sm:$0xff] %vm709_vm2, %v705_v24  ;;  %v650_v26 = vpop.f32.mrb[32].mxu0 }
 0x137   :  { %v651_v14 = vadd.f32 %v650_v26, %v1348_v41  ;;  %v682_v15 = vpop.f32.mrb[32].mxu1  ;;  %v913_v16 = vpop.f32.mrb[33].mxu0 }
 0x138   :  { %v683_v17 = vadd.f32 %v682_v15, %v595_v46  ;;  %v929_v18 = vpop.f32.mrb[33].mxu1  ;;  %v653_v19 = vpop.f32.mrb[34].mxu0 }
 0x139   :  { %v698_v20 = vmax.f32 %v651_v14, 0.0  ;;  %v654_v21 = vadd.f32 %v653_v19, %v1350_v43  ;;  %v685_v22 = vpop.f32.mrb[34].mxu1  ;;  %v914_v23 = vpop.f32.mrb[35].mxu0 }
 0x13a   :  { %v706_v25 = vmax.f32 %v683_v17, 0.0  ;;  %v686_v27 = vadd.f32 %v685_v22, %v598_v48  ;;  %v930_v28 = vpop.f32.mrb[35].mxu1 }
 0x13b   :  { %712 = vst.msk [vmem:[%s1431_s3 + $0x10] sm:$0xff] %vm709_vm2, %v698_v20  ;;  %v699_v29 = vmax.f32 %v654_v21, 0.0 }
 0x13c   :  { %720 = vst.msk [vmem:[%s1431_s3 + $0x50] sm:$0xff] %vm709_vm2, %v706_v25  ;;  %v707_v41 = vmax.f32 %v686_v27, 0.0 }
 0x13d   :  { %713 = vst.msk [vmem:[%s1431_s3 + $0x18] sm:$0xff] %vm709_vm2, %v699_v29 }
 0x13e   :  { %721 = vst.msk [vmem:[%s1431_s3 + $0x58] sm:$0xff] %vm709_vm2, %v707_v41  ;;  %v658_v43 = vpop.f32.mrb[36].mxu0 }
 0x13f   :  { %v659_v30 = vadd.f32 %v658_v43, %v1354_v57  ;;  %v690_v31 = vpop.f32.mrb[36].mxu1  ;;  %v917_v32 = vpop.f32.mrb[37].mxu0 }
 0x140   :  { %v691_v33 = vadd.f32 %v690_v31, %v603_v61  ;;  %v661_v34 = vpop.f32.mrb[38].mxu0  ;;  %v933_v35 = vpop.f32.mrb[37].mxu1 }
 0x141   :  { %v700_v36 = vmax.f32 %v659_v30, 0.0  ;;  %v662_v37 = vadd.f32 %v661_v34, %v1356_v59  ;;  %v918_v38 = vpop.f32.mrb[39].mxu0  ;;  %v693_v40 = vpop.f32.mrb[38].mxu1 }
 0x142   :  { %v708_v42 = vmax.f32 %v691_v33, 0.0  ;;  %v934_v44 = vpop.f32.mrb[39].mxu1 }
 0x143   :  { %714 = vst.msk [vmem:[%s1431_s3 + $0x20] sm:$0xff] %vm709_vm2, %v700_v36  ;;  %v701_v45 = vmax.f32 %v662_v37, 0.0 }
 0x144   :  { %723 = vst.msk [vmem:[%s1431_s3 + $0x60] sm:$0x3] %vm722_vm3, %v708_v42 }
 0x145   :  { %715 = vst.msk [vmem:[%s1431_s3 + $0x28] sm:$0xff] %vm709_vm2, %v701_v45 }
 0x146   :  { %v666_v57 = vpop.f32.mrb[40].mxu0 }
 0x147   :  { %v667_v59 = vadd.f32 %v666_v57, %v1360_v9  ;;  %v921_v46 = vpop.f32.mrb[41].mxu0 }
 0x148   :  { %v669_v47 = vpop.f32.mrb[42].mxu0 }
 0x149   :  { %v702_v48 = vmax.f32 %v667_v59, 0.0  ;;  %v670_v49 = vadd.f32 %v669_v47, %v1362_v12  ;;  %v922_v50 = vpop.f32.mrb[43].mxu0 }
 0x14b   :  { %716 = vst.msk [vmem:[%s1431_s3 + $0x30] sm:$0xff] %vm709_vm2, %v702_v48  ;;  %v703_v51 = vmax.f32 %v670_v49, 0.0 }
 0x14d   :  { %717 = vst.msk [vmem:[%s1431_s3 + $0x38] sm:$0xff] %vm709_vm2, %v703_v51 }

// kernel: cnn_base_forward.7
= control target key start
LH: loop header
LB: loop body
LE: loop exit
PB: predicated region body
PF: predicated region fallthrough
CT: control target
= control target key end

     0   :  { %s6024_s0 = inlined_call_operand.vmem [shape: f32[2,1568], index: 0, kind: input, shape index: {}]   ;;  %s6025_s1 = inlined_call_operand.vmem [shape: bf16[1568,512], index: 1, kind: input, shape index: {}]   ;;  %s6026_s2 = inlined_call_operand.vmem [shape: f32[1,512], index: 2, kind: input, shape index: {}]   ;;  %s6027_s3 = inlined_call_operand.vmem [shape: f32[512,1], index: 3, kind: input, shape index: {}]   ;;  %s6028_s4 = inlined_call_operand.<no memory space> [shape: f32[1,1], index: 4, kind: input, shape index: {}]   ;;  %s6029_s5 = inlined_call_operand.hbm [shape: f32[2,512], index: 5, kind: output, shape index: {0}]   ;;  %s6030_s6 = inlined_call_operand.vmem [shape: f32[2,1], index: 6, kind: output, shape index: {1}]  }
   0x1   :  { %v12_v0 = vstv %s6028_s4 }
   0x2   :  { %13 = vst [vmem:[#allocation2] sm:$0x1] %v12_v0 }
   0x3   :  { %v3913_v1 = vld [vmem:[%s6025_s1 + $0x4] ss:$16 sps:$4 sm:$0xff]   ;;  %v3915_v2 = vld [vmem:[%s6025_s1 + $0xc] ss:$16 sps:$4 sm:$0xff]   ;;  %v3917_v3 = vld [vmem:[%s6025_s1] ss:$16 sps:$4 sm:$0xff]   ;;  %v38_v39 = vlaneseq }
   0x4   :  { %2496 = vmatprep.subr.bf16.mxu0 %v3913_v1  ;;  %v3918_v4 = vld [vmem:[%s6025_s1 + $0x8] ss:$16 sps:$4 sm:$0xff]   ;;  %2783 = vmatprep.subr.bf16.mxu1 %v3915_v2  ;;  %v3919_v5 = vld [vmem:[%s6025_s1 + $0x24] ss:$16 sps:$4 sm:$0xff]   ;;  %v3921_v6 = vld [vmem:[%s6025_s1 + $0x2c] ss:$16 sps:$4 sm:$0xff]  }
   0x5   :  { %2497 = vmatpush1.bf16.msra.mxu0 %v3917_v3  ;;  %2784 = vmatpush1.bf16.msra.mxu1 %v3918_v4  ;;  %v3923_v7 = vld [vmem:[%s6025_s1 + $0x20] ss:$16 sps:$4 sm:$0xff]   ;;  %v3924_v8 = vld [vmem:[%s6025_s1 + $0x28] ss:$16 sps:$4 sm:$0xff]   ;;  %v3925_v9 = vld [vmem:[%s6025_s1 + $0x44] ss:$16 sps:$4 sm:$0xff]  }
   0x6   :  { %2498 = vmatprep.subr.bf16.mxu0 %v3919_v5  ;;  %2785 = vmatprep.subr.bf16.mxu1 %v3921_v6  ;;  %v3927_v10 = vld [vmem:[%s6025_s1 + $0x4c] ss:$16 sps:$4 sm:$0xff]   ;;  %v3929_v11 = vld [vmem:[%s6025_s1 + $0x40] ss:$16 sps:$4 sm:$0xff]   ;;  %v3930_v12 = vld [vmem:[%s6025_s1 + $0x48] ss:$16 sps:$4 sm:$0xff]  }
   0x7   :  { %v3931_v13 = vld [vmem:[%s6025_s1 + $0x64] ss:$16 sps:$4 sm:$0xff]   ;;  %v3933_v14 = vld [vmem:[%s6025_s1 + $0x6c] ss:$16 sps:$4 sm:$0xff]   ;;  %v3935_v15 = vld [vmem:[%s6025_s1 + $0x60] ss:$16 sps:$4 sm:$0xff]  }
   0x8   :  { %v3936_v16 = vld [vmem:[%s6025_s1 + $0x68] ss:$16 sps:$4 sm:$0xff]   ;;  %v3937_v17 = vld [vmem:[%s6025_s1 + $0x84] ss:$16 sps:$4 sm:$0xff]   ;;  %v3939_v18 = vld [vmem:[%s6025_s1 + $0x8c] ss:$16 sps:$4 sm:$0xff]  }
   0x9   :  { %2499 = vmatpush1.bf16.msra.mxu0 %v3923_v7  ;;  %2786 = vmatpush1.bf16.msra.mxu1 %v3924_v8  ;;  %v3941_v19 = vld [vmem:[%s6025_s1 + $0x80] ss:$16 sps:$4 sm:$0xff]   ;;  %v3942_v20 = vld [vmem:[%s6025_s1 + $0x88] ss:$16 sps:$4 sm:$0xff]   ;;  %v3943_v21 = vld [vmem:[%s6025_s1 + $0xa4] ss:$16 sps:$4 sm:$0xff]  }
   0xa   :  { %2500 = vmatprep.subr.bf16.mxu0 %v3925_v9  ;;  %2787 = vmatprep.subr.bf16.mxu1 %v3927_v10  ;;  %v3945_v22 = vld [vmem:[%s6025_s1 + $0xac] ss:$16 sps:$4 sm:$0xff]   ;;  %v3947_v23 = vld [vmem:[%s6025_s1 + $0xa0] ss:$16 sps:$4 sm:$0xff]   ;;  %v3948_v24 = vld [vmem:[%s6025_s1 + $0xa8] ss:$16 sps:$4 sm:$0xff]  }
   0xb   :  { %v3949_v25 = vld [vmem:[%s6025_s1 + $0xc4] ss:$16 sps:$4 sm:$0xff]   ;;  %v3951_v26 = vld [vmem:[%s6025_s1 + $0xcc] ss:$16 sps:$4 sm:$0xff]   ;;  %v3953_v27 = vld [vmem:[%s6025_s1 + $0xc0] ss:$16 sps:$4 sm:$0xff]  }
   0xc   :  { %v3954_v28 = vld [vmem:[%s6025_s1 + $0xc8] ss:$16 sps:$4 sm:$0xff]   ;;  %v3955_v29 = vld [vmem:[%s6025_s1 + $0xe4] ss:$16 sps:$4 sm:$0xff]   ;;  %v3957_v30 = vld [vmem:[%s6025_s1 + $0xec] ss:$16 sps:$4 sm:$0xff]  }
   0xd   :  { %2501 = vmatpush1.bf16.msra.mxu0 %v3929_v11  ;;  %2788 = vmatpush1.bf16.msra.mxu1 %v3930_v12  ;;  %v3959_v31 = vld [vmem:[%s6025_s1 + $0xe0] ss:$16 sps:$4 sm:$0xff]   ;;  %v3960_v32 = vld [vmem:[%s6025_s1 + $0xe8] ss:$16 sps:$4 sm:$0xff]   ;;  %v3961_v33 = vld [vmem:[%s6025_s1 + $0x104] ss:$16 sps:$4 sm:$0xff]  }
   0xe   :  { %2502 = vmatprep.subr.bf16.mxu0 %v3931_v13  ;;  %2789 = vmatprep.subr.bf16.mxu1 %v3933_v14  ;;  %v3963_v34 = vld [vmem:[%s6025_s1 + $0x10c] ss:$16 sps:$4 sm:$0xff]   ;;  %v3965_v35 = vld [vmem:[%s6025_s1 + $0x100] ss:$16 sps:$4 sm:$0xff]   ;;  %v3966_v36 = vld [vmem:[%s6025_s1 + $0x108] ss:$16 sps:$4 sm:$0xff]  }
   0xf   :  { %v4528_v37 = vmov 1983009808   ;;  %v3967_v40 = vld [vmem:[%s6025_s1 + $0x124] ss:$16 sps:$4 sm:$0xff]   ;;  %v3969_v41 = vld [vmem:[%s6025_s1 + $0x12c] ss:$16 sps:$4 sm:$0xff]  }
  0x10   :  { %v36_v38 = vunpack.c.l.s4 %v4528_v37  ;;  %v3971_v42 = vld [vmem:[%s6025_s1 + $0x120] ss:$16 sps:$4 sm:$0xff]   ;;  %v4686_v44 = vshrl.u32 %v38_v39, 7  ;;  %v3972_v45 = vld [vmem:[%s6025_s1 + $0x128] ss:$16 sps:$4 sm:$0xff]  }
  0x11   :  { %2503 = vmatpush1.bf16.msra.mxu0 %v3935_v15  ;;  %2790 = vmatpush1.bf16.msra.mxu1 %v3936_v16  ;;  %v3973_v46 = vld [vmem:[%s6025_s1 + $0x144] ss:$16 sps:$4 sm:$0xff]   ;;  %v3975_v47 = vld [vmem:[%s6025_s1 + $0x14c] ss:$16 sps:$4 sm:$0xff]   ;;  %v3977_v48 = vld [vmem:[%s6025_s1 + $0x140] ss:$16 sps:$4 sm:$0xff]  }
  0x12   :  { %2504 = vmatprep.subr.bf16.mxu0 %v3937_v17  ;;  %2791 = vmatprep.subr.bf16.mxu1 %v3939_v18  ;;  %v37_v43 = vunpack.c.0.s8 %v36_v38  ;;  %v3978_v49 = vld [vmem:[%s6025_s1 + $0x148] ss:$16 sps:$4 sm:$0xff]   ;;  %v3979_v51 = vld [vmem:[%s6025_s1 + $0x164] ss:$16 sps:$4 sm:$0xff]   ;;  %v3981_v52 = vld [vmem:[%s6025_s1 + $0x16c] ss:$16 sps:$4 sm:$0xff]  }
  0x13   :  { %v26_v53 = vld [vmem:[%s6024_s0] sm:$0xff]  ;;  %v3984_v56 = vld [vmem:[%s6025_s1 + $0x168] ss:$16 sps:$4 sm:$0xff]   ;;  %v3987_v58 = vld [vmem:[%s6025_s1 + $0x18c] ss:$16 sps:$4 sm:$0xff]  }
  0x14   :  { %v4704_v50 = vsub.s32 %v37_v43, %v4686_v44  ;;  %v3983_v54 = vld [vmem:[%s6025_s1 + $0x160] ss:$16 sps:$4 sm:$0xff]   ;;  %v3985_v57 = vld [vmem:[%s6025_s1 + $0x184] ss:$16 sps:$4 sm:$0xff]   ;;  %v3990_v62 = vld [vmem:[%s6025_s1 + $0x188] ss:$16 sps:$4 sm:$0xff]   ;;  %v34_v5 = vcombine.high %v26_v53, %v26_v53 }
  0x15   :  { %2505 = vmatpush1.bf16.msra.mxu0 %v3941_v19  ;;  %2792 = vmatpush1.bf16.msra.mxu1 %v3942_v20  ;;  %v3989_v60 = vld [vmem:[%s6025_s1 + $0x180] ss:$16 sps:$4 sm:$0xff]   ;;  %v3991_v63 = vld [vmem:[%s6025_s1 + $0x1a4] ss:$16 sps:$4 sm:$0xff]   ;;  %v3993_v0 = vld [vmem:[%s6025_s1 + $0x1ac] ss:$16 sps:$4 sm:$0xff]  }
  0x16   :  { %2506 = vmatprep.subr.bf16.mxu0 %v3943_v21  ;;  %2793 = vmatprep.subr.bf16.mxu1 %v3945_v22  ;;  %v41_v55 = vrot.slane %v26_v53, %v4704_v50  ;;  %v3995_v1 = vld [vmem:[%s6025_s1 + $0x1a0] ss:$16 sps:$4 sm:$0xff]   ;;  %v3996_v2 = vld [vmem:[%s6025_s1 + $0x1a8] ss:$16 sps:$4 sm:$0xff]   ;;  %v3997_v3 = vld [vmem:[%s6025_s1 + $0x1c4] ss:$16 sps:$4 sm:$0xff]   ;;  %v4765_v10 = vrot.slane %v34_v5, %v4704_v50 }
  0x17   :  { %v3999_v4 = vld [vmem:[%s6025_s1 + $0x1cc] ss:$16 sps:$4 sm:$0xff]   ;;  %v4001_v6 = vld [vmem:[%s6025_s1 + $0x1c0] ss:$16 sps:$4 sm:$0xff]   ;;  %v4002_v7 = vld [vmem:[%s6025_s1 + $0x1c8] ss:$16 sps:$4 sm:$0xff]  }
  0x18   :  { %v49_v59 = vcombine.high %v41_v55, %v41_v55  ;;  %v4003_v8 = vld [vmem:[%s6025_s1 + $0x1e4] ss:$16 sps:$4 sm:$0xff]   ;;  %v4005_v9 = vld [vmem:[%s6025_s1 + $0x1ec] ss:$16 sps:$4 sm:$0xff]   ;;  %v4007_v11 = vld [vmem:[%s6025_s1 + $0x1e0] ss:$16 sps:$4 sm:$0xff]   ;;  %v50_v15 = vcombine.high %v4765_v10, %v4765_v10  ;;  %v105_v17 = vpack.c.bf16 %v41_v55, %v41_v55 }
  0x19   :  { %2507 = vmatpush1.bf16.msra.mxu0 %v3947_v23  ;;  %2794 = vmatpush1.bf16.msra.mxu1 %v3948_v24  ;;  %v4008_v12 = vld [vmem:[%s6025_s1 + $0x1e8] ss:$16 sps:$4 sm:$0xff]   ;;  %v4012_v13 = vld [vmem:[%s6025_s1 + $0x204] ss:$16 sps:$4 sm:$0xff]   ;;  %v4015_v14 = vld [vmem:[%s6025_s1 + $0x20c] ss:$16 sps:$4 sm:$0xff]  }
  0x1a   :  { %2508 = vmatprep.subr.bf16.mxu0 %v3949_v25  ;;  %2795 = vmatprep.subr.bf16.mxu1 %v3951_v26  ;;  %v106_v61 = vpack.c.bf16 %v49_v59, %v49_v59  ;;  %v4010_v16 = vld [vmem:[%s6025_s1 + $0x200] ss:$16 sps:$4 sm:$0xff]   ;;  %v4013_v18 = vld [vmem:[%s6025_s1 + $0x208] ss:$16 sps:$4 sm:$0xff]   ;;  %v4018_v19 = vld [vmem:[%s6025_s1 + $0x224] ss:$16 sps:$4 sm:$0xff]   ;;  %v108_v21 = vpack.c.bf16 %v50_v15, %v50_v15 }
  0x1b   :  { %v4021_v20 = vld [vmem:[%s6025_s1 + $0x22c] ss:$16 sps:$4 sm:$0xff]   ;;  %v4016_v22 = vld [vmem:[%s6025_s1 + $0x220] ss:$16 sps:$4 sm:$0xff]   ;;  %v4019_v23 = vld [vmem:[%s6025_s1 + $0x228] ss:$16 sps:$4 sm:$0xff]  }
  0x1c   :  { %2528 = vmatprep.mubr.bf16.mxu0 %v106_v61  ;;  %2815 = vmatprep.mubr.bf16.mxu1 %v106_v61  ;;  %v4024_v24 = vld [vmem:[%s6025_s1 + $0x244] ss:$16 sps:$4 sm:$0xff]   ;;  %v4027_v25 = vld [vmem:[%s6025_s1 + $0x24c] ss:$16 sps:$4 sm:$0xff]   ;;  %v4022_v26 = vld [vmem:[%s6025_s1 + $0x240] ss:$16 sps:$4 sm:$0xff]  }
  0x1d   :  { %2509 = vmatpush1.bf16.msra.mxu0 %v3953_v27  ;;  %2796 = vmatpush1.bf16.msra.mxu1 %v3954_v28  ;;  %v4025_v27 = vld [vmem:[%s6025_s1 + $0x248] ss:$16 sps:$4 sm:$0xff]   ;;  %v4030_v28 = vld [vmem:[%s6025_s1 + $0x264] ss:$16 sps:$4 sm:$0xff]   ;;  %v4045_v37 = vld [vmem:[%s6025_s1 + $0x2ac] ss:$16 sps:$4 sm:$0xff]  }
  0x1e   :  { %2510 = vmatprep.subr.bf16.mxu0 %v3955_v29  ;;  %2797 = vmatprep.subr.bf16.mxu1 %v3957_v30  ;;  %v4033_v29 = vld [vmem:[%s6025_s1 + $0x26c] ss:$16 sps:$4 sm:$0xff]   ;;  %v4028_v30 = vld [vmem:[%s6025_s1 + $0x260] ss:$16 sps:$4 sm:$0xff]   ;;  %v4043_v39 = vld [vmem:[%s6025_s1 + $0x2a8] ss:$16 sps:$4 sm:$0xff]  }
  0x1f   :  { %v4040_v38 = vld [vmem:[%s6025_s1 + $0x2a0] ss:$16 sps:$4 sm:$0xff]   ;;  %v4049_v43 = vld [vmem:[%s6025_s1 + $0x2c8] ss:$16 sps:$4 sm:$0xff]   ;;  %v4069_v55 = vld [vmem:[%s6025_s1 + $0x32c] ss:$16 sps:$4 sm:$0xff]  }
  0x20   :  { %v4061_v53 = vld [vmem:[%s6025_s1 + $0x308] ss:$16 sps:$4 sm:$0xff]   ;;  %v4075_v59 = vld [vmem:[%s6025_s1 + $0x34c] ss:$16 sps:$4 sm:$0xff]   ;;  %v4102_v15 = vld [vmem:[%s6025_s1 + $0x3e4] ss:$16 sps:$4 sm:$0xff]  }
  0x21   :  { %2511 = vmatpush1.bf16.msra.mxu0 %v3959_v31  ;;  %2798 = vmatpush1.bf16.msra.mxu1 %v3960_v32  ;;  %v4031_v31 = vld [vmem:[%s6025_s1 + $0x268] ss:$16 sps:$4 sm:$0xff]   ;;  %v4036_v32 = vld [vmem:[%s6025_s1 + $0x284] ss:$16 sps:$4 sm:$0xff]  }
  0x22   :  { %2512 = vmatprep.subr.bf16.mxu0 %v3961_v33  ;;  %2799 = vmatprep.subr.bf16.mxu1 %v3963_v34  ;;  %v4039_v33 = vld [vmem:[%s6025_s1 + $0x28c] ss:$16 sps:$4 sm:$0xff]   ;;  %v4034_v34 = vld [vmem:[%s6025_s1 + $0x280] ss:$16 sps:$4 sm:$0xff]   ;;  %v4073_v61 = vld [vmem:[%s6025_s1 + $0x348] ss:$16 sps:$4 sm:$0xff]  }
  0x23   :  { %v4085_v5 = vld [vmem:[%s6025_s1 + $0x388] ss:$16 sps:$4 sm:$0xff]  }
  0x25   :  { %2513 = vmatpush1.bf16.msra.mxu0 %v3965_v35  ;;  %2800 = vmatpush1.bf16.msra.mxu1 %v3966_v36  ;;  %v4037_v35 = vld [vmem:[%s6025_s1 + $0x288] ss:$16 sps:$4 sm:$0xff]   ;;  %v4042_v36 = vld [vmem:[%s6025_s1 + $0x2a4] ss:$16 sps:$4 sm:$0xff]  }
  0x26   :  { %2514 = vmatprep.subr.bf16.mxu0 %v3967_v40  ;;  %2801 = vmatprep.subr.bf16.mxu1 %v3969_v41  ;;  %v4048_v40 = vld [vmem:[%s6025_s1 + $0x2c4] ss:$16 sps:$4 sm:$0xff]   ;;  %v4051_v41 = vld [vmem:[%s6025_s1 + $0x2cc] ss:$16 sps:$4 sm:$0xff]  }
  0x29   :  { %2515 = vmatpush1.bf16.msra.mxu0 %v3971_v42  ;;  %2802 = vmatpush1.bf16.msra.mxu1 %v3972_v45  ;;  %v4046_v42 = vld [vmem:[%s6025_s1 + $0x2c0] ss:$16 sps:$4 sm:$0xff]   ;;  %v4054_v45 = vld [vmem:[%s6025_s1 + $0x2e4] ss:$16 sps:$4 sm:$0xff]  }
  0x2a   :  { %2516 = vmatprep.subr.bf16.mxu0 %v3973_v46  ;;  %2803 = vmatprep.subr.bf16.mxu1 %v3975_v47  ;;  %v4057_v46 = vld [vmem:[%s6025_s1 + $0x2ec] ss:$16 sps:$4 sm:$0xff]   ;;  %v4052_v47 = vld [vmem:[%s6025_s1 + $0x2e0] ss:$16 sps:$4 sm:$0xff]  }
  0x2d   :  { %2517 = vmatpush1.bf16.msra.mxu0 %v3977_v48  ;;  %2804 = vmatpush1.bf16.msra.mxu1 %v3978_v49  ;;  %v4055_v48 = vld [vmem:[%s6025_s1 + $0x2e8] ss:$16 sps:$4 sm:$0xff]   ;;  %v4060_v49 = vld [vmem:[%s6025_s1 + $0x304] ss:$16 sps:$4 sm:$0xff]  }
  0x2e   :  { %2518 = vmatprep.subr.bf16.mxu0 %v3979_v51  ;;  %2805 = vmatprep.subr.bf16.mxu1 %v3981_v52  ;;  %v4063_v51 = vld [vmem:[%s6025_s1 + $0x30c] ss:$16 sps:$4 sm:$0xff]   ;;  %v4058_v52 = vld [vmem:[%s6025_s1 + $0x300] ss:$16 sps:$4 sm:$0xff]  }
  0x31   :  { %2519 = vmatpush1.bf16.msra.mxu0 %v3983_v54  ;;  %2806 = vmatpush1.bf16.msra.mxu1 %v3984_v56  ;;  %v4066_v54 = vld [vmem:[%s6025_s1 + $0x324] ss:$16 sps:$4 sm:$0xff]   ;;  %v4064_v56 = vld [vmem:[%s6025_s1 + $0x320] ss:$16 sps:$4 sm:$0xff]  }
  0x32   :  { %2520 = vmatprep.subr.bf16.mxu0 %v3985_v57  ;;  %2807 = vmatprep.subr.bf16.mxu1 %v3987_v58  ;;  %v4067_v57 = vld [vmem:[%s6025_s1 + $0x328] ss:$16 sps:$4 sm:$0xff]   ;;  %v4072_v58 = vld [vmem:[%s6025_s1 + $0x344] ss:$16 sps:$4 sm:$0xff]  }
  0x35   :  { %2521 = vmatpush1.bf16.msra.mxu0 %v3989_v60  ;;  %2808 = vmatpush1.bf16.msra.mxu1 %v3990_v62  ;;  %v4070_v60 = vld [vmem:[%s6025_s1 + $0x340] ss:$16 sps:$4 sm:$0xff]   ;;  %v4078_v62 = vld [vmem:[%s6025_s1 + $0x364] ss:$16 sps:$4 sm:$0xff]  }
  0x36   :  { %2522 = vmatprep.subr.bf16.mxu0 %v3991_v63  ;;  %2809 = vmatprep.subr.bf16.mxu1 %v3993_v0  ;;  %v4081_v63 = vld [vmem:[%s6025_s1 + $0x36c] ss:$16 sps:$4 sm:$0xff]   ;;  %v4076_v0 = vld [vmem:[%s6025_s1 + $0x360] ss:$16 sps:$4 sm:$0xff]  }
  0x39   :  { %2523 = vmatpush1.bf16.msra.mxu0 %v3995_v1  ;;  %2810 = vmatpush1.bf16.msra.mxu1 %v3996_v2  ;;  %v4079_v1 = vld [vmem:[%s6025_s1 + $0x368] ss:$16 sps:$4 sm:$0xff]   ;;  %v4084_v2 = vld [vmem:[%s6025_s1 + $0x384] ss:$16 sps:$4 sm:$0xff]  }
  0x3a   :  { %2524 = vmatprep.subr.bf16.mxu0 %v3997_v3  ;;  %2811 = vmatprep.subr.bf16.mxu1 %v3999_v4  ;;  %v4087_v3 = vld [vmem:[%s6025_s1 + $0x38c] ss:$16 sps:$4 sm:$0xff]   ;;  %v4082_v4 = vld [vmem:[%s6025_s1 + $0x380] ss:$16 sps:$4 sm:$0xff]  }
  0x3d   :  { %2525 = vmatpush1.bf16.msra.mxu0 %v4001_v6  ;;  %2812 = vmatpush1.bf16.msra.mxu1 %v4002_v7  ;;  %v4090_v6 = vld [vmem:[%s6025_s1 + $0x3a4] ss:$16 sps:$4 sm:$0xff]   ;;  %v4093_v7 = vld [vmem:[%s6025_s1 + $0x3ac] ss:$16 sps:$4 sm:$0xff]  }
  0x3e   :  { %2526 = vmatprep.subr.bf16.mxu0 %v4003_v8  ;;  %2813 = vmatprep.subr.bf16.mxu1 %v4005_v9  ;;  %v4088_v8 = vld [vmem:[%s6025_s1 + $0x3a0] ss:$16 sps:$4 sm:$0xff]   ;;  %v4091_v9 = vld [vmem:[%s6025_s1 + $0x3a8] ss:$16 sps:$4 sm:$0xff]  }
  0x41   :  { %2527 = vmatpush1.bf16.msra.mxu0 %v4007_v11  ;;  %2814 = vmatpush1.bf16.msra.mxu1 %v4008_v12  ;;  %v4096_v11 = vld [vmem:[%s6025_s1 + $0x3c4] ss:$16 sps:$4 sm:$0xff]   ;;  %v4099_v12 = vld [vmem:[%s6025_s1 + $0x3cc] ss:$16 sps:$4 sm:$0xff]  }
  0x42   :  { %2537 = vmatprep.subr.bf16.mxu0 %v4012_v13  ;;  %2824 = vmatprep.subr.bf16.mxu1 %v4015_v14  ;;  %v4094_v13 = vld [vmem:[%s6025_s1 + $0x3c0] ss:$16 sps:$4 sm:$0xff]   ;;  %v4097_v14 = vld [vmem:[%s6025_s1 + $0x3c8] ss:$16 sps:$4 sm:$0xff]  }
  0x44   :  { %2529 = vmatmul.mubr.bf16.vlgmr.msra.gmra.mrb[0].mxu0 %v105_v17  ;;  %2816 = vmatmul.mubr.bf16.vlgmr.msra.gmra.mrb[0].mxu1 %v105_v17  ;;  %v4100_v17 = vld [vmem:[%s6025_s1 + $0x3e0] ss:$16 sps:$4 sm:$0xff]  }
  0x45   :  { %2538 = vmatpush1.bf16.msra.mxu0 %v4010_v16  ;;  %2825 = vmatpush1.bf16.msra.mxu1 %v4013_v18  ;;  %v4105_v16 = vld [vmem:[%s6025_s1 + $0x3ec] ss:$16 sps:$4 sm:$0xff]   ;;  %v4103_v18 = vld [vmem:[%s6025_s1 + $0x3e8] ss:$16 sps:$4 sm:$0xff]  }
  0x46   :  { %2539 = vmatprep.subr.bf16.mxu0 %v4018_v19  ;;  %2826 = vmatprep.subr.bf16.mxu1 %v4021_v20  ;;  %v4108_v19 = vld [vmem:[%s6025_s1 + $0x404] ss:$16 sps:$4 sm:$0xff]   ;;  %v4111_v20 = vld [vmem:[%s6025_s1 + $0x40c] ss:$16 sps:$4 sm:$0xff]  }
  0x47   :  { %2569 = vmatprep.mubr.bf16.mxu0 %v108_v21  ;;  %2856 = vmatprep.mubr.bf16.mxu1 %v108_v21  ;;  %v4106_v21 = vld [vmem:[%s6025_s1 + $0x400] ss:$16 sps:$4 sm:$0xff]  }
  0x49   :  { %2540 = vmatpush1.bf16.msra.mxu0 %v4016_v22  ;;  %2827 = vmatpush1.bf16.msra.mxu1 %v4019_v23  ;;  %v107_v22 = vpack.c.bf16 %v4765_v10, %v4765_v10  ;;  %v4109_v23 = vld [vmem:[%s6025_s1 + $0x408] ss:$16 sps:$4 sm:$0xff]   ;;  %v4117_v10 = vld [vmem:[%s6025_s1 + $0x42c] ss:$16 sps:$4 sm:$0xff]  }
  0x4a   :  { %2541 = vmatprep.subr.bf16.mxu0 %v4024_v24  ;;  %2828 = vmatprep.subr.bf16.mxu1 %v4027_v25  ;;  %v4984_v24 = vld [vmem:[%s6024_s0 + $0x8] sm:$0xff]  ;;  %v4114_v25 = vld [vmem:[%s6025_s1 + $0x424] ss:$16 sps:$4 sm:$0xff]  }
  0x4d   :  { %2542 = vmatpush1.bf16.msra.mxu0 %v4022_v26  ;;  %2829 = vmatpush1.bf16.msra.mxu1 %v4025_v27  ;;  %v4994_v26 = vrot.slane %v4984_v24, %v4704_v50 }
  0x4e   :  { %2543 = vmatprep.subr.bf16.mxu0 %v4030_v28  ;;  %2830 = vmatprep.subr.bf16.mxu1 %v4033_v29  ;;  %v4112_v28 = vld [vmem:[%s6025_s1 + $0x420] ss:$16 sps:$4 sm:$0xff]   ;;  %v4115_v29 = vld [vmem:[%s6025_s1 + $0x428] ss:$16 sps:$4 sm:$0xff]  }
  0x4f   :  { %v66_v27 = vcombine.high %v4994_v26, %v4994_v26 }
  0x51   :  { %2544 = vmatpush1.bf16.msra.mxu0 %v4028_v30  ;;  %2831 = vmatpush1.bf16.msra.mxu1 %v4031_v31  ;;  %v4120_v30 = vld [vmem:[%s6025_s1 + $0x444] ss:$16 sps:$4 sm:$0xff]   ;;  %v4123_v31 = vld [vmem:[%s6025_s1 + $0x44c] ss:$16 sps:$4 sm:$0xff]  }
  0x52   :  { %2545 = vmatprep.subr.bf16.mxu0 %v4036_v32  ;;  %2832 = vmatprep.subr.bf16.mxu1 %v4039_v33  ;;  %v110_v32 = vpack.c.bf16 %v66_v27, %v66_v27  ;;  %v4118_v33 = vld [vmem:[%s6025_s1 + $0x440] ss:$16 sps:$4 sm:$0xff]   ;;  %v4199_v27 = vld [vmem:[%s6025_s1 + $0x5e8] ss:$16 sps:$4 sm:$0xff]  }
  0x55   :  { %2546 = vmatpush1.bf16.msra.mxu0 %v4034_v34  ;;  %2833 = vmatpush1.bf16.msra.mxu1 %v4037_v35  ;;  %v4121_v34 = vld [vmem:[%s6025_s1 + $0x448] ss:$16 sps:$4 sm:$0xff]   ;;  %v4126_v35 = vld [vmem:[%s6025_s1 + $0x464] ss:$16 sps:$4 sm:$0xff]  }
  0x56   :  { %2547 = vmatprep.subr.bf16.mxu0 %v4042_v36  ;;  %2834 = vmatprep.subr.bf16.mxu1 %v4045_v37  ;;  %v4129_v36 = vld [vmem:[%s6025_s1 + $0x46c] ss:$16 sps:$4 sm:$0xff]   ;;  %v4124_v37 = vld [vmem:[%s6025_s1 + $0x460] ss:$16 sps:$4 sm:$0xff]  }
  0x59   :  { %2548 = vmatpush1.bf16.msra.mxu0 %v4040_v38  ;;  %2835 = vmatpush1.bf16.msra.mxu1 %v4043_v39  ;;  %v4127_v38 = vld [vmem:[%s6025_s1 + $0x468] ss:$16 sps:$4 sm:$0xff]   ;;  %v4132_v39 = vld [vmem:[%s6025_s1 + $0x484] ss:$16 sps:$4 sm:$0xff]  }
  0x5a   :  { %2549 = vmatprep.subr.bf16.mxu0 %v4048_v40  ;;  %2836 = vmatprep.subr.bf16.mxu1 %v4051_v41  ;;  %v4135_v40 = vld [vmem:[%s6025_s1 + $0x48c] ss:$16 sps:$4 sm:$0xff]   ;;  %v4130_v41 = vld [vmem:[%s6025_s1 + $0x480] ss:$16 sps:$4 sm:$0xff]  }
  0x5d   :  { %2550 = vmatpush1.bf16.msra.mxu0 %v4046_v42  ;;  %2837 = vmatpush1.bf16.msra.mxu1 %v4049_v43  ;;  %v4133_v42 = vld [vmem:[%s6025_s1 + $0x488] ss:$16 sps:$4 sm:$0xff]   ;;  %v4138_v43 = vld [vmem:[%s6025_s1 + $0x4a4] ss:$16 sps:$4 sm:$0xff]  }
  0x5e   :  { %2551 = vmatprep.subr.bf16.mxu0 %v4054_v45  ;;  %2838 = vmatprep.subr.bf16.mxu1 %v4057_v46  ;;  %v4141_v45 = vld [vmem:[%s6025_s1 + $0x4ac] ss:$16 sps:$4 sm:$0xff]   ;;  %v4136_v46 = vld [vmem:[%s6025_s1 + $0x4a0] ss:$16 sps:$4 sm:$0xff]  }
  0x61   :  { %2552 = vmatpush1.bf16.msra.mxu0 %v4052_v47  ;;  %2839 = vmatpush1.bf16.msra.mxu1 %v4055_v48  ;;  %v4139_v47 = vld [vmem:[%s6025_s1 + $0x4a8] ss:$16 sps:$4 sm:$0xff]   ;;  %v4144_v48 = vld [vmem:[%s6025_s1 + $0x4c4] ss:$16 sps:$4 sm:$0xff]  }
  0x62   :  { %2553 = vmatprep.subr.bf16.mxu0 %v4060_v49  ;;  %2840 = vmatprep.subr.bf16.mxu1 %v4063_v51  ;;  %v4147_v49 = vld [vmem:[%s6025_s1 + $0x4cc] ss:$16 sps:$4 sm:$0xff]   ;;  %v4142_v51 = vld [vmem:[%s6025_s1 + $0x4c0] ss:$16 sps:$4 sm:$0xff]  }
  0x65   :  { %2554 = vmatpush1.bf16.msra.mxu0 %v4058_v52  ;;  %2841 = vmatpush1.bf16.msra.mxu1 %v4061_v53  ;;  %v4145_v52 = vld [vmem:[%s6025_s1 + $0x4c8] ss:$16 sps:$4 sm:$0xff]   ;;  %v4150_v53 = vld [vmem:[%s6025_s1 + $0x4e4] ss:$16 sps:$4 sm:$0xff]  }
  0x66   :  { %2555 = vmatprep.subr.bf16.mxu0 %v4066_v54  ;;  %2842 = vmatprep.subr.bf16.mxu1 %v4069_v55  ;;  %v4153_v54 = vld [vmem:[%s6025_s1 + $0x4ec] ss:$16 sps:$4 sm:$0xff]   ;;  %v4148_v55 = vld [vmem:[%s6025_s1 + $0x4e0] ss:$16 sps:$4 sm:$0xff]  }
  0x69   :  { %2556 = vmatpush1.bf16.msra.mxu0 %v4064_v56  ;;  %2843 = vmatpush1.bf16.msra.mxu1 %v4067_v57  ;;  %v4151_v56 = vld [vmem:[%s6025_s1 + $0x4e8] ss:$16 sps:$4 sm:$0xff]   ;;  %v4156_v57 = vld [vmem:[%s6025_s1 + $0x504] ss:$16 sps:$4 sm:$0xff]  }
  0x6a   :  { %2557 = vmatprep.subr.bf16.mxu0 %v4072_v58  ;;  %2844 = vmatprep.subr.bf16.mxu1 %v4075_v59  ;;  %v4159_v58 = vld [vmem:[%s6025_s1 + $0x50c] ss:$16 sps:$4 sm:$0xff]   ;;  %v4154_v59 = vld [vmem:[%s6025_s1 + $0x500] ss:$16 sps:$4 sm:$0xff]  }
  0x6d   :  { %2558 = vmatpush1.bf16.msra.mxu0 %v4070_v60  ;;  %2845 = vmatpush1.bf16.msra.mxu1 %v4073_v61  ;;  %v4157_v60 = vld [vmem:[%s6025_s1 + $0x508] ss:$16 sps:$4 sm:$0xff]   ;;  %v4162_v61 = vld [vmem:[%s6025_s1 + $0x524] ss:$16 sps:$4 sm:$0xff]  }
  0x6e   :  { %2559 = vmatprep.subr.bf16.mxu0 %v4078_v62  ;;  %2846 = vmatprep.subr.bf16.mxu1 %v4081_v63  ;;  %v4165_v62 = vld [vmem:[%s6025_s1 + $0x52c] ss:$16 sps:$4 sm:$0xff]   ;;  %v4160_v63 = vld [vmem:[%s6025_s1 + $0x520] ss:$16 sps:$4 sm:$0xff]  }
  0x71   :  { %2560 = vmatpush1.bf16.msra.mxu0 %v4076_v0  ;;  %2847 = vmatpush1.bf16.msra.mxu1 %v4079_v1  ;;  %v4163_v0 = vld [vmem:[%s6025_s1 + $0x528] ss:$16 sps:$4 sm:$0xff]   ;;  %v4168_v1 = vld [vmem:[%s6025_s1 + $0x544] ss:$16 sps:$4 sm:$0xff]  }
  0x72   :  { %2561 = vmatprep.subr.bf16.mxu0 %v4084_v2  ;;  %2848 = vmatprep.subr.bf16.mxu1 %v4087_v3  ;;  %v4171_v2 = vld [vmem:[%s6025_s1 + $0x54c] ss:$16 sps:$4 sm:$0xff]   ;;  %v4166_v3 = vld [vmem:[%s6025_s1 + $0x540] ss:$16 sps:$4 sm:$0xff]  }
  0x75   :  { %2562 = vmatpush1.bf16.msra.mxu0 %v4082_v4  ;;  %2849 = vmatpush1.bf16.msra.mxu1 %v4085_v5  ;;  %v4169_v4 = vld [vmem:[%s6025_s1 + $0x548] ss:$16 sps:$4 sm:$0xff]   ;;  %v4174_v5 = vld [vmem:[%s6025_s1 + $0x564] ss:$16 sps:$4 sm:$0xff]  }
  0x76   :  { %2563 = vmatprep.subr.bf16.mxu0 %v4090_v6  ;;  %2850 = vmatprep.subr.bf16.mxu1 %v4093_v7  ;;  %v4177_v6 = vld [vmem:[%s6025_s1 + $0x56c] ss:$16 sps:$4 sm:$0xff]   ;;  %v4172_v7 = vld [vmem:[%s6025_s1 + $0x560] ss:$16 sps:$4 sm:$0xff]  }
  0x79   :  { %2564 = vmatpush1.bf16.msra.mxu0 %v4088_v8  ;;  %2851 = vmatpush1.bf16.msra.mxu1 %v4091_v9  ;;  %v4175_v8 = vld [vmem:[%s6025_s1 + $0x568] ss:$16 sps:$4 sm:$0xff]   ;;  %v4180_v9 = vld [vmem:[%s6025_s1 + $0x584] ss:$16 sps:$4 sm:$0xff]  }
  0x7a   :  { %2565 = vmatprep.subr.bf16.mxu0 %v4096_v11  ;;  %2852 = vmatprep.subr.bf16.mxu1 %v4099_v12  ;;  %v4183_v11 = vld [vmem:[%s6025_s1 + $0x58c] ss:$16 sps:$4 sm:$0xff]   ;;  %v4178_v12 = vld [vmem:[%s6025_s1 + $0x580] ss:$16 sps:$4 sm:$0xff]  }
  0x7d   :  { %2566 = vmatpush1.bf16.msra.mxu0 %v4094_v13  ;;  %2853 = vmatpush1.bf16.msra.mxu1 %v4097_v14  ;;  %v4181_v13 = vld [vmem:[%s6025_s1 + $0x588] ss:$16 sps:$4 sm:$0xff]   ;;  %v4186_v14 = vld [vmem:[%s6025_s1 + $0x5a4] ss:$16 sps:$4 sm:$0xff]  }
  0x7e   :  { %2567 = vmatprep.subr.bf16.mxu0 %v4102_v15  ;;  %2854 = vmatprep.subr.bf16.mxu1 %v4105_v16  ;;  %v4189_v15 = vld [vmem:[%s6025_s1 + $0x5ac] ss:$16 sps:$4 sm:$0xff]   ;;  %v4184_v16 = vld [vmem:[%s6025_s1 + $0x5a0] ss:$16 sps:$4 sm:$0xff]  }
  0x81   :  { %2568 = vmatpush1.bf16.msra.mxu0 %v4100_v17  ;;  %2855 = vmatpush1.bf16.msra.mxu1 %v4103_v18  ;;  %v4187_v17 = vld [vmem:[%s6025_s1 + $0x5a8] ss:$16 sps:$4 sm:$0xff]   ;;  %v4192_v18 = vld [vmem:[%s6025_s1 + $0x5c4] ss:$16 sps:$4 sm:$0xff]  }
  0x82   :  { %2578 = vmatprep.subr.bf16.mxu0 %v4108_v19  ;;  %2865 = vmatprep.subr.bf16.mxu1 %v4111_v20  ;;  %v4195_v19 = vld [vmem:[%s6025_s1 + $0x5cc] ss:$16 sps:$4 sm:$0xff]   ;;  %v51_v20 = vcombine.high %v4984_v24, %v4984_v24 }
  0x83   :  { %v4201_v24 = vld [vmem:[%s6025_s1 + $0x5ec] ss:$16 sps:$4 sm:$0xff]  }
  0x84   :  { %2570 = vmatmul.mubr.bf16.vlgmr.msra.gmra.mrb[0].mxu0 %v107_v22  ;;  %2857 = vmatmul.mubr.bf16.vlgmr.msra.gmra.mrb[0].mxu1 %v107_v22  ;;  %v4193_v22 = vld [vmem:[%s6025_s1 + $0x5c8] ss:$16 sps:$4 sm:$0xff]  }
  0x85   :  { %2579 = vmatpush1.bf16.msra.mxu0 %v4106_v21  ;;  %2866 = vmatpush1.bf16.msra.mxu1 %v4109_v23  ;;  %v4190_v21 = vld [vmem:[%s6025_s1 + $0x5c0] ss:$16 sps:$4 sm:$0xff]   ;;  %v4198_v23 = vld [vmem:[%s6025_s1 + $0x5e4] ss:$16 sps:$4 sm:$0xff]  }
  0x86   :  { %2580 = vmatprep.subr.bf16.mxu0 %v4114_v25  ;;  %2867 = vmatprep.subr.bf16.mxu1 %v4117_v10  ;;  %v5169_v25 = vrot.slane %v51_v20, %v4704_v50  ;;  %v4196_v10 = vld [vmem:[%s6025_s1 + $0x5e0] ss:$16 sps:$4 sm:$0xff]   ;;  %v4277_v20 = vld [vmem:[%s6025_s1 + $0x788] ss:$16 sps:$4 sm:$0xff]  }
  0x87   :  { %2610 = vmatprep.mubr.bf16.mxu0 %v110_v32  ;;  %2897 = vmatprep.mubr.bf16.mxu1 %v110_v32  ;;  %v4202_v32 = vld [vmem:[%s6025_s1 + $0x600] ss:$16 sps:$4 sm:$0xff]  }
  0x89   :  { %2581 = vmatpush1.bf16.msra.mxu0 %v4112_v28  ;;  %2868 = vmatpush1.bf16.msra.mxu1 %v4115_v29  ;;  %v4204_v28 = vld [vmem:[%s6025_s1 + $0x604] ss:$16 sps:$4 sm:$0xff]   ;;  %v4207_v29 = vld [vmem:[%s6025_s1 + $0x60c] ss:$16 sps:$4 sm:$0xff]  }
  0x8a   :  { %2582 = vmatprep.subr.bf16.mxu0 %v4120_v30  ;;  %2869 = vmatprep.subr.bf16.mxu1 %v4123_v31  ;;  %v67_v30 = vcombine.high %v5169_v25, %v5169_v25  ;;  %v109_v31 = vpack.c.bf16 %v4994_v26, %v4994_v26  ;;  %v4213_v26 = vld [vmem:[%s6025_s1 + $0x62c] ss:$16 sps:$4 sm:$0xff]  }
  0x8d   :  { %2583 = vmatpush1.bf16.msra.mxu0 %v4118_v33  ;;  %2870 = vmatpush1.bf16.msra.mxu1 %v4121_v34  ;;  %v4205_v33 = vld [vmem:[%s6025_s1 + $0x608] ss:$16 sps:$4 sm:$0xff]   ;;  %v4210_v34 = vld [vmem:[%s6025_s1 + $0x624] ss:$16 sps:$4 sm:$0xff]  }
  0x8e   :  { %2584 = vmatprep.subr.bf16.mxu0 %v4126_v35  ;;  %2871 = vmatprep.subr.bf16.mxu1 %v4129_v36  ;;  %v112_v35 = vpack.c.bf16 %v67_v30, %v67_v30  ;;  %v4208_v36 = vld [vmem:[%s6025_s1 + $0x620] ss:$16 sps:$4 sm:$0xff]   ;;  %v4289_v30 = vld [vmem:[%s6025_s1 + $0x7c8] ss:$16 sps:$4 sm:$0xff]  }
  0x91   :  { %2585 = vmatpush1.bf16.msra.mxu0 %v4124_v37  ;;  %2872 = vmatpush1.bf16.msra.mxu1 %v4127_v38  ;;  %v4211_v37 = vld [vmem:[%s6025_s1 + $0x628] ss:$16 sps:$4 sm:$0xff]   ;;  %v4216_v38 = vld [vmem:[%s6025_s1 + $0x644] ss:$16 sps:$4 sm:$0xff]  }
  0x92   :  { %2586 = vmatprep.subr.bf16.mxu0 %v4132_v39  ;;  %2873 = vmatprep.subr.bf16.mxu1 %v4135_v40  ;;  %v4219_v39 = vld [vmem:[%s6025_s1 + $0x64c] ss:$16 sps:$4 sm:$0xff]   ;;  %v4214_v40 = vld [vmem:[%s6025_s1 + $0x640] ss:$16 sps:$4 sm:$0xff]  }
  0x95   :  { %2587 = vmatpush1.bf16.msra.mxu0 %v4130_v41  ;;  %2874 = vmatpush1.bf16.msra.mxu1 %v4133_v42  ;;  %v4217_v41 = vld [vmem:[%s6025_s1 + $0x648] ss:$16 sps:$4 sm:$0xff]   ;;  %v4222_v42 = vld [vmem:[%s6025_s1 + $0x664] ss:$16 sps:$4 sm:$0xff]  }
  0x96   :  { %2588 = vmatprep.subr.bf16.mxu0 %v4138_v43  ;;  %2875 = vmatprep.subr.bf16.mxu1 %v4141_v45  ;;  %v4225_v43 = vld [vmem:[%s6025_s1 + $0x66c] ss:$16 sps:$4 sm:$0xff]   ;;  %v4220_v45 = vld [vmem:[%s6025_s1 + $0x660] ss:$16 sps:$4 sm:$0xff]  }
  0x99   :  { %2589 = vmatpush1.bf16.msra.mxu0 %v4136_v46  ;;  %2876 = vmatpush1.bf16.msra.mxu1 %v4139_v47  ;;  %v4223_v46 = vld [vmem:[%s6025_s1 + $0x668] ss:$16 sps:$4 sm:$0xff]   ;;  %v4228_v47 = vld [vmem:[%s6025_s1 + $0x684] ss:$16 sps:$4 sm:$0xff]  }
  0x9a   :  { %2590 = vmatprep.subr.bf16.mxu0 %v4144_v48  ;;  %2877 = vmatprep.subr.bf16.mxu1 %v4147_v49  ;;  %v4231_v48 = vld [vmem:[%s6025_s1 + $0x68c] ss:$16 sps:$4 sm:$0xff]   ;;  %v4226_v49 = vld [vmem:[%s6025_s1 + $0x680] ss:$16 sps:$4 sm:$0xff]  }
  0x9d   :  { %2591 = vmatpush1.bf16.msra.mxu0 %v4142_v51  ;;  %2878 = vmatpush1.bf16.msra.mxu1 %v4145_v52  ;;  %v4229_v51 = vld [vmem:[%s6025_s1 + $0x688] ss:$16 sps:$4 sm:$0xff]   ;;  %v4234_v52 = vld [vmem:[%s6025_s1 + $0x6a4] ss:$16 sps:$4 sm:$0xff]  }
  0x9e   :  { %2592 = vmatprep.subr.bf16.mxu0 %v4150_v53  ;;  %2879 = vmatprep.subr.bf16.mxu1 %v4153_v54  ;;  %v4237_v53 = vld [vmem:[%s6025_s1 + $0x6ac] ss:$16 sps:$4 sm:$0xff]   ;;  %v4232_v54 = vld [vmem:[%s6025_s1 + $0x6a0] ss:$16 sps:$4 sm:$0xff]  }
  0xa1   :  { %2593 = vmatpush1.bf16.msra.mxu0 %v4148_v55  ;;  %2880 = vmatpush1.bf16.msra.mxu1 %v4151_v56  ;;  %v4235_v55 = vld [vmem:[%s6025_s1 + $0x6a8] ss:$16 sps:$4 sm:$0xff]   ;;  %v4240_v56 = vld [vmem:[%s6025_s1 + $0x6c4] ss:$16 sps:$4 sm:$0xff]  }
  0xa2   :  { %2594 = vmatprep.subr.bf16.mxu0 %v4156_v57  ;;  %2881 = vmatprep.subr.bf16.mxu1 %v4159_v58  ;;  %v4243_v57 = vld [vmem:[%s6025_s1 + $0x6cc] ss:$16 sps:$4 sm:$0xff]   ;;  %v4238_v58 = vld [vmem:[%s6025_s1 + $0x6c0] ss:$16 sps:$4 sm:$0xff]  }
  0xa5   :  { %2595 = vmatpush1.bf16.msra.mxu0 %v4154_v59  ;;  %2882 = vmatpush1.bf16.msra.mxu1 %v4157_v60  ;;  %v4241_v59 = vld [vmem:[%s6025_s1 + $0x6c8] ss:$16 sps:$4 sm:$0xff]   ;;  %v4246_v60 = vld [vmem:[%s6025_s1 + $0x6e4] ss:$16 sps:$4 sm:$0xff]  }
  0xa6   :  { %2596 = vmatprep.subr.bf16.mxu0 %v4162_v61  ;;  %2883 = vmatprep.subr.bf16.mxu1 %v4165_v62  ;;  %v4249_v61 = vld [vmem:[%s6025_s1 + $0x6ec] ss:$16 sps:$4 sm:$0xff]   ;;  %v4244_v62 = vld [vmem:[%s6025_s1 + $0x6e0] ss:$16 sps:$4 sm:$0xff]  }
  0xa9   :  { %2597 = vmatpush1.bf16.msra.mxu0 %v4160_v63  ;;  %2884 = vmatpush1.bf16.msra.mxu1 %v4163_v0  ;;  %v4247_v63 = vld [vmem:[%s6025_s1 + $0x6e8] ss:$16 sps:$4 sm:$0xff]   ;;  %v4252_v0 = vld [vmem:[%s6025_s1 + $0x704] ss:$16 sps:$4 sm:$0xff]  }
  0xaa   :  { %2598 = vmatprep.subr.bf16.mxu0 %v4168_v1  ;;  %2885 = vmatprep.subr.bf16.mxu1 %v4171_v2  ;;  %v4255_v1 = vld [vmem:[%s6025_s1 + $0x70c] ss:$16 sps:$4 sm:$0xff]   ;;  %v4250_v2 = vld [vmem:[%s6025_s1 + $0x700] ss:$16 sps:$4 sm:$0xff]  }
  0xad   :  { %2599 = vmatpush1.bf16.msra.mxu0 %v4166_v3  ;;  %2886 = vmatpush1.bf16.msra.mxu1 %v4169_v4  ;;  %v4253_v3 = vld [vmem:[%s6025_s1 + $0x708] ss:$16 sps:$4 sm:$0xff]   ;;  %v4258_v4 = vld [vmem:[%s6025_s1 + $0x724] ss:$16 sps:$4 sm:$0xff]  }
  0xae   :  { %2600 = vmatprep.subr.bf16.mxu0 %v4174_v5  ;;  %2887 = vmatprep.subr.bf16.mxu1 %v4177_v6  ;;  %v4261_v5 = vld [vmem:[%s6025_s1 + $0x72c] ss:$16 sps:$4 sm:$0xff]   ;;  %v4256_v6 = vld [vmem:[%s6025_s1 + $0x720] ss:$16 sps:$4 sm:$0xff]  }
  0xb1   :  { %2601 = vmatpush1.bf16.msra.mxu0 %v4172_v7  ;;  %2888 = vmatpush1.bf16.msra.mxu1 %v4175_v8  ;;  %v4259_v7 = vld [vmem:[%s6025_s1 + $0x728] ss:$16 sps:$4 sm:$0xff]   ;;  %v4264_v8 = vld [vmem:[%s6025_s1 + $0x744] ss:$16 sps:$4 sm:$0xff]  }
  0xb2   :  { %2602 = vmatprep.subr.bf16.mxu0 %v4180_v9  ;;  %2889 = vmatprep.subr.bf16.mxu1 %v4183_v11  ;;  %v4267_v9 = vld [vmem:[%s6025_s1 + $0x74c] ss:$16 sps:$4 sm:$0xff]   ;;  %v4262_v11 = vld [vmem:[%s6025_s1 + $0x740] ss:$16 sps:$4 sm:$0xff]  }
  0xb5   :  { %2603 = vmatpush1.bf16.msra.mxu0 %v4178_v12  ;;  %2890 = vmatpush1.bf16.msra.mxu1 %v4181_v13  ;;  %v4265_v12 = vld [vmem:[%s6025_s1 + $0x748] ss:$16 sps:$4 sm:$0xff]   ;;  %v4270_v13 = vld [vmem:[%s6025_s1 + $0x764] ss:$16 sps:$4 sm:$0xff]  }
  0xb6   :  { %2604 = vmatprep.subr.bf16.mxu0 %v4186_v14  ;;  %2891 = vmatprep.subr.bf16.mxu1 %v4189_v15  ;;  %v4273_v14 = vld [vmem:[%s6025_s1 + $0x76c] ss:$16 sps:$4 sm:$0xff]   ;;  %v4268_v15 = vld [vmem:[%s6025_s1 + $0x760] ss:$16 sps:$4 sm:$0xff]  }
  0xb9   :  { %2605 = vmatpush1.bf16.msra.mxu0 %v4184_v16  ;;  %2892 = vmatpush1.bf16.msra.mxu1 %v4187_v17  ;;  %v4271_v16 = vld [vmem:[%s6025_s1 + $0x768] ss:$16 sps:$4 sm:$0xff]   ;;  %v4276_v17 = vld [vmem:[%s6025_s1 + $0x784] ss:$16 sps:$4 sm:$0xff]  }
  0xba   :  { %2606 = vmatprep.subr.bf16.mxu0 %v4192_v18  ;;  %2893 = vmatprep.subr.bf16.mxu1 %v4195_v19  ;;  %v4279_v18 = vld [vmem:[%s6025_s1 + $0x78c] ss:$16 sps:$4 sm:$0xff]   ;;  %v4274_v19 = vld [vmem:[%s6025_s1 + $0x780] ss:$16 sps:$4 sm:$0xff]  }
  0xbd   :  { %2607 = vmatpush1.bf16.msra.mxu0 %v4190_v21  ;;  %2894 = vmatpush1.bf16.msra.mxu1 %v4193_v22  ;;  %v4282_v21 = vld [vmem:[%s6025_s1 + $0x7a4] ss:$16 sps:$4 sm:$0xff]   ;;  %v4285_v22 = vld [vmem:[%s6025_s1 + $0x7ac] ss:$16 sps:$4 sm:$0xff]  }
  0xbe   :  { %2608 = vmatprep.subr.bf16.mxu0 %v4198_v23  ;;  %2895 = vmatprep.subr.bf16.mxu1 %v4201_v24  ;;  %v4280_v23 = vld [vmem:[%s6025_s1 + $0x7a0] ss:$16 sps:$4 sm:$0xff]   ;;  %v4283_v24 = vld [vmem:[%s6025_s1 + $0x7a8] ss:$16 sps:$4 sm:$0xff]  }
  0xc1   :  { %2609 = vmatpush1.bf16.msra.mxu0 %v4196_v10  ;;  %2896 = vmatpush1.bf16.msra.mxu1 %v4199_v27  ;;  %v4288_v10 = vld [vmem:[%s6025_s1 + $0x7c4] ss:$16 sps:$4 sm:$0xff]   ;;  %v4291_v27 = vld [vmem:[%s6025_s1 + $0x7cc] ss:$16 sps:$4 sm:$0xff]  }
  0xc2   :  { %2619 = vmatprep.subr.bf16.mxu0 %v4204_v28  ;;  %2906 = vmatprep.subr.bf16.mxu1 %v4207_v29  ;;  %v4286_v28 = vld [vmem:[%s6025_s1 + $0x7c0] ss:$16 sps:$4 sm:$0xff]  }
  0xc3   :  { %v5361_v29 = vld [vmem:[%s6024_s0 + $0x10] sm:$0xff] }
  0xc4   :  { %2611 = vmatmul.mubr.bf16.vlgmr.msra.gmra.mrb[0].mxu0 %v109_v31  ;;  %2898 = vmatmul.mubr.bf16.vlgmr.msra.gmra.mrb[0].mxu1 %v109_v31  ;;  %v4294_v31 = vld [vmem:[%s6025_s1 + $0x7e4] ss:$16 sps:$4 sm:$0xff]  }
  0xc5   :  { %2620 = vmatpush1.bf16.msra.mxu0 %v4202_v32  ;;  %2907 = vmatpush1.bf16.msra.mxu1 %v4205_v33  ;;  %v4297_v32 = vld [vmem:[%s6025_s1 + $0x7ec] ss:$16 sps:$4 sm:$0xff]   ;;  %v5374_v33 = vrot.slane %v5361_v29, %v4704_v50 }
  0xc6   :  { %2621 = vmatprep.subr.bf16.mxu0 %v4210_v34  ;;  %2908 = vmatprep.subr.bf16.mxu1 %v4213_v26  ;;  %v4292_v34 = vld [vmem:[%s6025_s1 + $0x7e0] ss:$16 sps:$4 sm:$0xff]   ;;  %v4295_v26 = vld [vmem:[%s6025_s1 + $0x7e8] ss:$16 sps:$4 sm:$0xff]  }
  0xc7   :  { %2651 = vmatprep.mubr.bf16.mxu0 %v112_v35  ;;  %2938 = vmatprep.mubr.bf16.mxu1 %v112_v35  ;;  %v4301_v35 = vld [vmem:[%s6025_s1 + $0x804] ss:$16 sps:$4 sm:$0xff]  }
  0xc9   :  { %2622 = vmatpush1.bf16.msra.mxu0 %v4208_v36  ;;  %2909 = vmatpush1.bf16.msra.mxu1 %v4211_v37  ;;  %v4304_v36 = vld [vmem:[%s6025_s1 + $0x80c] ss:$16 sps:$4 sm:$0xff]   ;;  %v83_v37 = vcombine.high %v5374_v33, %v5374_v33 }
  0xca   :  { %2623 = vmatprep.subr.bf16.mxu0 %v4216_v38  ;;  %2910 = vmatprep.subr.bf16.mxu1 %v4219_v39  ;;  %v4299_v38 = vld [vmem:[%s6025_s1 + $0x800] ss:$16 sps:$4 sm:$0xff]   ;;  %v4302_v39 = vld [vmem:[%s6025_s1 + $0x808] ss:$16 sps:$4 sm:$0xff]  }
  0xcd   :  { %2624 = vmatpush1.bf16.msra.mxu0 %v4214_v40  ;;  %2911 = vmatpush1.bf16.msra.mxu1 %v4217_v41  ;;  %v111_v40 = vpack.c.bf16 %v5169_v25, %v5169_v25  ;;  %v4307_v41 = vld [vmem:[%s6025_s1 + $0x824] ss:$16 sps:$4 sm:$0xff]   ;;  %v4305_v25 = vld [vmem:[%s6025_s1 + $0x820] ss:$16 sps:$4 sm:$0xff]  }
  0xce   :  { %2625 = vmatprep.subr.bf16.mxu0 %v4222_v42  ;;  %2912 = vmatprep.subr.bf16.mxu1 %v4225_v43  ;;  %v4310_v42 = vld [vmem:[%s6025_s1 + $0x82c] ss:$16 sps:$4 sm:$0xff]   ;;  %v114_v43 = vpack.c.bf16 %v83_v37, %v83_v37 }
  0xd1   :  { %2626 = vmatpush1.bf16.msra.mxu0 %v4220_v45  ;;  %2913 = vmatpush1.bf16.msra.mxu1 %v4223_v46  ;;  %v4308_v45 = vld [vmem:[%s6025_s1 + $0x828] ss:$16 sps:$4 sm:$0xff]   ;;  %v4313_v46 = vld [vmem:[%s6025_s1 + $0x844] ss:$16 sps:$4 sm:$0xff]  }
  0xd2   :  { %2627 = vmatprep.subr.bf16.mxu0 %v4228_v47  ;;  %2914 = vmatprep.subr.bf16.mxu1 %v4231_v48  ;;  %v4316_v47 = vld [vmem:[%s6025_s1 + $0x84c] ss:$16 sps:$4 sm:$0xff]  }
  0xd5   :  { %2628 = vmatpush1.bf16.msra.mxu0 %v4226_v49  ;;  %2915 = vmatpush1.bf16.msra.mxu1 %v4229_v51 }
  0xd6   :  { %2629 = vmatprep.subr.bf16.mxu0 %v4234_v52  ;;  %2916 = vmatprep.subr.bf16.mxu1 %v4237_v53 }
  0xd9   :  { %2630 = vmatpush1.bf16.msra.mxu0 %v4232_v54  ;;  %2917 = vmatpush1.bf16.msra.mxu1 %v4235_v55 }
  0xda   :  { %2631 = vmatprep.subr.bf16.mxu0 %v4240_v56  ;;  %2918 = vmatprep.subr.bf16.mxu1 %v4243_v57 }
  0xdd   :  { %2632 = vmatpush1.bf16.msra.mxu0 %v4238_v58  ;;  %2919 = vmatpush1.bf16.msra.mxu1 %v4241_v59 }
  0xde   :  { %2633 = vmatprep.subr.bf16.mxu0 %v4246_v60  ;;  %2920 = vmatprep.subr.bf16.mxu1 %v4249_v61 }
  0xe1   :  { %2634 = vmatpush1.bf16.msra.mxu0 %v4244_v62  ;;  %2921 = vmatpush1.bf16.msra.mxu1 %v4247_v63 }
  0xe2   :  { %2635 = vmatprep.subr.bf16.mxu0 %v4252_v0  ;;  %2922 = vmatprep.subr.bf16.mxu1 %v4255_v1 }
  0xe5   :  { %2636 = vmatpush1.bf16.msra.mxu0 %v4250_v2  ;;  %2923 = vmatpush1.bf16.msra.mxu1 %v4253_v3 }
  0xe6   :  { %2637 = vmatprep.subr.bf16.mxu0 %v4258_v4  ;;  %2924 = vmatprep.subr.bf16.mxu1 %v4261_v5 }
  0xe9   :  { %2638 = vmatpush1.bf16.msra.mxu0 %v4256_v6  ;;  %2925 = vmatpush1.bf16.msra.mxu1 %v4259_v7 }
  0xea   :  { %2639 = vmatprep.subr.bf16.mxu0 %v4264_v8  ;;  %2926 = vmatprep.subr.bf16.mxu1 %v4267_v9 }
  0xed   :  { %2640 = vmatpush1.bf16.msra.mxu0 %v4262_v11  ;;  %2927 = vmatpush1.bf16.msra.mxu1 %v4265_v12 }
  0xee   :  { %2641 = vmatprep.subr.bf16.mxu0 %v4270_v13  ;;  %2928 = vmatprep.subr.bf16.mxu1 %v4273_v14 }
  0xf1   :  { %2642 = vmatpush1.bf16.msra.mxu0 %v4268_v15  ;;  %2929 = vmatpush1.bf16.msra.mxu1 %v4271_v16 }
  0xf2   :  { %2643 = vmatprep.subr.bf16.mxu0 %v4276_v17  ;;  %2930 = vmatprep.subr.bf16.mxu1 %v4279_v18 }
  0xf5   :  { %2644 = vmatpush1.bf16.msra.mxu0 %v4274_v19  ;;  %2931 = vmatpush1.bf16.msra.mxu1 %v4277_v20 }
  0xf6   :  { %2645 = vmatprep.subr.bf16.mxu0 %v4282_v21  ;;  %2932 = vmatprep.subr.bf16.mxu1 %v4285_v22 }
  0xf9   :  { %2646 = vmatpush1.bf16.msra.mxu0 %v4280_v23  ;;  %2933 = vmatpush1.bf16.msra.mxu1 %v4283_v24 }
  0xfa   :  { %2647 = vmatprep.subr.bf16.mxu0 %v4288_v10  ;;  %2934 = vmatprep.subr.bf16.mxu1 %v4291_v27 }
  0xfd   :  { %2648 = vmatpush1.bf16.msra.mxu0 %v4286_v28  ;;  %2935 = vmatpush1.bf16.msra.mxu1 %v4289_v30 }
  0xfe   :  { %2649 = vmatprep.subr.bf16.mxu0 %v4294_v31  ;;  %2936 = vmatprep.subr.bf16.mxu1 %v4297_v32 }
 0x101   :  { %2650 = vmatpush1.bf16.msra.mxu0 %v4292_v34  ;;  %2937 = vmatpush1.bf16.msra.mxu1 %v4295_v26 }
 0x102   :  { %2660 = vmatprep.subr.bf16.mxu0 %v4301_v35  ;;  %2947 = vmatprep.subr.bf16.mxu1 %v4304_v36 }
 0x104   :  { %2652 = vmatmul.mubr.bf16.vlgmr.msra.gmra.mrb[0].mxu0 %v111_v40  ;;  %2939 = vmatmul.mubr.bf16.vlgmr.msra.gmra.mrb[0].mxu1 %v111_v40 }
 0x105   :  { %2661 = vmatpush1.bf16.msra.mxu0 %v4299_v38  ;;  %2948 = vmatpush1.bf16.msra.mxu1 %v4302_v39 }
 0x106   :  { %2662 = vmatprep.subr.bf16.mxu0 %v4307_v41  ;;  %2949 = vmatprep.subr.bf16.mxu1 %v4310_v42 }
 0x107   :  { %14 = vsyncpa [#allocation4], 0  ;;  %2692 = vmatprep.mubr.bf16.mxu0 %v114_v43  ;;  %2979 = vmatprep.mubr.bf16.mxu1 %v114_v43  ;;  %v4311_v48 = vld [vmem:[%s6025_s1 + $0x840] ss:$16 sps:$4 sm:$0xff]   ;;  %v4314_v49 = vld [vmem:[%s6025_s1 + $0x848] ss:$16 sps:$4 sm:$0xff]   ;;  %v68_v36 = vcombine.high %v5361_v29, %v5361_v29 }
 0x108   :  { %v4319_v51 = vld [vmem:[%s6025_s1 + $0x864] ss:$16 sps:$4 sm:$0xff]   ;;  %v4322_v52 = vld [vmem:[%s6025_s1 + $0x86c] ss:$16 sps:$4 sm:$0xff]   ;;  %v4317_v53 = vld [vmem:[%s6025_s1 + $0x860] ss:$16 sps:$4 sm:$0xff]  }
 0x109   :  { %2663 = vmatpush1.bf16.msra.mxu0 %v4305_v25  ;;  %2950 = vmatpush1.bf16.msra.mxu1 %v4308_v45  ;;  %v4320_v54 = vld [vmem:[%s6025_s1 + $0x868] ss:$16 sps:$4 sm:$0xff]   ;;  %v4325_v55 = vld [vmem:[%s6025_s1 + $0x884] ss:$16 sps:$4 sm:$0xff]   ;;  %v4328_v56 = vld [vmem:[%s6025_s1 + $0x88c] ss:$16 sps:$4 sm:$0xff]   ;;  %v5575_v40 = vrot.slane %v68_v36, %v4704_v50 }
 0x10a   :  { %2664 = vmatprep.subr.bf16.mxu0 %v4313_v46  ;;  %2951 = vmatprep.subr.bf16.mxu1 %v4316_v47  ;;  %v4323_v57 = vld [vmem:[%s6025_s1 + $0x880] ss:$16 sps:$4 sm:$0xff]   ;;  %v4326_v58 = vld [vmem:[%s6025_s1 + $0x888] ss:$16 sps:$4 sm:$0xff]   ;;  %v4331_v59 = vld [vmem:[%s6025_s1 + $0x8a4] ss:$16 sps:$4 sm:$0xff]   ;;  %v113_v46 = vpack.c.bf16 %v5374_v33, %v5374_v33 }
 0x10b   :  { %v4334_v60 = vld [vmem:[%s6025_s1 + $0x8ac] ss:$16 sps:$4 sm:$0xff]   ;;  %v4329_v61 = vld [vmem:[%s6025_s1 + $0x8a0] ss:$16 sps:$4 sm:$0xff]   ;;  %v4332_v62 = vld [vmem:[%s6025_s1 + $0x8a8] ss:$16 sps:$4 sm:$0xff]   ;;  %v84_v45 = vcombine.high %v5575_v40, %v5575_v40 }
 0x10c   :  { %v4337_v63 = vld [vmem:[%s6025_s1 + $0x8c4] ss:$16 sps:$4 sm:$0xff]   ;;  %v4340_v0 = vld [vmem:[%s6025_s1 + $0x8cc] ss:$16 sps:$4 sm:$0xff]   ;;  %v4335_v1 = vld [vmem:[%s6025_s1 + $0x8c0] ss:$16 sps:$4 sm:$0xff]  }
 0x10d   :  { %2665 = vmatpush1.bf16.msra.mxu0 %v4311_v48  ;;  %2952 = vmatpush1.bf16.msra.mxu1 %v4314_v49  ;;  %v4338_v2 = vld [vmem:[%s6025_s1 + $0x8c8] ss:$16 sps:$4 sm:$0xff]   ;;  %v4343_v3 = vld [vmem:[%s6025_s1 + $0x8e4] ss:$16 sps:$4 sm:$0xff]   ;;  %v4346_v4 = vld [vmem:[%s6025_s1 + $0x8ec] ss:$16 sps:$4 sm:$0xff]  }
 0x10e   :  { %2666 = vmatprep.subr.bf16.mxu0 %v4319_v51  ;;  %2953 = vmatprep.subr.bf16.mxu1 %v4322_v52  ;;  %v4341_v5 = vld [vmem:[%s6025_s1 + $0x8e0] ss:$16 sps:$4 sm:$0xff]   ;;  %v4344_v6 = vld [vmem:[%s6025_s1 + $0x8e8] ss:$16 sps:$4 sm:$0xff]   ;;  %v4349_v7 = vld [vmem:[%s6025_s1 + $0x904] ss:$16 sps:$4 sm:$0xff]   ;;  %v116_v51 = vpack.c.bf16 %v84_v45, %v84_v45 }
 0x10f   :  { %v4352_v8 = vld [vmem:[%s6025_s1 + $0x90c] ss:$16 sps:$4 sm:$0xff]   ;;  %v4347_v9 = vld [vmem:[%s6025_s1 + $0x900] ss:$16 sps:$4 sm:$0xff]   ;;  %v4350_v11 = vld [vmem:[%s6025_s1 + $0x908] ss:$16 sps:$4 sm:$0xff]  }
 0x110   :  { %v4355_v12 = vld [vmem:[%s6025_s1 + $0x924] ss:$16 sps:$4 sm:$0xff]   ;;  %v4358_v13 = vld [vmem:[%s6025_s1 + $0x92c] ss:$16 sps:$4 sm:$0xff]   ;;  %v4353_v14 = vld [vmem:[%s6025_s1 + $0x920] ss:$16 sps:$4 sm:$0xff]  }
 0x111   :  { %2667 = vmatpush1.bf16.msra.mxu0 %v4317_v53  ;;  %2954 = vmatpush1.bf16.msra.mxu1 %v4320_v54  ;;  %v4356_v15 = vld [vmem:[%s6025_s1 + $0x928] ss:$16 sps:$4 sm:$0xff]   ;;  %v4361_v16 = vld [vmem:[%s6025_s1 + $0x944] ss:$16 sps:$4 sm:$0xff]   ;;  %v4364_v17 = vld [vmem:[%s6025_s1 + $0x94c] ss:$16 sps:$4 sm:$0xff]  }
 0x112   :  { %2668 = vmatprep.subr.bf16.mxu0 %v4325_v55  ;;  %2955 = vmatprep.subr.bf16.mxu1 %v4328_v56  ;;  %v4359_v18 = vld [vmem:[%s6025_s1 + $0x940] ss:$16 sps:$4 sm:$0xff]   ;;  %v4362_v19 = vld [vmem:[%s6025_s1 + $0x948] ss:$16 sps:$4 sm:$0xff]   ;;  %v4367_v20 = vld [vmem:[%s6025_s1 + $0x964] ss:$16 sps:$4 sm:$0xff]  }
 0x113   :  { %v4370_v21 = vld [vmem:[%s6025_s1 + $0x96c] ss:$16 sps:$4 sm:$0xff]   ;;  %v4365_v22 = vld [vmem:[%s6025_s1 + $0x960] ss:$16 sps:$4 sm:$0xff]   ;;  %v4368_v23 = vld [vmem:[%s6025_s1 + $0x968] ss:$16 sps:$4 sm:$0xff]  }
 0x114   :  { %v4373_v24 = vld [vmem:[%s6025_s1 + $0x984] ss:$16 sps:$4 sm:$0xff]   ;;  %v4376_v10 = vld [vmem:[%s6025_s1 + $0x98c] ss:$16 sps:$4 sm:$0xff]   ;;  %v4371_v27 = vld [vmem:[%s6025_s1 + $0x980] ss:$16 sps:$4 sm:$0xff]  }
 0x115   :  { %2669 = vmatpush1.bf16.msra.mxu0 %v4323_v57  ;;  %2956 = vmatpush1.bf16.msra.mxu1 %v4326_v58  ;;  %v4374_v28 = vld [vmem:[%s6025_s1 + $0x988] ss:$16 sps:$4 sm:$0xff]   ;;  %v4379_v30 = vld [vmem:[%s6025_s1 + $0x9a4] ss:$16 sps:$4 sm:$0xff]   ;;  %v4382_v31 = vld [vmem:[%s6025_s1 + $0x9ac] ss:$16 sps:$4 sm:$0xff]  }
 0x116   :  { %2670 = vmatprep.subr.bf16.mxu0 %v4331_v59  ;;  %2957 = vmatprep.subr.bf16.mxu1 %v4334_v60  ;;  %v4377_v32 = vld [vmem:[%s6025_s1 + $0x9a0] ss:$16 sps:$4 sm:$0xff]   ;;  %v4380_v34 = vld [vmem:[%s6025_s1 + $0x9a8] ss:$16 sps:$4 sm:$0xff]   ;;  %v4385_v26 = vld [vmem:[%s6025_s1 + $0x9c4] ss:$16 sps:$4 sm:$0xff]  }
 0x117   :  { %v4388_v35 = vld [vmem:[%s6025_s1 + $0x9cc] ss:$16 sps:$4 sm:$0xff]   ;;  %v4383_v37 = vld [vmem:[%s6025_s1 + $0x9c0] ss:$16 sps:$4 sm:$0xff]   ;;  %v4386_v38 = vld [vmem:[%s6025_s1 + $0x9c8] ss:$16 sps:$4 sm:$0xff]  }
 0x118   :  { %v4391_v39 = vld [vmem:[%s6025_s1 + $0x9e4] ss:$16 sps:$4 sm:$0xff]   ;;  %v4394_v29 = vld [vmem:[%s6025_s1 + $0x9ec] ss:$16 sps:$4 sm:$0xff]   ;;  %v4389_v41 = vld [vmem:[%s6025_s1 + $0x9e0] ss:$16 sps:$4 sm:$0xff]  }
 0x119   :  { %2671 = vmatpush1.bf16.msra.mxu0 %v4329_v61  ;;  %2958 = vmatpush1.bf16.msra.mxu1 %v4332_v62  ;;  %v4392_v42 = vld [vmem:[%s6025_s1 + $0x9e8] ss:$16 sps:$4 sm:$0xff]   ;;  %v4397_v43 = vld [vmem:[%s6025_s1 + $0xa04] ss:$16 sps:$4 sm:$0xff]   ;;  %v4400_v25 = vld [vmem:[%s6025_s1 + $0xa0c] ss:$16 sps:$4 sm:$0xff]  }
 0x11a   :  { %2672 = vmatprep.subr.bf16.mxu0 %v4337_v63  ;;  %2959 = vmatprep.subr.bf16.mxu1 %v4340_v0  ;;  %v4395_v47 = vld [vmem:[%s6025_s1 + $0xa00] ss:$16 sps:$4 sm:$0xff]   ;;  %v4398_v48 = vld [vmem:[%s6025_s1 + $0xa08] ss:$16 sps:$4 sm:$0xff]   ;;  %v4403_v49 = vld [vmem:[%s6025_s1 + $0xa24] ss:$16 sps:$4 sm:$0xff]  }
 0x11b   :  { %v4406_v33 = vld [vmem:[%s6025_s1 + $0xa2c] ss:$16 sps:$4 sm:$0xff]   ;;  %v4401_v52 = vld [vmem:[%s6025_s1 + $0xa20] ss:$16 sps:$4 sm:$0xff]   ;;  %v4404_v53 = vld [vmem:[%s6025_s1 + $0xa28] ss:$16 sps:$4 sm:$0xff]  }
 0x11c   :  { %v4409_v54 = vld [vmem:[%s6025_s1 + $0xa44] ss:$16 sps:$4 sm:$0xff]   ;;  %v4412_v55 = vld [vmem:[%s6025_s1 + $0xa4c] ss:$16 sps:$4 sm:$0xff]   ;;  %v4407_v56 = vld [vmem:[%s6025_s1 + $0xa40] ss:$16 sps:$4 sm:$0xff]  }
 0x11d   :  { %2673 = vmatpush1.bf16.msra.mxu0 %v4335_v1  ;;  %2960 = vmatpush1.bf16.msra.mxu1 %v4338_v2  ;;  %v4410_v57 = vld [vmem:[%s6025_s1 + $0xa48] ss:$16 sps:$4 sm:$0xff]   ;;  %v4415_v58 = vld [vmem:[%s6025_s1 + $0xa64] ss:$16 sps:$4 sm:$0xff]   ;;  %v4418_v59 = vld [vmem:[%s6025_s1 + $0xa6c] ss:$16 sps:$4 sm:$0xff]  }
 0x11e   :  { %2674 = vmatprep.subr.bf16.mxu0 %v4343_v3  ;;  %2961 = vmatprep.subr.bf16.mxu1 %v4346_v4  ;;  %v4413_v60 = vld [vmem:[%s6025_s1 + $0xa60] ss:$16 sps:$4 sm:$0xff]   ;;  %v4416_v61 = vld [vmem:[%s6025_s1 + $0xa68] ss:$16 sps:$4 sm:$0xff]   ;;  %v4421_v62 = vld [vmem:[%s6025_s1 + $0xa84] ss:$16 sps:$4 sm:$0xff]  }
 0x11f   :  { %v4424_v63 = vld [vmem:[%s6025_s1 + $0xa8c] ss:$16 sps:$4 sm:$0xff]   ;;  %v4419_v0 = vld [vmem:[%s6025_s1 + $0xa80] ss:$16 sps:$4 sm:$0xff]   ;;  %v4422_v1 = vld [vmem:[%s6025_s1 + $0xa88] ss:$16 sps:$4 sm:$0xff]  }
 0x120   :  { %v4427_v2 = vld [vmem:[%s6025_s1 + $0xaa4] ss:$16 sps:$4 sm:$0xff]   ;;  %v4430_v3 = vld [vmem:[%s6025_s1 + $0xaac] ss:$16 sps:$4 sm:$0xff]   ;;  %v4425_v4 = vld [vmem:[%s6025_s1 + $0xaa0] ss:$16 sps:$4 sm:$0xff]  }
 0x121   :  { %2675 = vmatpush1.bf16.msra.mxu0 %v4341_v5  ;;  %2962 = vmatpush1.bf16.msra.mxu1 %v4344_v6  ;;  %v4428_v5 = vld [vmem:[%s6025_s1 + $0xaa8] ss:$16 sps:$4 sm:$0xff]   ;;  %v4433_v6 = vld [vmem:[%s6025_s1 + $0xac4] ss:$16 sps:$4 sm:$0xff]   ;;  %vm2492_vm0 = vcmask 261120  }
 0x122   :  { %2676 = vmatprep.subr.bf16.mxu0 %v4349_v7  ;;  %2963 = vmatprep.subr.bf16.mxu1 %v4352_v8  ;;  %v4436_v7 = vld [vmem:[%s6025_s1 + $0xacc] ss:$16 sps:$4 sm:$0xff]   ;;  %v4431_v8 = vld [vmem:[%s6025_s1 + $0xac0] ss:$16 sps:$4 sm:$0xff]   ;;  %v4470_v36 = vld [vmem:[%s6025_s1 + $0xb88] ss:$16 sps:$4 sm:$0xff]  }
 0x123   :  { %v4487_v45 = vld [vmem:[%s6025_s1 + $0xbe4] ss:$16 sps:$4 sm:$0xff]  }
 0x125   :  { %2677 = vmatpush1.bf16.msra.mxu0 %v4347_v9  ;;  %2964 = vmatpush1.bf16.msra.mxu1 %v4350_v11  ;;  %v4434_v9 = vld [vmem:[%s6025_s1 + $0xac8] ss:$16 sps:$4 sm:$0xff]   ;;  %v4439_v11 = vld [vmem:[%s6025_s1 + $0xae4] ss:$16 sps:$4 sm:$0xff]  }
 0x126   :  { %2678 = vmatprep.subr.bf16.mxu0 %v4355_v12  ;;  %2965 = vmatprep.subr.bf16.mxu1 %v4358_v13  ;;  %v4442_v12 = vld [vmem:[%s6025_s1 + $0xaec] ss:$16 sps:$4 sm:$0xff]   ;;  %v4437_v13 = vld [vmem:[%s6025_s1 + $0xae0] ss:$16 sps:$4 sm:$0xff]  }
 0x129   :  { %2679 = vmatpush1.bf16.msra.mxu0 %v4353_v14  ;;  %2966 = vmatpush1.bf16.msra.mxu1 %v4356_v15  ;;  %v4440_v14 = vld [vmem:[%s6025_s1 + $0xae8] ss:$16 sps:$4 sm:$0xff]   ;;  %v4445_v15 = vld [vmem:[%s6025_s1 + $0xb04] ss:$16 sps:$4 sm:$0xff]  }
 0x12a   :  { %2680 = vmatprep.subr.bf16.mxu0 %v4361_v16  ;;  %2967 = vmatprep.subr.bf16.mxu1 %v4364_v17  ;;  %v4448_v16 = vld [vmem:[%s6025_s1 + $0xb0c] ss:$16 sps:$4 sm:$0xff]   ;;  %v4443_v17 = vld [vmem:[%s6025_s1 + $0xb00] ss:$16 sps:$4 sm:$0xff]  }
 0x12d   :  { %2681 = vmatpush1.bf16.msra.mxu0 %v4359_v18  ;;  %2968 = vmatpush1.bf16.msra.mxu1 %v4362_v19  ;;  %v4446_v18 = vld [vmem:[%s6025_s1 + $0xb08] ss:$16 sps:$4 sm:$0xff]   ;;  %v4451_v19 = vld [vmem:[%s6025_s1 + $0xb24] ss:$16 sps:$4 sm:$0xff]  }
 0x12e   :  { %2682 = vmatprep.subr.bf16.mxu0 %v4367_v20  ;;  %2969 = vmatprep.subr.bf16.mxu1 %v4370_v21  ;;  %v4454_v20 = vld [vmem:[%s6025_s1 + $0xb2c] ss:$16 sps:$4 sm:$0xff]   ;;  %v4449_v21 = vld [vmem:[%s6025_s1 + $0xb20] ss:$16 sps:$4 sm:$0xff]  }
 0x131   :  { %2683 = vmatpush1.bf16.msra.mxu0 %v4365_v22  ;;  %2970 = vmatpush1.bf16.msra.mxu1 %v4368_v23  ;;  %v4452_v22 = vld [vmem:[%s6025_s1 + $0xb28] ss:$16 sps:$4 sm:$0xff]   ;;  %v4457_v23 = vld [vmem:[%s6025_s1 + $0xb44] ss:$16 sps:$4 sm:$0xff]  }
 0x132   :  { %2684 = vmatprep.subr.bf16.mxu0 %v4373_v24  ;;  %2971 = vmatprep.subr.bf16.mxu1 %v4376_v10  ;;  %v4460_v24 = vld [vmem:[%s6025_s1 + $0xb4c] ss:$16 sps:$4 sm:$0xff]   ;;  %v4455_v10 = vld [vmem:[%s6025_s1 + $0xb40] ss:$16 sps:$4 sm:$0xff]  }
 0x135   :  { %2685 = vmatpush1.bf16.msra.mxu0 %v4371_v27  ;;  %2972 = vmatpush1.bf16.msra.mxu1 %v4374_v28  ;;  %v4458_v27 = vld [vmem:[%s6025_s1 + $0xb48] ss:$16 sps:$4 sm:$0xff]   ;;  %v4463_v28 = vld [vmem:[%s6025_s1 + $0xb64] ss:$16 sps:$4 sm:$0xff]  }
 0x136   :  { %2686 = vmatprep.subr.bf16.mxu0 %v4379_v30  ;;  %2973 = vmatprep.subr.bf16.mxu1 %v4382_v31  ;;  %v4466_v30 = vld [vmem:[%s6025_s1 + $0xb6c] ss:$16 sps:$4 sm:$0xff]   ;;  %v4461_v31 = vld [vmem:[%s6025_s1 + $0xb60] ss:$16 sps:$4 sm:$0xff]  }
 0x139   :  { %2687 = vmatpush1.bf16.msra.mxu0 %v4377_v32  ;;  %2974 = vmatpush1.bf16.msra.mxu1 %v4380_v34  ;;  %v4464_v32 = vld [vmem:[%s6025_s1 + $0xb68] ss:$16 sps:$4 sm:$0xff]   ;;  %v4469_v34 = vld [vmem:[%s6025_s1 + $0xb84] ss:$16 sps:$4 sm:$0xff]  }
 0x13a   :  { %2688 = vmatprep.subr.bf16.mxu0 %v4385_v26  ;;  %2975 = vmatprep.subr.bf16.mxu1 %v4388_v35  ;;  %v4472_v26 = vld [vmem:[%s6025_s1 + $0xb8c] ss:$16 sps:$4 sm:$0xff]   ;;  %v4467_v35 = vld [vmem:[%s6025_s1 + $0xb80] ss:$16 sps:$4 sm:$0xff]  }
 0x13d   :  { %2689 = vmatpush1.bf16.msra.mxu0 %v4383_v37  ;;  %2976 = vmatpush1.bf16.msra.mxu1 %v4386_v38  ;;  %v4475_v37 = vld [vmem:[%s6025_s1 + $0xba4] ss:$16 sps:$4 sm:$0xff]   ;;  %v4478_v38 = vld [vmem:[%s6025_s1 + $0xbac] ss:$16 sps:$4 sm:$0xff]  }
 0x13e   :  { %2690 = vmatprep.subr.bf16.mxu0 %v4391_v39  ;;  %2977 = vmatprep.subr.bf16.mxu1 %v4394_v29  ;;  %v4473_v39 = vld [vmem:[%s6025_s1 + $0xba0] ss:$16 sps:$4 sm:$0xff]   ;;  %v4476_v29 = vld [vmem:[%s6025_s1 + $0xba8] ss:$16 sps:$4 sm:$0xff]  }
 0x141   :  { %2691 = vmatpush1.bf16.msra.mxu0 %v4389_v41  ;;  %2978 = vmatpush1.bf16.msra.mxu1 %v4392_v42  ;;  %v4481_v41 = vld [vmem:[%s6025_s1 + $0xbc4] ss:$16 sps:$4 sm:$0xff]   ;;  %v4484_v42 = vld [vmem:[%s6025_s1 + $0xbcc] ss:$16 sps:$4 sm:$0xff]  }
 0x142   :  { %2701 = vmatprep.subr.bf16.mxu0 %v4397_v43  ;;  %2988 = vmatprep.subr.bf16.mxu1 %v4400_v25  ;;  %v4479_v43 = vld [vmem:[%s6025_s1 + $0xbc0] ss:$16 sps:$4 sm:$0xff]   ;;  %v4482_v25 = vld [vmem:[%s6025_s1 + $0xbc8] ss:$16 sps:$4 sm:$0xff]  }
 0x144   :  { %2693 = vmatmul.mubr.bf16.vlgmr.msra.gmra.mrb[0].mxu0 %v113_v46  ;;  %2980 = vmatmul.mubr.bf16.vlgmr.msra.gmra.mrb[0].mxu1 %v113_v46  ;;  %v4490_v46 = vld [vmem:[%s6025_s1 + $0xbec] ss:$16 sps:$4 sm:$0xff]  }
 0x145   :  { %2702 = vmatpush1.bf16.msra.mxu0 %v4395_v47  ;;  %2989 = vmatpush1.bf16.msra.mxu1 %v4398_v48  ;;  %v4485_v47 = vld [vmem:[%s6025_s1 + $0xbe0] ss:$16 sps:$4 sm:$0xff]   ;;  %v4488_v48 = vld [vmem:[%s6025_s1 + $0xbe8] ss:$16 sps:$4 sm:$0xff]  }
 0x146   :  { %2703 = vmatprep.subr.bf16.mxu0 %v4403_v49  ;;  %2990 = vmatprep.subr.bf16.mxu1 %v4406_v33  ;;  %v4494_v49 = vld [vmem:[%s6025_s1 + $0xc04] ss:$16 sps:$4 sm:$0xff]   ;;  %v4497_v33 = vld [vmem:[%s6025_s1 + $0xc0c] ss:$16 sps:$4 sm:$0xff]  }
 0x147   :  { %2733 = vmatprep.mubr.bf16.mxu0 %v116_v51  ;;  %3020 = vmatprep.mubr.bf16.mxu1 %v116_v51  ;;  %v115_v51 = vpack.c.bf16 %v5575_v40, %v5575_v40  ;;  %v4503_v40 = vld [vmem:[%s6025_s1 + $0xc2c] ss:$16 sps:$4 sm:$0xff]  }
 0x149   :  { %2704 = vmatpush1.bf16.msra.mxu0 %v4401_v52  ;;  %2991 = vmatpush1.bf16.msra.mxu1 %v4404_v53  ;;  %v4492_v52 = vld [vmem:[%s6025_s1 + $0xc00] ss:$16 sps:$4 sm:$0xff]   ;;  %v4495_v53 = vld [vmem:[%s6025_s1 + $0xc08] ss:$16 sps:$4 sm:$0xff]  }
 0x14a   :  { %2705 = vmatprep.subr.bf16.mxu0 %v4409_v54  ;;  %2992 = vmatprep.subr.bf16.mxu1 %v4412_v55  ;;  %v4500_v54 = vld [vmem:[%s6025_s1 + $0xc24] ss:$16 sps:$4 sm:$0xff]  }
 0x14b   :  { %v3113_v55 = vld [vmem:[%s6027_s3 + $0x80] sm:$0xff] }
 0x14d   :  { %2706 = vmatpush1.bf16.msra.mxu0 %v4407_v56  ;;  %2993 = vmatpush1.bf16.msra.mxu1 %v4410_v57  ;;  %v3114_v56 = vld [vmem:[%s6027_s3 + $0x88] sm:$0xff]  ;;  %v3145_v57 = vld [vmem:[%s6027_s3 + $0x180] sm:$0xff] }
 0x14e   :  { %2707 = vmatprep.subr.bf16.mxu0 %v4415_v58  ;;  %2994 = vmatprep.subr.bf16.mxu1 %v4418_v59  ;;  %v3146_v58 = vld [vmem:[%s6027_s3 + $0x188] sm:$0xff]  ;;  %v4498_v59 = vld [vmem:[%s6025_s1 + $0xc20] ss:$16 sps:$4 sm:$0xff]  }
 0x151   :  { %2708 = vmatpush1.bf16.msra.mxu0 %v4413_v60  ;;  %2995 = vmatpush1.bf16.msra.mxu1 %v4416_v61  ;;  %v4501_v60 = vld [vmem:[%s6025_s1 + $0xc28] ss:$16 sps:$4 sm:$0xff]   ;;  %v3794_v61 = vpack.c.bf16 %v3114_v56, %v3113_v55  ;;  %v3123_v56 = vld [vmem:[%s6027_s3 + $0xd0] sm:$0xff] }
 0x152   :  { %2709 = vmatprep.subr.bf16.mxu0 %v4421_v62  ;;  %2996 = vmatprep.subr.bf16.mxu1 %v4424_v63  ;;  %v3826_v62 = vpack.c.bf16 %v3146_v58, %v3145_v57  ;;  %v4529_v63 = vmov 0   ;;  %v3138_v55 = vld [vmem:[%s6027_s3 + $0x148] sm:$0xff]  ;;  %v3124_v57 = vld [vmem:[%s6027_s3 + $0xd8] sm:$0xff]  ;;  %v3155_v58 = vld [vmem:[%s6027_s3 + $0x1d0] sm:$0xff] }
 0x155   :  { %2710 = vmatpush1.bf16.msra.mxu0 %v4419_v0  ;;  %2997 = vmatpush1.bf16.msra.mxu1 %v4422_v1  ;;  %v3328_v0 = vld.sshfl [vmem:[%s6024_s0 + $0x18] sm:$0x3 pattern:$0x76325410]  ;;  %v3097_v1 = vld [vmem:[%s6027_s3] sm:$0xff] }
 0x156   :  { %2711 = vmatprep.subr.bf16.mxu0 %v4427_v2  ;;  %2998 = vmatprep.subr.bf16.mxu1 %v4430_v3  ;;  %v3098_v2 = vld [vmem:[%s6027_s3 + $0x8] sm:$0xff]  ;;  %v3129_v3 = vld [vmem:[%s6027_s3 + $0x100] sm:$0xff] }
 0x159   :  { %2712 = vmatpush1.bf16.msra.mxu0 %v4425_v4  ;;  %2999 = vmatpush1.bf16.msra.mxu1 %v4428_v5  ;;  %v3130_v4 = vld [vmem:[%s6027_s3 + $0x108] sm:$0xff]  ;;  %v3115_v5 = vld [vmem:[%s6027_s3 + $0x90] sm:$0xff] }
 0x15a   :  { %2713 = vmatprep.subr.bf16.mxu0 %v4433_v6  ;;  %3000 = vmatprep.subr.bf16.mxu1 %v4436_v7  ;;  %v3116_v6 = vld [vmem:[%s6027_s3 + $0x98] sm:$0xff]  ;;  %v3147_v7 = vld [vmem:[%s6027_s3 + $0x190] sm:$0xff] }
 0x15d   :  { %2714 = vmatpush1.bf16.msra.mxu0 %v4431_v8  ;;  %3001 = vmatpush1.bf16.msra.mxu1 %v4434_v9  ;;  %v3148_v8 = vld [vmem:[%s6027_s3 + $0x198] sm:$0xff]  ;;  %v117_v9 = vpack.c.bf16 %v3328_v0, %v3328_v0  ;;  %v3814_v0 = vpack.c.bf16 %v3124_v57, %v3123_v56 }
 0x15e   :  { %2715 = vmatprep.subr.bf16.mxu0 %v4439_v11  ;;  %3002 = vmatprep.subr.bf16.mxu1 %v4442_v12  ;;  %v3796_v11 = vpack.c.bf16 %v3098_v2, %v3097_v1  ;;  %v3828_v12 = vpack.c.bf16 %v3130_v4, %v3129_v3  ;;  %v3139_v2 = vld [vmem:[%s6027_s3 + $0x150] sm:$0xff]  ;;  %v3140_v3 = vld [vmem:[%s6027_s3 + $0x158] sm:$0xff]  ;;  %v3125_v4 = vld [vmem:[%s6027_s3 + $0xe0] sm:$0xff] }
 0x161   :  { %2716 = vmatpush1.bf16.msra.mxu0 %v4437_v13  ;;  %3003 = vmatpush1.bf16.msra.mxu1 %v4440_v14  ;;  %v3099_v13 = vld [vmem:[%s6027_s3 + $0x10] sm:$0xff]  ;;  %v3100_v14 = vld [vmem:[%s6027_s3 + $0x18] sm:$0xff] }
 0x162   :  { %2717 = vmatprep.subr.bf16.mxu0 %v4445_v15  ;;  %3004 = vmatprep.subr.bf16.mxu1 %v4448_v16  ;;  %v3798_v15 = vpack.c.bf16 %v3116_v6, %v3115_v5  ;;  %v3830_v16 = vpack.c.bf16 %v3148_v8, %v3147_v7  ;;  %v3126_v5 = vld [vmem:[%s6027_s3 + $0xe8] sm:$0xff]  ;;  %v3157_v6 = vld [vmem:[%s6027_s3 + $0x1e0] sm:$0xff] }
 0x163   :  { %v3158_v7 = vld [vmem:[%s6027_s3 + $0x1e8] sm:$0xff] }
 0x165   :  { %2718 = vmatpush1.bf16.msra.mxu0 %v4443_v17  ;;  %3005 = vmatpush1.bf16.msra.mxu1 %v4446_v18  ;;  %v3131_v17 = vld [vmem:[%s6027_s3 + $0x110] sm:$0xff]  ;;  %v3132_v18 = vld [vmem:[%s6027_s3 + $0x118] sm:$0xff] }
 0x166   :  { %2719 = vmatprep.subr.bf16.mxu0 %v4451_v19  ;;  %3006 = vmatprep.subr.bf16.mxu1 %v4454_v20  ;;  %v3117_v19 = vld [vmem:[%s6027_s3 + $0xa0] sm:$0xff]  ;;  %v3118_v20 = vld [vmem:[%s6027_s3 + $0xa8] sm:$0xff] }
 0x169   :  { %2720 = vmatpush1.bf16.msra.mxu0 %v4449_v21  ;;  %3007 = vmatpush1.bf16.msra.mxu1 %v4452_v22  ;;  %v3149_v21 = vld [vmem:[%s6027_s3 + $0x1a0] sm:$0xff]  ;;  %v3150_v22 = vld [vmem:[%s6027_s3 + $0x1a8] sm:$0xff] }
 0x16a   :  { %2721 = vmatprep.subr.bf16.mxu0 %v4457_v23  ;;  %3008 = vmatprep.subr.bf16.mxu1 %v4460_v24  ;;  %v3800_v23 = vpack.c.bf16 %v3100_v14, %v3099_v13  ;;  %v3832_v24 = vpack.c.bf16 %v3132_v18, %v3131_v17  ;;  %v3109_v13 = vld [vmem:[%s6027_s3 + $0x60] sm:$0xff]  ;;  %v3110_v14 = vld [vmem:[%s6027_s3 + $0x68] sm:$0xff] }
 0x16b   :  { %v3142_v17 = vld [vmem:[%s6027_s3 + $0x168] sm:$0xff] }
 0x16d   :  { %2722 = vmatpush1.bf16.msra.mxu0 %v4455_v10  ;;  %3009 = vmatpush1.bf16.msra.mxu1 %v4458_v27  ;;  %v3101_v10 = vld [vmem:[%s6027_s3 + $0x20] sm:$0xff]  ;;  %v3102_v27 = vld [vmem:[%s6027_s3 + $0x28] sm:$0xff] }
 0x16e   :  { %2723 = vmatprep.subr.bf16.mxu0 %v4463_v28  ;;  %3010 = vmatprep.subr.bf16.mxu1 %v4466_v30  ;;  %v3802_v28 = vpack.c.bf16 %v3118_v20, %v3117_v19  ;;  %v3834_v30 = vpack.c.bf16 %v3150_v22, %v3149_v21  ;;  %v3127_v19 = vld [vmem:[%s6027_s3 + $0xf0] sm:$0xff]  ;;  %v3128_v20 = vld [vmem:[%s6027_s3 + $0xf8] sm:$0xff] }
 0x16f   :  { %v3159_v21 = vld [vmem:[%s6027_s3 + $0x1f0] sm:$0xff]  ;;  %v3822_v22 = vpack.c.bf16 %v3128_v20, %v3127_v19 }
 0x171   :  { %2724 = vmatpush1.bf16.msra.mxu0 %v4461_v31  ;;  %3011 = vmatpush1.bf16.msra.mxu1 %v4464_v32  ;;  %v3133_v31 = vld [vmem:[%s6027_s3 + $0x120] sm:$0xff]  ;;  %v3134_v32 = vld [vmem:[%s6027_s3 + $0x128] sm:$0xff] }
 0x172   :  { %2725 = vmatprep.subr.bf16.mxu0 %v4469_v34  ;;  %3012 = vmatprep.subr.bf16.mxu1 %v4472_v26  ;;  %v3119_v34 = vld [vmem:[%s6027_s3 + $0xb0] sm:$0xff]  ;;  %v3120_v26 = vld [vmem:[%s6027_s3 + $0xb8] sm:$0xff] }
 0x175   :  { %2726 = vmatpush1.bf16.msra.mxu0 %v4467_v35  ;;  %3013 = vmatpush1.bf16.msra.mxu1 %v4470_v36  ;;  %v3151_v35 = vld [vmem:[%s6027_s3 + $0x1b0] sm:$0xff]  ;;  %v3152_v36 = vld [vmem:[%s6027_s3 + $0x1b8] sm:$0xff] }
 0x176   :  { %2727 = vmatprep.subr.bf16.mxu0 %v4475_v37  ;;  %3014 = vmatprep.subr.bf16.mxu1 %v4478_v38  ;;  %v3804_v37 = vpack.c.bf16 %v3102_v27, %v3101_v10  ;;  %v3836_v38 = vpack.c.bf16 %v3134_v32, %v3133_v31  ;;  %v3112_v10 = vld [vmem:[%s6027_s3 + $0x78] sm:$0xff] }
 0x177   :  { %v3144_v31 = vld [vmem:[%s6027_s3 + $0x178] sm:$0xff] }
 0x179   :  { %2728 = vmatpush1.bf16.msra.mxu0 %v4473_v39  ;;  %3015 = vmatpush1.bf16.msra.mxu1 %v4476_v29  ;;  %v3103_v39 = vld [vmem:[%s6027_s3 + $0x30] sm:$0xff]  ;;  %v3104_v29 = vld [vmem:[%s6027_s3 + $0x38] sm:$0xff] }
 0x17a   :  { %2729 = vmatprep.subr.bf16.mxu0 %v4481_v41  ;;  %3016 = vmatprep.subr.bf16.mxu1 %v4484_v42  ;;  %v3806_v41 = vpack.c.bf16 %v3120_v26, %v3119_v34  ;;  %v3838_v42 = vpack.c.bf16 %v3152_v36, %v3151_v35  ;;  %v514_v34 = vsub.s32 0, %v4686_v44  ;;  %v522_v26 = vsub.s32 2, %v4686_v44  ;;  %v510_v35 = vld [vmem:[%s6026_s2] sm:$0xf]  ;;  %s4530_s2 = smov [#allocation3]  }
 0x17b   :  { %v518_v36 = vsub.s32 1, %v4686_v44 }
 0x17d   :  { %2730 = vmatpush1.bf16.msra.mxu0 %v4479_v43  ;;  %3017 = vmatpush1.bf16.msra.mxu1 %v4482_v25  ;;  %v3135_v43 = vld [vmem:[%s6027_s3 + $0x130] sm:$0xff]  ;;  %v3136_v25 = vld [vmem:[%s6027_s3 + $0x138] sm:$0xff] }
 0x17e   :  { %2731 = vmatprep.subr.bf16.mxu0 %v4487_v45  ;;  %3018 = vmatprep.subr.bf16.mxu1 %v4490_v46  ;;  %v3121_v45 = vld [vmem:[%s6027_s3 + $0xc0] sm:$0xff]  ;;  %v3122_v46 = vld [vmem:[%s6027_s3 + $0xc8] sm:$0xff] }
 0x181   :  { %2732 = vmatpush1.bf16.msra.mxu0 %v4485_v47  ;;  %3019 = vmatpush1.bf16.msra.mxu1 %v4488_v48  ;;  %v3153_v47 = vld [vmem:[%s6027_s3 + $0x1c0] sm:$0xff]  ;;  %v3154_v48 = vld [vmem:[%s6027_s3 + $0x1c8] sm:$0xff] }
 0x182   :  { %2742 = vmatprep.subr.bf16.mxu0 %v4494_v49  ;;  %3029 = vmatprep.subr.bf16.mxu1 %v4497_v33  ;;  %v3808_v49 = vpack.c.bf16 %v3104_v29, %v3103_v39  ;;  %v3840_v33 = vpack.c.bf16 %v3136_v25, %v3135_v43  ;;  %v523_v39 = vrot.slane %v510_v35, %v522_v26 }
 0x183   :  { %v519_v29 = vrot.slane %v510_v35, %v518_v36 }
 0x184   :  { %2734 = vmatmul.mubr.bf16.vlgmr.msra.gmra.mrb[0].mxu0 %v115_v51  ;;  %3021 = vmatmul.mubr.bf16.vlgmr.msra.gmra.mrb[0].mxu1 %v115_v51  ;;  %v3105_v51 = vld [vmem:[%s6027_s3 + $0x40] sm:$0xff] }
 0x185   :  { %2743 = vmatpush1.bf16.msra.mxu0 %v4492_v52  ;;  %3030 = vmatpush1.bf16.msra.mxu1 %v4495_v53  ;;  %v3106_v52 = vld [vmem:[%s6027_s3 + $0x48] sm:$0xff]  ;;  %v3810_v53 = vpack.c.bf16 %v3122_v46, %v3121_v45 }
 0x186   :  { %2744 = vmatprep.subr.bf16.mxu0 %v4500_v54  ;;  %3031 = vmatprep.subr.bf16.mxu1 %v4503_v40  ;;  %v3842_v54 = vpack.c.bf16 %v3154_v48, %v3153_v47  ;;  %v3137_v40 = vld [vmem:[%s6027_s3 + $0x140] sm:$0xff] }
 0x187   :  { %2774 = vmatprep.mubr.bf16.mxu0 %v4529_v63  ;;  %3061 = vmatprep.mubr.bf16.mxu1 %v4529_v63  ;;  %v3108_v63 = vld [vmem:[%s6027_s3 + $0x58] sm:$0xff] }
 0x189   :  { %2745 = vmatpush1.bf16.msra.mxu0 %v4498_v59  ;;  %3032 = vmatpush1.bf16.msra.mxu1 %v4501_v60  ;;  %v3156_v59 = vld [vmem:[%s6027_s3 + $0x1d8] sm:$0xff]  ;;  %v3812_v60 = vpack.c.bf16 %v3106_v52, %v3105_v51 }
 0x18a   :  { %3795 = vmatprep.subr.bf16.mxu0 %v3794_v61  ;;  %3827 = vmatprep.subr.bf16.mxu1 %v3826_v62  ;;  %v3844_v61 = vpack.c.bf16 %v3138_v55, %v3137_v40  ;;  %v3107_v62 = vld [vmem:[%s6027_s3 + $0x50] sm:$0xff]  ;;  %v3846_v1 = vpack.c.bf16 %v3156_v59, %v3155_v58 }
 0x18b   :  { %v3816_v8 = vpack.c.bf16 %v3108_v63, %v3107_v62 }
 0x190   :  { %3721 = vmatmul.mubr.msk.bf16.vlgmr.msra.gmra.mrb[0].mxu0 %vm2492_vm0, %v117_v9  ;;  %3722 = vmatmul.mubr.msk.bf16.vlgmr.msra.gmra.mrb[0].mxu1 %vm2492_vm0, %v117_v9  ;;  %v3848_v9 = vpack.c.bf16 %v3140_v3, %v3139_v2 }
 0x191   :  { %3797 = vmatpush3.bf16.msra.mxu0 %v3796_v11  ;;  %3829 = vmatpush3.bf16.msra.mxu1 %v3828_v12  ;;  %v3818_v11 = vpack.c.bf16 %v3126_v5, %v3125_v4  ;;  %v3850_v12 = vpack.c.bf16 %v3158_v7, %v3157_v6 }
 0x192   :  { %3799 = vmatprep.subr.bf16.mxu0 %v3798_v15  ;;  %3831 = vmatprep.subr.bf16.mxu1 %v3830_v16  ;;  %v3141_v15 = vld [vmem:[%s6027_s3 + $0x160] sm:$0xff]  ;;  %v3820_v16 = vpack.c.bf16 %v3110_v14, %v3109_v13 }
 0x193   :  { %v3852_v18 = vpack.c.bf16 %v3142_v17, %v3141_v15 }
 0x195   :  { %3801 = vmatpush3.bf16.msra.mxu0 %v3800_v23  ;;  %3833 = vmatpush3.bf16.msra.mxu1 %v3832_v24  ;;  %v3160_v23 = vld [vmem:[%s6027_s3 + $0x1f8] sm:$0xff]  ;;  %v3111_v24 = vld [vmem:[%s6027_s3 + $0x70] sm:$0xff] }
 0x196   :  { %3803 = vmatprep.subr.bf16.mxu0 %v3802_v28  ;;  %3835 = vmatprep.subr.bf16.mxu1 %v3834_v30  ;;  %v3854_v27 = vpack.c.bf16 %v3160_v23, %v3159_v21  ;;  %v3824_v28 = vpack.c.bf16 %v3112_v10, %v3111_v24  ;;  %v3143_v30 = vld [vmem:[%s6027_s3 + $0x170] sm:$0xff]  ;;  %s3316_s3 = sshll.u32 %s4530_s2, 4  ;;  %s3317_s3 = int_to_ptr.vmem [resolvable:$true] %s3316_s3 }
 0x197   :  { %v3856_v32 = vpack.c.bf16 %v3144_v31, %v3143_v30  ;;  %s4504_s10 = scalar_lea.vmem %s3317_s3, 128  ;;  %p4509_p1 = scmp.lt.s32.totalorder %s3317_s3, %s3317_s3 }
 0x198   :  { %p4505_p0 = scmp.ne.s32.totalorder %s3317_s3, %s4504_s10  ;;  %p4510_p2 = scmp.lt.s32.totalorder %s4504_s10, %s4504_s10 }
 0x199   :  { %3805 = vmatpush3.bf16.msra.mxu0 %v3804_v37  ;;  %3837 = vmatpush3.bf16.msra.mxu1 %v3836_v38  ;;  %v526_v37 = vsub.s32 3, %v4686_v44  ;;  %v515_v38 = vrot.slane %v510_v35, %v514_v34 }
 0x19a   :  { %3807 = vmatprep.subr.bf16.mxu0 %v3806_v41  ;;  %3839 = vmatprep.subr.bf16.mxu1 %v3838_v42  ;;  %p4511_p3 = por %p4510_p2, %p4509_p1 }
 0x19b   :  { %v527_v41 = vrot.slane %v510_v35, %v526_v37 }
 0x19c   :  { %p4512_p4 = pnand %p4511_p3, %p4505_p0 }
 0x19d   :  { %3809 = vmatpush3.bf16.msra.mxu0 %v3808_v49  ;;  %3841 = vmatpush3.bf16.msra.mxu1 %v3840_v33 }
 0x19e   :  { %3811 = vmatprep.subr.bf16.mxu0 %v3810_v53  ;;  %3843 = vmatprep.subr.bf16.mxu1 %v3842_v54 }
 0x1a1   :  { %3813 = vmatpush3.bf16.msra.mxu0 %v3812_v60  ;;  %3845 = vmatpush3.bf16.msra.mxu1 %v3844_v61 }
 0x1a2   :  { %3815 = vmatprep.subr.bf16.mxu0 %v3814_v0  ;;  %3847 = vmatprep.subr.bf16.mxu1 %v3846_v1 }
 0x1a5   :  { %3817 = vmatpush3.bf16.msra.mxu0 %v3816_v8  ;;  %3849 = vmatpush3.bf16.msra.mxu1 %v3848_v9 }
 0x1a6   :  { %3819 = vmatprep.subr.bf16.mxu0 %v3818_v11  ;;  %3851 = vmatprep.subr.bf16.mxu1 %v3850_v12 }
 0x1a9   :  { %3821 = vmatpush3.bf16.msra.mxu0 %v3820_v16  ;;  %3853 = vmatpush3.bf16.msra.mxu1 %v3852_v18 }
 0x1aa   :  { %3823 = vmatprep.subr.bf16.mxu0 %v3822_v22  ;;  %3855 = vmatprep.subr.bf16.mxu1 %v3854_v27 }
 0x1ad   :  { %3825 = vmatpush3.bf16.msra.mxu0 %v3824_v28  ;;  %3857 = vmatpush3.bf16.msra.mxu1 %v3856_v32 }
 0x263   :  { %v2776_v42 = vpop.f32.mrb[0].mxu0  ;;  %v3063_v43 = vpop.f32.mrb[0].mxu1 }
 0x264   :  { %v3858_v25 = vadd.f32 %v2776_v42, %v515_v38  ;;  %v3860_v45 = vadd.f32 %v3063_v43, %v523_v39  ;;  %v2778_v46 = vpop.f32.mrb[1].mxu0  ;;  %v3065_v47 = vpop.f32.mrb[1].mxu1 }
 0x265   :  { %v3859_v48 = vadd.f32 %v2778_v46, %v519_v29  ;;  %v3861_v49 = vadd.f32 %v3065_v47, %v527_v41  ;;  %v2780_v33 = vpop.f32.mrb[2].mxu0  ;;  %v3067_v51 = vpop.f32.mrb[2].mxu1 }
 0x266   :  { %v3070_v52 = vmax.f32 %v3858_v25, 0.0  ;;  %v3072_v53 = vmax.f32 %v3860_v45, 0.0  ;;  %v2781_v54 = vpop.f32.mrb[3].mxu0  ;;  %v3068_v40 = vpop.f32.mrb[3].mxu1 }
 0x267   :  { %v3071_v55 = vmax.f32 %v3859_v48, 0.0  ;;  %v3073_v44 = vmax.f32 %v3861_v49, 0.0 }
 0x269   :  { %v3078_v56 = vcombine.low %v3070_v52, %v3071_v55  ;;  %v3079_v57 = vcombine.low %v3072_v53, %v3073_v44  ;;  %3232 = vmatprep.mubr.f32.mxu0 %v3071_v55  ;;  %3302 = vmatprep.mubr.f32.mxu1 %v3073_v44 }
 0x26a   :  { %3233 = vmatmul.mubr.f32.vlgmr.msra.gmra.mrb[4].mxu0 %v3070_v52  ;;  %3303 = vmatmul.mubr.f32.vlgmr.msra.gmra.mrb[4].mxu1 %v3072_v53 }
 0x26b   :  { %v3086_v58 = vrot.slane %v3078_v56, %v4704_v50  ;;  %v3093_v59 = vrot.slane %v3079_v57, %v4704_v50 }
 0x26d   :  { %v3094_v60 = vcombine.low %v3086_v58, %v3093_v59 }
 0x26f   :  { %3096 = vst [vmem:[#allocation3] sm:$0xff] %v3094_v60 }
 0x270   :  { %4515 = shalt.err (!%p4512_p4)
}
 0x271   :  { %s4516_s13 = scalar_lea.hbm %s6029_s5, 128 }
 0x272   :  { %p4517_p5 = scmp.ne.s32.totalorder %s6029_s5, %s4516_s13  ;;  %p4520_p6 = scmp.lt.u32.totalorder %s4516_s13, %s6029_s5 }
 0x274   :  { %p4522_p7 = pnand %p4520_p6, %p4517_p5 }
 0x276   :  { %4525 = shalt.err (!%p4522_p7)
}
 0x277   :  { %3319 = dma.vmem_to_hbm [thread:$0]  %s3317_s3, 128, %s6029_s5, [#allocation4]   ;;  %v3723_v62 = vld [vmem:[#allocation2] ss:$0 sm:$0xff]  ;;  %vm3308_vm1 = vcmask 1024  }
 0x33d   :  { %v3756_v50 = vpop.f32.mrb[4].mxu0  ;;  %v3791_v61 = vpop.f32.mrb[4].mxu1 }
 0x33e   :  { %v3757_v63 = vpop.f32.mrb[5].mxu0  ;;  %v3792_v0 = vpop.f32.mrb[5].mxu1 }
 0x33f   :  { %v3758_v1 = vadd.f32 %v3757_v63, %v3756_v50  ;;  %v3793_v2 = vadd.f32 %v3792_v0, %v3791_v61 }
 0x341   :  { %v3235_v3 = vadd.f32 %v3758_v1, %v3723_v62 }
 0x343   :  { %v3305_v4 = vadd.f32 %v3793_v2, %v3235_v3 }
 0x345   :  { %3309 = vst.msk [vmem:[%s6030_s6] sm:$0x3] %vm3308_vm1, %v3305_v4 }
 0x346   :  { %4526 = dma.done.wait [#allocation4], 128  }
 0x347   :  { %4527 = vsyncadd [#allocation4], 4294967168 }
 0x348   :  { %3327 = vsyncpa [#allocation4], 1 }

</bundles_post_ra>
